<compile_context>
chip_gen: v7x
topology: tpu7x:2x2x1
jax: 0.10.0
libtpu: 0.0.40
codegen_flags: <defaults>
</compile_context>

<pallas_src>
import jax
import jax.numpy as jnp
from jax.experimental import pallas as pl
from jax.experimental.pallas import tpu as pltpu


def _vq_kernel(x_ref, cb_ref, c2_ref, idx_ref, quant_ref):
    """One tile of rows through the vector quantizer.

    x_ref     : (tm, D)  float32   input rows
    cb_ref    : (K, D)   float32   codebook (VMEM-resident across the grid)
    c2_ref    : (1, K)   float32   precomputed ||c||^2 per codeword
    idx_ref   : (tm, 1)  int32     argmin indices
    quant_ref : (tm, D)  float32   gathered codebook rows
    """
    tm, D = x_ref.shape
    K = cb_ref.shape[0]

    x = x_ref[...]                       # (tm, D)
    cb = cb_ref[...]                     # (K, D)
    c2 = c2_ref[...]                     # (1, K)

    # x . c^T on the MXU, contracting D with D (no explicit transpose op).
    dots = jax.lax.dot_general(
        x, cb, (((1,), (1,)), ((), ())),
        preferred_element_type=jnp.float32)          # (tm, K)

    # argmin of Euclidean distance == argmin of (||c||^2 - 2 x.c);
    # ||x||^2 is constant over K so it is dropped entirely.
    scores = c2 - 2.0 * dots                          # (tm, K)

    idx = jnp.argmin(scores, axis=-1).astype(jnp.int32)          # (tm,)
    idx_col = idx[:, None]                                        # (tm, 1)

    # Gather codebook rows via one-hot matmul (MXU-friendly, exact in fp32).
    lane_iota = jax.lax.broadcasted_iota(jnp.int32, (tm, K), 1)   # (tm, K)
    onehot = (lane_iota == idx_col).astype(jnp.float32)           # (tm, K)
    quant = jnp.dot(onehot, cb, preferred_element_type=jnp.float32)  # (tm, D)

    idx_ref[...] = idx_col
    quant_ref[...] = quant.astype(quant_ref.dtype)


def vq_forward(x, codebook, *, tm=512):
    """VectorQuantizer forward pass.

    x        : (B, L, D) float32
    codebook : (K, D)    float32
    returns  : indices (B, L) int32, quantized (B, L, D) float32
    """
    B, L, D = x.shape
    K, Dc = codebook.shape
    assert D == Dc, "x feature dim must match codebook dim"

    M = B * L
    tm = min(tm, M)
    assert tm % 8 == 0, "row tile must be a multiple of 8 (sublane)"

    # Pad rows to a multiple of the tile; padded rows are discarded afterwards.
    n_tiles = pl.cdiv(M, tm)
    M_pad = n_tiles * tm
    x_flat = x.reshape(M, D)
    if M_pad != M:
        x_flat = jnp.pad(x_flat, ((0, M_pad - M), (0, 0)))

    # ||c||^2 hoisted out of the kernel (grid-invariant).
    c2 = jnp.sum(codebook * codebook, axis=-1)[None, :]           # (1, K)

    grid = (n_tiles,)

    idx_flat, quant_flat = pl.pallas_call(
        _vq_kernel,
        out_shape=(
            jax.ShapeDtypeStruct((M_pad, 1), jnp.int32),
            jax.ShapeDtypeStruct((M_pad, D), jnp.float32),
        ),
        grid_spec=pltpu.PrefetchScalarGridSpec(
            num_scalar_prefetch=0,
            grid=grid,
            in_specs=[
                pl.BlockSpec((tm, D), lambda i: (i, 0)),
                pl.BlockSpec((K, D), lambda i: (0, 0)),
                pl.BlockSpec((1, K), lambda i: (0, 0)),
            ],
            out_specs=[
                pl.BlockSpec((tm, 1), lambda i: (i, 0)),
                pl.BlockSpec((tm, D), lambda i: (i, 0)),
            ],
        ),
        compiler_params=pltpu.CompilerParams(
            dimension_semantics=("parallel",),
        ),
    )(x_flat, codebook, c2)

    indices = idx_flat[:M, 0].reshape(B, L)
    quantized = quant_flat[:M].reshape(B, L, D)
    return indices, quantized


def vq_reference(x, codebook):
    """Pure-JAX reference matching the PyTorch forward (cdist + argmin + gather)."""
    dist = jnp.sqrt(
        jnp.maximum(
            jnp.sum(x * x, axis=-1, keepdims=True)
            - 2.0 * jnp.einsum("bld,kd->blk", x, codebook)
            + jnp.sum(codebook * codebook, axis=-1)[None, None, :],
            0.0,
        )
    )
    idx = jnp.argmin(dist, axis=-1).astype(jnp.int32)
    return idx, codebook[idx]


if __name__ == "__main__":
    # Small shapes consistent with the module: dim=32, codebook_size=256,
    # batch=2, seq_len=512  ->  M = 1024 rows, grid = (2,)  (even, so both
    # v7x TensorCores get work with the default tm=512).
    B, L, D = 2, 512, 32
    K = 256

    key = jax.random.PRNGKey(0)
    kx, kcb = jax.random.split(key)
    x = jax.random.normal(kx, (B, L, D), dtype=jnp.float32)
    # nn.Embedding default init: N(0, 1)
    codebook = jax.random.normal(kcb, (K, D), dtype=jnp.float32)

    indices, quantized = vq_forward(x, codebook, tm=512)
    jax.block_until_ready((indices, quantized))

    ref_idx, ref_quant = vq_reference(x, codebook)
    assert indices.shape == (B, L)
    assert quantized.shape == (B, L, D)
    assert jnp.array_equal(indices, ref_idx)
    assert jnp.allclose(quantized, ref_quant, atol=1e-5, rtol=1e-5)

    print("KERNEL_OK")
</pallas_src>

<mosaic_0001>
module attributes {stable_mosaic.version = 11 : i64} {
  func.func @_vq_kernel(%arg0: i32, %arg1: memref<512x32xf32, #tpu.memory_space<vmem>>, %arg2: memref<256x32xf32, #tpu.memory_space<vmem>>, %arg3: memref<1x256xf32, #tpu.memory_space<vmem>>, %arg4: memref<512x1xi32, #tpu.memory_space<vmem>>, %arg5: memref<512x32xf32, #tpu.memory_space<vmem>>) attributes {dimension_semantics = [#tpu.dimension_semantics<parallel>], iteration_bounds = array<i64: 2>, scalar_prefetch = 0 : i64, scratch_operands = 0 : i64, tpu.core_type = #tpu.core_type<tc>, window_params = [{transform_indices = @transform_0, window_bounds = array<i64: 512, 32>}, {pipeline_mode = #tpu.pipeline_mode<synchronous>, transform_indices = @transform_1, window_bounds = array<i64: 256, 32>}, {pipeline_mode = #tpu.pipeline_mode<synchronous>, transform_indices = @transform_2, window_bounds = array<i64: 1, 256>}, {transform_indices = @transform_3, window_bounds = array<i64: 512, 1>}, {transform_indices = @transform_4, window_bounds = array<i64: 512, 32>}]} {
    %c0 = arith.constant 0 : index
    %c0_0 = arith.constant 0 : index
    %0 = vector.load %arg1[%c0, %c0_0] : memref<512x32xf32, #tpu.memory_space<vmem>>, vector<512x32xf32>
    %c0_1 = arith.constant 0 : index
    %c0_2 = arith.constant 0 : index
    %1 = vector.load %arg2[%c0_1, %c0_2] : memref<256x32xf32, #tpu.memory_space<vmem>>, vector<256x32xf32>
    %c0_3 = arith.constant 0 : index
    %c0_4 = arith.constant 0 : index
    %2 = vector.load %arg3[%c0_3, %c0_4] : memref<1x256xf32, #tpu.memory_space<vmem>>, vector<1x256xf32>
    %cst = arith.constant dense<0.000000e+00> : vector<512x256xf32>
    %3 = tpu.matmul %0, %1, %cst {dimension_numbers = #tpu.dot_dimension_numbers<[1], [1], [0], [0], [0, 0, 1, 0], [], []>} : vector<512x32xf32>, vector<256x32xf32>, vector<512x256xf32> -> vector<512x256xf32>
    %cst_5 = arith.constant 2.000000e+00 : f32
    %4 = vector.broadcast %cst_5 : f32 to vector<512x256xf32>
    %5 = arith.mulf %4, %3 : vector<512x256xf32>
    %6 = vector.broadcast %2 : vector<1x256xf32> to vector<512x256xf32>
    %7 = arith.subf %6, %5 : vector<512x256xf32>
    %8 = tpu.reduce_index %7 {axis = 1 : i32, kind = #tpu.reduction_kind<arg_min>} : vector<512x256xf32> -> vector<512xi32>
    %9 = vector.shape_cast %8 : vector<512xi32> to vector<512x1xi32>
    %10 = tpu.iota {dimensions = array<i32: 1>} : vector<512x256xi32>
    %11 = vector.broadcast %9 : vector<512x1xi32> to vector<512x256xi32>
    %12 = arith.cmpi eq, %10, %11 : vector<512x256xi32>
    %13 = arith.extui %12 : vector<512x256xi1> to vector<512x256xi32>
    %14 = arith.sitofp %13 : vector<512x256xi32> to vector<512x256xf32>
    %cst_6 = arith.constant dense<0.000000e+00> : vector<512x32xf32>
    %15 = tpu.matmul %14, %1, %cst_6 {dimension_numbers = #tpu.dot_dimension_numbers<[1], [0], [0], [1], [0, 0, 1, 1], [], []>} : vector<512x256xf32>, vector<256x32xf32>, vector<512x32xf32> -> vector<512x32xf32>
    %c0_7 = arith.constant 0 : index
    %c0_8 = arith.constant 0 : index
    %16 = vector.load %arg4[%c0_7, %c0_8] : memref<512x1xi32, #tpu.memory_space<vmem>>, vector<512x1xi32>
    tpu.vector_store %arg4[%c0_7, %c0_8], %9 {strides = array<i32>} : memref<512x1xi32, #tpu.memory_space<vmem>>, vector<512x1xi32>,
    %c0_9 = arith.constant 0 : index
    %c0_10 = arith.constant 0 : index
    %17 = vector.load %arg5[%c0_9, %c0_10] : memref<512x32xf32, #tpu.memory_space<vmem>>, vector<512x32xf32>
    tpu.vector_store %arg5[%c0_9, %c0_10], %15 {strides = array<i32>} : memref<512x32xf32, #tpu.memory_space<vmem>>, vector<512x32xf32>,
    return
  }
  func.func @transform_0(%arg0: i32) -> (i32, i32) {
    %c0_i32 = arith.constant 0 : i32
    %c0_i32_0 = arith.constant 0 : i32
    return %arg0, %c0_i32 : i32, i32
  }
  func.func @transform_1(%arg0: i32) -> (i32, i32) {
    %c0_i32 = arith.constant 0 : i32
    %c0_i32_0 = arith.constant 0 : i32
    %c0_i32_1 = arith.constant 0 : i32
    return %c0_i32, %c0_i32_0 : i32, i32
  }
  func.func @transform_2(%arg0: i32) -> (i32, i32) {
    %c0_i32 = arith.constant 0 : i32
    %c0_i32_0 = arith.constant 0 : i32
    %c0_i32_1 = arith.constant 0 : i32
    return %c0_i32, %c0_i32_0 : i32, i32
  }
  func.func @transform_3(%arg0: i32) -> (i32, i32) {
    %c0_i32 = arith.constant 0 : i32
    %c0_i32_0 = arith.constant 0 : i32
    return %arg0, %c0_i32 : i32, i32
  }
  func.func @transform_4(%arg0: i32) -> (i32, i32) {
    %c0_i32 = arith.constant 0 : i32
    %c0_i32_0 = arith.constant 0 : i32
    return %arg0, %c0_i32 : i32, i32
  }
}

</mosaic_0001>

<bundles_post_ra>
// kernel: tpu_custom_call.1
= control target key start
LH: loop header
LB: loop body
LE: loop exit
PB: predicated region body
PF: predicated region fallthrough
CT: control target
= control target key end

     0   :  { %s3550_s15 = smov 0   ;;  %s5874_s0 = inlined_call_operand.vmem [shape: f32[1024,32], index: 0, kind: input, shape index: {}]   ;;  %s5875_s1 = inlined_call_operand.vmem [shape: f32[256,32], index: 1, kind: input, shape index: {}]   ;;  %s5876_s2 = inlined_call_operand.vmem [shape: f32[1,256], index: 2, kind: input, shape index: {}]   ;;  %s5877_s3 = inlined_call_operand.vmem [shape: s32[1024,1], index: 3, kind: output, shape index: {0}]   ;;  %s5878_s4 = inlined_call_operand.vmem [shape: f32[1024,32], index: 4, kind: output, shape index: {1}]  }
   0x1 LB: > { %s2820_s16 = sadd.s32 4294967295, %s3521_s15   ;;  %p2824_p0 = scmp.ge.s32.totalorder %s3521_s15, 1  ;;  %s3521_s15 = sphi %s3550_s15, %s15_s15  }
   0x2   : > { %p166_p1 = scmp.lt.s32.totalorder %s3521_s15, 3 }
   0x4   : > { %p167_p2 = pnand %p2824_p0, %p166_p1 }
   0x6   : > { %170 = sbr.rel (%p167_p2) target bundleno = 1424 (0x590), region = 32 }
   0xd   : > { %v295_v0 = vld [vmem:[%s5875_s1 + $0x80] sm:$0xff]  ;;  %v296_v1 = vld [vmem:[%s5875_s1 + $0x88] sm:$0xff]  ;;  %vm5934_vm0 = vcmask 261120   ;;  %s2825_s23 = sshll.u32 %s2820_s16, 6  ;;  %v297_v6 = vld [vmem:[%s5875_s1 + $0x90] sm:$0xff] }
   0xe   : > { %v279_v2 = vld [vmem:[%s5875_s1] sm:$0xff]  ;;  %v3567_v3 = vpack.c.bf16 %v296_v1, %v295_v0  ;;  %vm3571_vm1 = vmpackc.low %vm5934_vm0, %vm5934_vm0  ;;  %v280_v5 = vld [vmem:[%s5875_s1 + $0x8] sm:$0xff]  ;;  %p198_p3 = scmp.lt.s32.totalorder %s2825_s23, 127 }
   0xf   : > { %v3581_v7 = vpack.c.bf16 %v280_v5, %v279_v2  ;;  %v298_v8 = vld [vmem:[%s5875_s1 + $0x98] sm:$0xff]  ;;  %v281_v10 = vld [vmem:[%s5875_s1 + $0x10] sm:$0xff]  ;;  %v299_v12 = vld [vmem:[%s5875_s1 + $0xa0] sm:$0xff] }
  0x10   : > { %3347 = vmatprep.subr.msk.bf16.mxu0 %vm3571_vm1, %v3567_v3  ;;  %v3589_v9 = vpack.c.bf16 %v298_v8, %v297_v6  ;;  %s6183_s23 = smov (!%p198_p3, %s2825_s23), 127  ;;  %v282_v11 = vld [vmem:[%s5875_s1 + $0x18] sm:$0xff]  ;;  %v300_v13 = vld [vmem:[%s5875_s1 + $0xa8] sm:$0xff]  ;;  %v283_v17 = vld [vmem:[%s5875_s1 + $0x20] sm:$0xff] }
  0x11   : > { %3350 = vmatpush3.bf16.xpose.msk.msra.mxu0 %vm3571_vm1, %v3581_v7  ;;  %s3603_s8 = sshll.u32 %s6183_s23, 3  ;;  %v3611_v14 = vpack.c.bf16 %v282_v11, %v281_v10  ;;  %v3619_v15 = vpack.c.bf16 %v300_v13, %v299_v12  ;;  %v284_v18 = vld [vmem:[%s5875_s1 + $0x28] sm:$0xff]  ;;  %v301_v19 = vld [vmem:[%s5875_s1 + $0xb0] sm:$0xff]  ;;  %v302_v20 = vld [vmem:[%s5875_s1 + $0xb8] sm:$0xff] }
  0x12   : > { %3353 = vmatprep.subr.msk.bf16.mxu0 %vm3571_vm1, %v3589_v9  ;;  %s3617_s16 = scalar_lea.vmem %s5874_s0, %s3603_s8  ;;  %v3641_v21 = vpack.c.bf16 %v284_v18, %v283_v17  ;;  %v3643_v22 = vpack.c.bf16 %v302_v20, %v301_v19  ;;  %v285_v23 = vld [vmem:[%s5875_s1 + $0x30] sm:$0xff]  ;;  %v286_v24 = vld [vmem:[%s5875_s1 + $0x38] sm:$0xff]  ;;  %v303_v25 = vld [vmem:[%s5875_s1 + $0xc0] sm:$0xff]  ;;  %s4869_s18 = scalar_lea.vmem %s5877_s3, %s3603_s8 }
  0x13   : > { %v215_v16 = vld [vmem:[%s3617_s16] sm:$0xff]  ;;  %v304_v26 = vld [vmem:[%s5875_s1 + $0xc8] sm:$0xff]  ;;  %v3663_v27 = vpack.c.bf16 %v286_v24, %v285_v23  ;;  %v305_v31 = vld [vmem:[%s5875_s1 + $0xd0] sm:$0xff]  ;;  %s5467_s21 = scalar_lea.vmem %s5878_s4, %s3603_s8 }
  0x14   : > { %3217 = vmatprep.mubr.msk.f32.mxu0 %vm5934_vm0, %v215_v16  ;;  %v3665_v28 = vpack.c.bf16 %v304_v26, %v303_v25  ;;  %v287_v29 = vld [vmem:[%s5875_s1 + $0x40] sm:$0xff]  ;;  %v288_v30 = vld [vmem:[%s5875_s1 + $0x48] sm:$0xff]  ;;  %v306_v32 = vld [vmem:[%s5875_s1 + $0xd8] sm:$0xff] }
  0x15   : > { %v3685_v33 = vpack.c.bf16 %v288_v30, %v287_v29  ;;  %v3687_v34 = vpack.c.bf16 %v306_v32, %v305_v31  ;;  %v289_v35 = vld [vmem:[%s5875_s1 + $0x50] sm:$0xff]  ;;  %v290_v36 = vld [vmem:[%s5875_s1 + $0x58] sm:$0xff]  ;;  %v307_v37 = vld [vmem:[%s5875_s1 + $0xe0] sm:$0xff] }
  0x16   : > { %v308_v38 = vld [vmem:[%s5875_s1 + $0xe8] sm:$0xff]  ;;  %v3707_v39 = vpack.c.bf16 %v290_v36, %v289_v35  ;;  %v291_v41 = vld [vmem:[%s5875_s1 + $0x60] sm:$0xff]  ;;  %v309_v43 = vld [vmem:[%s5875_s1 + $0xf0] sm:$0xff] }
  0x17   : > { %v3709_v40 = vpack.c.bf16 %v308_v38, %v307_v37  ;;  %v292_v42 = vld [vmem:[%s5875_s1 + $0x68] sm:$0xff]  ;;  %v310_v44 = vld [vmem:[%s5875_s1 + $0xf8] sm:$0xff]  ;;  %v293_v47 = vld [vmem:[%s5875_s1 + $0x70] sm:$0xff] }
  0x18   : > { %v3729_v45 = vpack.c.bf16 %v292_v42, %v291_v41  ;;  %v3731_v46 = vpack.c.bf16 %v310_v44, %v309_v43  ;;  %v294_v48 = vld [vmem:[%s5875_s1 + $0x78] sm:$0xff]  ;;  %v216_v50 = vld [vmem:[%s3617_s16 + $0x8] sm:$0xff]  ;;  %v217_v51 = vld [vmem:[%s3617_s16 + $0x10] sm:$0xff]  ;;  %v5883_v43 = vlaneseq }
  0x19   : > { %3356 = vmatpush3.bf16.xpose.msk.msra.mxu0 %vm3571_vm1, %v3611_v14  ;;  %v3745_v49 = vpack.c.bf16 %v294_v48, %v293_v47  ;;  %v218_v52 = vld [vmem:[%s3617_s16 + $0x18] sm:$0xff]  ;;  %v219_v53 = vld [vmem:[%s3617_s16 + $0x20] sm:$0xff]  ;;  %v220_v54 = vld [vmem:[%s3617_s16 + $0x28] sm:$0xff] }
  0x1a   : > { %3359 = vmatprep.subr.msk.bf16.mxu0 %vm3571_vm1, %v3619_v15  ;;  %v221_v55 = vld [vmem:[%s3617_s16 + $0x30] sm:$0xff]  ;;  %v222_v56 = vld [vmem:[%s3617_s16 + $0x38] sm:$0xff]  ;;  %v223_v57 = vld [vmem:[%s3617_s16 + $0x40] sm:$0xff]  ;;  %v1180_v47 = vshrl.u32 %v5883_v43, 7 }
  0x1b   : > { %v224_v58 = vld [vmem:[%s3617_s16 + $0x48] sm:$0xff]  ;;  %v225_v59 = vld [vmem:[%s3617_s16 + $0x50] sm:$0xff]  ;;  %v226_v60 = vld [vmem:[%s3617_s16 + $0x58] sm:$0xff] }
  0x1c   : > { %v227_v61 = vld [vmem:[%s3617_s16 + $0x60] sm:$0xff]  ;;  %v228_v62 = vld [vmem:[%s3617_s16 + $0x68] sm:$0xff]  ;;  %v229_v63 = vld [vmem:[%s3617_s16 + $0x70] sm:$0xff]  ;;  %v1181_v48 = vsub.s32 0, %v1180_v47 }
  0x1d   : > { %v230_v0 = vld [vmem:[%s3617_s16 + $0x78] sm:$0xff]  ;;  %v231_v1 = vld [vmem:[%s3617_s16 + $0x80] sm:$0xff]  ;;  %v232_v2 = vld [vmem:[%s3617_s16 + $0x88] sm:$0xff] }
  0x1e   : > { %v233_v4 = vld [vmem:[%s3617_s16 + $0x90] sm:$0xff]  ;;  %v234_v5 = vld [vmem:[%s3617_s16 + $0x98] sm:$0xff]  ;;  %v235_v6 = vld [vmem:[%s3617_s16 + $0xa0] sm:$0xff] }
  0x1f   : > { %v236_v8 = vld [vmem:[%s3617_s16 + $0xa8] sm:$0xff]  ;;  %v237_v10 = vld [vmem:[%s3617_s16 + $0xb0] sm:$0xff]  ;;  %v238_v11 = vld [vmem:[%s3617_s16 + $0xb8] sm:$0xff] }
  0x20   : > { %v239_v12 = vld [vmem:[%s3617_s16 + $0xc0] sm:$0xff]  ;;  %v240_v13 = vld [vmem:[%s3617_s16 + $0xc8] sm:$0xff]  ;;  %v242_v17 = vld [vmem:[%s3617_s16 + $0xd8] sm:$0xff] }
  0x21   : > { %3362 = vmatpush3.bf16.xpose.msk.msra.mxu0 %vm3571_vm1, %v3641_v21  ;;  %v243_v18 = vld [vmem:[%s3617_s16 + $0xe0] sm:$0xff]  ;;  %v244_v19 = vld [vmem:[%s3617_s16 + $0xe8] sm:$0xff]  ;;  %v245_v20 = vld [vmem:[%s3617_s16 + $0xf0] sm:$0xff] }
  0x22   : > { %3365 = vmatprep.subr.msk.bf16.mxu0 %vm3571_vm1, %v3643_v22  ;;  %v246_v23 = vld [vmem:[%s3617_s16 + $0xf8] sm:$0xff]  ;;  %v247_v24 = vld [vmem:[%s3617_s16 + $0x100] sm:$0xff]  ;;  %v248_v25 = vld [vmem:[%s3617_s16 + $0x108] sm:$0xff] }
  0x23   : > { %v249_v26 = vld [vmem:[%s3617_s16 + $0x110] sm:$0xff]  ;;  %v250_v29 = vld [vmem:[%s3617_s16 + $0x118] sm:$0xff]  ;;  %v251_v30 = vld [vmem:[%s3617_s16 + $0x120] sm:$0xff] }
  0x24   : > { %v252_v31 = vld [vmem:[%s3617_s16 + $0x128] sm:$0xff]  ;;  %v253_v32 = vld [vmem:[%s3617_s16 + $0x130] sm:$0xff]  ;;  %v254_v35 = vld [vmem:[%s3617_s16 + $0x138] sm:$0xff] }
  0x25   : > { %v255_v36 = vld [vmem:[%s3617_s16 + $0x140] sm:$0xff]  ;;  %v256_v37 = vld [vmem:[%s3617_s16 + $0x148] sm:$0xff]  ;;  %v257_v38 = vld [vmem:[%s3617_s16 + $0x150] sm:$0xff] }
  0x26   : > { %v258_v41 = vld [vmem:[%s3617_s16 + $0x158] sm:$0xff]  ;;  %v259_v42 = vld [vmem:[%s3617_s16 + $0x160] sm:$0xff]  ;;  %v260_v44 = vld [vmem:[%s3617_s16 + $0x168] sm:$0xff] }
  0x29   : > { %3368 = vmatpush3.bf16.xpose.msk.msra.mxu0 %vm3571_vm1, %v3663_v27 }
  0x2a   : > { %3371 = vmatprep.subr.msk.bf16.mxu0 %vm3571_vm1, %v3665_v28 }
  0x31   : > { %3374 = vmatpush3.bf16.xpose.msk.msra.mxu0 %vm3571_vm1, %v3685_v33 }
  0x32   : > { %3377 = vmatprep.subr.msk.bf16.mxu0 %vm3571_vm1, %v3687_v34 }
  0x39   : > { %3380 = vmatpush3.bf16.xpose.msk.msra.mxu0 %vm3571_vm1, %v3707_v39 }
  0x3a   : > { %3383 = vmatprep.subr.msk.bf16.mxu0 %vm3571_vm1, %v3709_v40 }
  0x41   : > { %3386 = vmatpush3.bf16.xpose.msk.msra.mxu0 %vm3571_vm1, %v3729_v45 }
  0x42   : > { %3389 = vmatprep.subr.msk.bf16.mxu0 %vm3571_vm1, %v3731_v46 }
  0x49   : > { %3392 = vmatpush3.bf16.xpose.msk.msra.mxu0 %vm3571_vm1, %v3745_v49 }
  0x50   : > { %3218 = vmatmul.mubr.msk.f32.vlgmr.msra.gmra.mrb[0].mxu0 %vm5934_vm0, %v215_v16  ;;  %v241_v16 = vld [vmem:[%s3617_s16 + $0xd0] sm:$0xff] }
  0x51   : > { %3219 = vmatprep.mubr.msk.f32.mxu0 %vm5934_vm0, %v216_v50 }
  0x54   : > { %3220 = vmatmul.mubr.msk.f32.gmra.mrb[2].mxu0 %vm5934_vm0, %v216_v50  ;;  %v261_v50 = vld [vmem:[%s3617_s16 + $0x170] sm:$0xff] }
  0x55   : > { %3221 = vmatprep.mubr.msk.f32.mxu0 %vm5934_vm0, %v217_v51 }
  0x58   : > { %3222 = vmatmul.mubr.msk.f32.gmra.mrb[4].mxu0 %vm5934_vm0, %v217_v51  ;;  %v311_v51 = vld [vmem:[%s5876_s2] sm:$0x3] }
  0x59   : > { %3223 = vmatprep.mubr.msk.f32.mxu0 %vm5934_vm0, %v218_v52 }
  0x5c   : > { %3224 = vmatmul.mubr.msk.f32.gmra.mrb[6].mxu0 %vm5934_vm0, %v218_v52  ;;  %v1185_v52 = vsub.s32 1, %v1180_v47 }
  0x5d   : > { %3225 = vmatprep.mubr.msk.f32.mxu0 %vm5934_vm0, %v219_v53 }
  0x60   : > { %3226 = vmatmul.mubr.msk.f32.gmra.mrb[8].mxu0 %vm5934_vm0, %v219_v53  ;;  %v3893_v53 = vrot.slane %v311_v51, %v1181_v48 }
  0x61   : > { %3227 = vmatprep.mubr.msk.f32.mxu0 %vm5934_vm0, %v220_v54 }
  0x64   : > { %3228 = vmatmul.mubr.msk.f32.gmra.mrb[10].mxu0 %vm5934_vm0, %v220_v54 }
  0x65   : > { %3229 = vmatprep.mubr.msk.f32.mxu0 %vm5934_vm0, %v221_v55 }
  0x68   : > { %3230 = vmatmul.mubr.msk.f32.gmra.mrb[12].mxu0 %vm5934_vm0, %v221_v55  ;;  %v3895_v55 = vrot.slane %v311_v51, %v1185_v52 }
  0x69   : > { %3231 = vmatprep.mubr.msk.f32.mxu0 %vm5934_vm0, %v222_v56 }
  0x6c   : > { %3232 = vmatmul.mubr.msk.f32.gmra.mrb[14].mxu0 %vm5934_vm0, %v222_v56 }
  0x6d   : > { %3233 = vmatprep.mubr.msk.f32.mxu0 %vm5934_vm0, %v223_v57 }
  0x70   : > { %3234 = vmatmul.mubr.msk.f32.gmra.mrb[16].mxu0 %vm5934_vm0, %v223_v57 }
  0x71   : > { %3235 = vmatprep.mubr.msk.f32.mxu0 %vm5934_vm0, %v224_v58 }
  0x74   : > { %3236 = vmatmul.mubr.msk.f32.gmra.mrb[18].mxu0 %vm5934_vm0, %v224_v58 }
  0x75   : > { %3237 = vmatprep.mubr.msk.f32.mxu0 %vm5934_vm0, %v225_v59 }
  0x78   : > { %3238 = vmatmul.mubr.msk.f32.gmra.mrb[20].mxu0 %vm5934_vm0, %v225_v59 }
  0x79   : > { %3239 = vmatprep.mubr.msk.f32.mxu0 %vm5934_vm0, %v226_v60 }
  0x7c   : > { %3240 = vmatmul.mubr.msk.f32.gmra.mrb[22].mxu0 %vm5934_vm0, %v226_v60  ;;  %v262_v60 = vld [vmem:[%s3617_s16 + $0x178] sm:$0xff] }
  0x7d   : > { %3241 = vmatprep.mubr.msk.f32.mxu0 %vm5934_vm0, %v227_v61 }
  0x80   : > { %3242 = vmatmul.mubr.msk.f32.gmra.mrb[24].mxu0 %vm5934_vm0, %v227_v61 }
  0x81   : > { %3243 = vmatprep.mubr.msk.f32.mxu0 %vm5934_vm0, %v228_v62 }
  0x84   : > { %3244 = vmatmul.mubr.msk.f32.gmra.mrb[26].mxu0 %vm5934_vm0, %v228_v62 }
  0x85   : > { %3245 = vmatprep.mubr.msk.f32.mxu0 %vm5934_vm0, %v229_v63 }
  0x88   : > { %3246 = vmatmul.mubr.msk.f32.gmra.mrb[28].mxu0 %vm5934_vm0, %v229_v63 }
  0x89   : > { %3247 = vmatprep.mubr.msk.f32.mxu0 %vm5934_vm0, %v230_v0 }
  0x8c   : > { %3248 = vmatmul.mubr.msk.f32.gmra.mrb[30].mxu0 %vm5934_vm0, %v230_v0 }
  0x8d   : > { %3249 = vmatprep.mubr.msk.f32.mxu0 %vm5934_vm0, %v231_v1 }
  0x90   : > { %3250 = vmatmul.mubr.msk.f32.gmra.mrb[32].mxu0 %vm5934_vm0, %v231_v1 }
  0x91   : > { %3251 = vmatprep.mubr.msk.f32.mxu0 %vm5934_vm0, %v232_v2 }
  0x94   : > { %3252 = vmatmul.mubr.msk.f32.gmra.mrb[34].mxu0 %vm5934_vm0, %v232_v2 }
  0x95   : > { %3253 = vmatprep.mubr.msk.f32.mxu0 %vm5934_vm0, %v233_v4 }
  0x98   : > { %3254 = vmatmul.mubr.msk.f32.gmra.mrb[36].mxu0 %vm5934_vm0, %v233_v4 }
  0x99   : > { %3255 = vmatprep.mubr.msk.f32.mxu0 %vm5934_vm0, %v234_v5 }
  0x9c   : > { %3256 = vmatmul.mubr.msk.f32.gmra.mrb[38].mxu0 %vm5934_vm0, %v234_v5 }
  0x9d   : > { %3257 = vmatprep.mubr.msk.f32.mxu0 %vm5934_vm0, %v235_v6 }
  0xa0   : > { %3258 = vmatmul.mubr.msk.f32.gmra.mrb[40].mxu0 %vm5934_vm0, %v235_v6 }
  0xa1   : > { %3259 = vmatprep.mubr.msk.f32.mxu0 %vm5934_vm0, %v236_v8 }
  0xa4   : > { %3260 = vmatmul.mubr.msk.f32.gmra.mrb[42].mxu0 %vm5934_vm0, %v236_v8 }
  0xa5   : > { %3261 = vmatprep.mubr.msk.f32.mxu0 %vm5934_vm0, %v237_v10 }
  0xa8   : > { %3262 = vmatmul.mubr.msk.f32.gmra.mrb[44].mxu0 %vm5934_vm0, %v237_v10 }
  0xa9   : > { %3263 = vmatprep.mubr.msk.f32.mxu0 %vm5934_vm0, %v238_v11 }
  0xac   : > { %3264 = vmatmul.mubr.msk.f32.gmra.mrb[46].mxu0 %vm5934_vm0, %v238_v11 }
  0xad   : > { %3265 = vmatprep.mubr.msk.f32.mxu0 %vm5934_vm0, %v239_v12 }
  0xb0   : > { %3266 = vmatmul.mubr.msk.f32.gmra.mrb[48].mxu0 %vm5934_vm0, %v239_v12 }
  0xb1   : > { %3267 = vmatprep.mubr.msk.f32.mxu0 %vm5934_vm0, %v240_v13 }
  0xb4   : > { %3268 = vmatmul.mubr.msk.f32.gmra.mrb[50].mxu0 %vm5934_vm0, %v240_v13 }
  0xb5   : > { %3269 = vmatprep.mubr.msk.f32.mxu0 %vm5934_vm0, %v241_v16 }
  0xb8   : > { %3270 = vmatmul.mubr.msk.f32.gmra.mrb[52].mxu0 %vm5934_vm0, %v241_v16  ;;  %v263_v16 = vld [vmem:[%s3617_s16 + $0x180] sm:$0xff] }
  0xb9   : > { %3271 = vmatprep.mubr.msk.f32.mxu0 %vm5934_vm0, %v242_v17 }
  0xbc   : > { %3272 = vmatmul.mubr.msk.f32.gmra.mrb[54].mxu0 %vm5934_vm0, %v242_v17 }
  0xbd   : > { %3273 = vmatprep.mubr.msk.f32.mxu0 %vm5934_vm0, %v243_v18 }
  0xc0   : > { %3274 = vmatmul.mubr.msk.f32.gmra.mrb[56].mxu0 %vm5934_vm0, %v243_v18 }
  0xc1   : > { %3275 = vmatprep.mubr.msk.f32.mxu0 %vm5934_vm0, %v244_v19 }
  0xc4   : > { %3276 = vmatmul.mubr.msk.f32.gmra.mrb[58].mxu0 %vm5934_vm0, %v244_v19 }
  0xc5   : > { %3277 = vmatprep.mubr.msk.f32.mxu0 %vm5934_vm0, %v245_v20 }
  0xc8   : > { %3278 = vmatmul.mubr.msk.f32.gmra.mrb[60].mxu0 %vm5934_vm0, %v245_v20 }
  0xc9   : > { %3279 = vmatprep.mubr.msk.f32.mxu0 %vm5934_vm0, %v246_v23 }
  0xcc   : > { %3280 = vmatmul.mubr.msk.f32.gmra.mrb[62].mxu0 %vm5934_vm0, %v246_v23 }
  0xcd   : > { %3281 = vmatprep.mubr.msk.f32.mxu0 %vm5934_vm0, %v247_v24 }
  0xd0   : > { %3282 = vmatmul.mubr.msk.f32.gmra.mrb[64].mxu0 %vm5934_vm0, %v247_v24 }
  0xd1   : > { %3283 = vmatprep.mubr.msk.f32.mxu0 %vm5934_vm0, %v248_v25 }
  0xd4   : > { %3284 = vmatmul.mubr.msk.f32.gmra.mrb[66].mxu0 %vm5934_vm0, %v248_v25 }
  0xd5   : > { %3285 = vmatprep.mubr.msk.f32.mxu0 %vm5934_vm0, %v249_v26 }
  0xd8   : > { %3286 = vmatmul.mubr.msk.f32.gmra.mrb[68].mxu0 %vm5934_vm0, %v249_v26 }
  0xd9   : > { %3287 = vmatprep.mubr.msk.f32.mxu0 %vm5934_vm0, %v250_v29 }
  0xdc   : > { %3288 = vmatmul.mubr.msk.f32.gmra.mrb[70].mxu0 %vm5934_vm0, %v250_v29 }
  0xdd   : > { %3289 = vmatprep.mubr.msk.f32.mxu0 %vm5934_vm0, %v251_v30 }
  0xe0   : > { %3290 = vmatmul.mubr.msk.f32.gmra.mrb[72].mxu0 %vm5934_vm0, %v251_v30 }
  0xe1   : > { %3291 = vmatprep.mubr.msk.f32.mxu0 %vm5934_vm0, %v252_v31 }
  0xe4   : > { %3292 = vmatmul.mubr.msk.f32.gmra.mrb[74].mxu0 %vm5934_vm0, %v252_v31 }
  0xe5   : > { %3293 = vmatprep.mubr.msk.f32.mxu0 %vm5934_vm0, %v253_v32 }
  0xe8   : > { %3294 = vmatmul.mubr.msk.f32.gmra.mrb[76].mxu0 %vm5934_vm0, %v253_v32 }
  0xe9   : > { %3295 = vmatprep.mubr.msk.f32.mxu0 %vm5934_vm0, %v254_v35 }
  0xec   : > { %3296 = vmatmul.mubr.msk.f32.gmra.mrb[78].mxu0 %vm5934_vm0, %v254_v35 }
  0xed   : > { %3297 = vmatprep.mubr.msk.f32.mxu0 %vm5934_vm0, %v255_v36 }
  0xf0   : > { %3298 = vmatmul.mubr.msk.f32.gmra.mrb[80].mxu0 %vm5934_vm0, %v255_v36 }
  0xf1   : > { %3299 = vmatprep.mubr.msk.f32.mxu0 %vm5934_vm0, %v256_v37 }
  0xf4   : > { %3300 = vmatmul.mubr.msk.f32.gmra.mrb[82].mxu0 %vm5934_vm0, %v256_v37  ;;  %v264_v37 = vld [vmem:[%s3617_s16 + $0x188] sm:$0xff] }
  0xf5   : > { %3301 = vmatprep.mubr.msk.f32.mxu0 %vm5934_vm0, %v257_v38 }
  0xf8   : > { %3302 = vmatmul.mubr.msk.f32.gmra.mrb[84].mxu0 %vm5934_vm0, %v257_v38 }
  0xf9   : > { %3303 = vmatprep.mubr.msk.f32.mxu0 %vm5934_vm0, %v258_v41 }
  0xfc   : > { %3304 = vmatmul.mubr.msk.f32.gmra.mrb[86].mxu0 %vm5934_vm0, %v258_v41 }
  0xfd   : > { %3305 = vmatprep.mubr.msk.f32.mxu0 %vm5934_vm0, %v259_v42 }
 0x100   : > { %3306 = vmatmul.mubr.msk.f32.gmra.mrb[88].mxu0 %vm5934_vm0, %v259_v42 }
 0x101   : > { %3307 = vmatprep.mubr.msk.f32.mxu0 %vm5934_vm0, %v260_v44 }
 0x104   : > { %3308 = vmatmul.mubr.msk.f32.gmra.mrb[90].mxu0 %vm5934_vm0, %v260_v44 }
 0x105   : > { %3309 = vmatprep.mubr.msk.f32.mxu0 %vm5934_vm0, %v261_v50 }
 0x108   : > { %3310 = vmatmul.mubr.msk.f32.gmra.mrb[92].mxu0 %vm5934_vm0, %v261_v50 }
 0x109   : > { %3311 = vmatprep.mubr.msk.f32.mxu0 %vm5934_vm0, %v262_v60 }
 0x10c   : > { %3312 = vmatmul.mubr.msk.f32.gmra.mrb[94].mxu0 %vm5934_vm0, %v262_v60 }
 0x10d   : > { %3313 = vmatprep.mubr.msk.f32.mxu0 %vm5934_vm0, %v263_v16 }
 0x110   : > { %3314 = vmatmul.mubr.msk.f32.gmra.mrb[96].mxu0 %vm5934_vm0, %v263_v16 }
 0x111   : > { %3315 = vmatprep.mubr.msk.f32.mxu0 %vm5934_vm0, %v264_v37 }
 0x114   : > { %3316 = vmatmul.mubr.msk.f32.gmra.mrb[98].mxu0 %vm5934_vm0, %v264_v37 }
 0x123   : > { %v667_v54 = vpop.f32.mrb[0].mxu0 }
 0x124   : > { %v1050_v56 = vmul.f32 2.0, %v667_v54  ;;  %v669_v57 = vpop.f32.mrb[1].mxu0 }
 0x125   : > { %v1051_v58 = vmul.f32 2.0, %v669_v57 }
 0x126   : > { %v3898_v59 = vsub.f32 %v3893_v53, %v1050_v56 }
 0x127   : > { %v3902_v61 = vsub.f32 %v3895_v55, %v1051_v58  ;;  %v673_v62 = vpop.f32.mrb[2].mxu0  ;;  %v265_v58 = vld [vmem:[%s3617_s16 + $0x190] sm:$0xff] }
 0x128   : > { %v1052_v63 = vmul.f32 2.0, %v673_v62  ;;  %v675_v0 = vpop.f32.mrb[3].mxu0  ;;  %3317 = vmatprep.mubr.msk.f32.mxu0 %vm5934_vm0, %v265_v58 }
 0x129   : > { %v1053_v1 = vmul.f32 2.0, %v675_v0  ;;  %vm1320_vm2 = vcmp.le.f32.partialorder %v3898_v59, %v3902_v61  ;;  %3318 = vmatmul.mubr.msk.f32.gmra.mrb[100].mxu0 %vm5934_vm0, %v265_v58 }
 0x12a   : > { %v3909_v2 = vsub.f32 %v3893_v53, %v1052_v63  ;;  %v1321_v4 = vsel %vm1320_vm2, %v3898_v59, %v3902_v61 }
 0x12b   : > { %v3917_v5 = vsub.f32 %v3895_v55, %v1053_v1  ;;  %1323 = vmin.index.xlane.f32.xlu0 %v1321_v4  ;;  %v679_v6 = vpop.f32.mrb[4].mxu0 }
 0x12c   : > { %v1054_v8 = vmul.f32 2.0, %v679_v6  ;;  %v681_v10 = vpop.f32.mrb[5].mxu0 }
 0x12d   : > { %v1055_v11 = vmul.f32 2.0, %v681_v10  ;;  %vm1328_vm3 = vcmp.le.f32.partialorder %v3909_v2, %v3917_v5 }
 0x12e   : > { %v3922_v12 = vsub.f32 %v3893_v53, %v1054_v8  ;;  %v1329_v13 = vsel %vm1328_vm3, %v3909_v2, %v3917_v5 }
 0x12f   : > { %v3931_v17 = vsub.f32 %v3895_v55, %v1055_v11  ;;  %1331 = vmin.index.xlane.f32.xlu1 %v1329_v13  ;;  %v685_v18 = vpop.f32.mrb[6].mxu0 }
 0x130   : > { %v1056_v19 = vmul.f32 2.0, %v685_v18  ;;  %v687_v20 = vpop.f32.mrb[7].mxu0 }
 0x131   : > { %v1057_v23 = vmul.f32 2.0, %v687_v20  ;;  %vm1336_vm4 = vcmp.le.f32.partialorder %v3922_v12, %v3931_v17  ;;  %v266_v20 = vld [vmem:[%s3617_s16 + $0x198] sm:$0xff] }
 0x132   : > { %v3938_v24 = vsub.f32 %v3893_v53, %v1056_v19  ;;  %v1337_v25 = vsel %vm1336_vm4, %v3922_v12, %v3931_v17  ;;  %3319 = vmatprep.mubr.msk.f32.mxu0 %vm5934_vm0, %v266_v20 }
 0x133   : > { %v3946_v26 = vsub.f32 %v3895_v55, %v1057_v23  ;;  %1339 = vmin.index.xlane.f32.xlu1 %v1337_v25  ;;  %v691_v29 = vpop.f32.mrb[8].mxu0  ;;  %3320 = vmatmul.mubr.msk.f32.gmra.mrb[102].mxu0 %vm5934_vm0, %v266_v20 }
 0x134   : > { %v1058_v30 = vmul.f32 2.0, %v691_v29  ;;  %v693_v31 = vpop.f32.mrb[9].mxu0 }
 0x135   : > { %v1059_v32 = vmul.f32 2.0, %v693_v31  ;;  %vm1344_vm5 = vcmp.le.f32.partialorder %v3938_v24, %v3946_v26 }
 0x136   : > { %v3951_v35 = vsub.f32 %v3893_v53, %v1058_v30  ;;  %v1345_v36 = vsel %vm1344_vm5, %v3938_v24, %v3946_v26 }
 0x137   : > { %v3960_v38 = vsub.f32 %v3895_v55, %v1059_v32  ;;  %1347 = vmin.index.xlane.f32.xlu0 %v1345_v36  ;;  %v697_v41 = vpop.f32.mrb[10].mxu0 }
 0x138   : > { %v1060_v42 = vmul.f32 2.0, %v697_v41  ;;  %v699_v44 = vpop.f32.mrb[11].mxu0 }
 0x139   : > { %v1061_v47 = vmul.f32 2.0, %v699_v44  ;;  %vm1352_vm6 = vcmp.le.f32.partialorder %v3951_v35, %v3960_v38 }
 0x13a   : > { %v3967_v48 = vsub.f32 %v3893_v53, %v1060_v42  ;;  %v1353_v50 = vsel %vm1352_vm6, %v3951_v35, %v3960_v38 }
 0x13b   : > { %v3975_v51 = vsub.f32 %v3895_v55, %v1061_v47  ;;  %1355 = vmin.index.xlane.f32.xlu1 %v1353_v50  ;;  %v703_v52 = vpop.f32.mrb[12].mxu0 }
 0x13c   : > { %v1062_v54 = vmul.f32 2.0, %v703_v52  ;;  %v705_v56 = vpop.f32.mrb[13].mxu0 }
 0x13d   : > { %v1063_v57 = vmul.f32 2.0, %v705_v56  ;;  %vm1360_vm7 = vcmp.le.f32.partialorder %v3967_v48, %v3975_v51 }
 0x13e   : > { %v3981_v60 = vsub.f32 %v3893_v53, %v1062_v54  ;;  %v1361_v62 = vsel %vm1360_vm7, %v3967_v48, %v3975_v51  ;;  %v267_v54 = vld [vmem:[%s3617_s16 + $0x1a0] sm:$0xff] }
 0x13f   : > { %v3990_v63 = vsub.f32 %v3895_v55, %v1063_v57  ;;  %1363 = vmin.index.xlane.f32.xlu1 %v1361_v62  ;;  %v709_v0 = vpop.f32.mrb[14].mxu0  ;;  %3321 = vmatprep.mubr.msk.f32.mxu0 %vm5934_vm0, %v267_v54 }
 0x140   : > { %v1064_v1 = vmul.f32 2.0, %v709_v0  ;;  %v711_v4 = vpop.f32.mrb[15].mxu0  ;;  %3322 = vmatmul.mubr.msk.f32.gmra.mrb[104].mxu0 %vm5934_vm0, %v267_v54 }
 0x141   : > { %v1065_v6 = vmul.f32 2.0, %v711_v4  ;;  %vm1368_vm8 = vcmp.le.f32.partialorder %v3981_v60, %v3990_v63 }
 0x142   : > { %v3996_v8 = vsub.f32 %v3893_v53, %v1064_v1  ;;  %v1369_v10 = vsel %vm1368_vm8, %v3981_v60, %v3990_v63 }
 0x143   : > { %v4004_v11 = vsub.f32 %v3895_v55, %v1065_v6  ;;  %1371 = vmin.index.xlane.f32.xlu0 %v1369_v10  ;;  %v715_v13 = vpop.f32.mrb[16].mxu0 }
 0x144   : > { %v1066_v16 = vmul.f32 2.0, %v715_v13  ;;  %v717_v18 = vpop.f32.mrb[17].mxu0 }
 0x145   : > { %v1067_v19 = vmul.f32 2.0, %v717_v18  ;;  %vm5880_vm9 = vcmp.le.f32.partialorder %v3996_v8, %v4004_v11 }
 0x146   : > { %v4010_v23 = vsub.f32 %v3893_v53, %v1066_v16  ;;  %v1377_v25 = vsel %vm5880_vm9, %v3996_v8, %v4004_v11 }
 0x147   : > { %v4019_v29 = vsub.f32 %v3895_v55, %v1067_v19  ;;  %1379 = vmin.index.xlane.f32.xlu1 %v1377_v25  ;;  %v721_v30 = vpop.f32.mrb[18].mxu0  ;;  %v268_v25 = vld [vmem:[%s3617_s16 + $0x1a8] sm:$0xff] }
 0x148   : > { %v1068_v31 = vmul.f32 2.0, %v721_v30  ;;  %v723_v32 = vpop.f32.mrb[19].mxu0  ;;  %3323 = vmatprep.mubr.msk.f32.mxu0 %vm5934_vm0, %v268_v25 }
 0x149   : > { %v1069_v36 = vmul.f32 2.0, %v723_v32  ;;  %vm1384_vm10 = vcmp.le.f32.partialorder %v4010_v23, %v4019_v29  ;;  %3324 = vmatmul.mubr.msk.f32.gmra.mrb[106].mxu0 %vm5934_vm0, %v268_v25 }
 0x14a   : > { %v4025_v37 = vsub.f32 %v3893_v53, %v1068_v31  ;;  %v1385_v41 = vsel %vm1384_vm10, %v4010_v23, %v4019_v29 }
 0x14b   : > { %v4033_v42 = vsub.f32 %v3895_v55, %v1069_v36  ;;  %1387 = vmin.index.xlane.f32.xlu1 %v1385_v41  ;;  %v727_v44 = vpop.f32.mrb[20].mxu0 }
 0x14c   : > { %v1070_v47 = vmul.f32 2.0, %v727_v44  ;;  %v729_v50 = vpop.f32.mrb[21].mxu0 }
 0x14d   : > { %v1071_v52 = vmul.f32 2.0, %v729_v50  ;;  %vm5879_vm11 = vcmp.le.f32.partialorder %v4025_v37, %v4033_v42 }
 0x14e   : > { %v4039_v56 = vsub.f32 %v3893_v53, %v1070_v47  ;;  %v1393_v57 = vsel %vm5879_vm11, %v4025_v37, %v4033_v42 }
 0x14f   : > { %v4048_v58 = vsub.f32 %v3895_v55, %v1071_v52  ;;  %1395 = vmin.index.xlane.f32.xlu1 %v1393_v57  ;;  %v733_v62 = vpop.f32.mrb[22].mxu0 }
 0x150   : > { %v1072_v0 = vmul.f32 2.0, %v733_v62  ;;  %v735_v1 = vpop.f32.mrb[23].mxu0 }
 0x151   : > { %v1073_v4 = vmul.f32 2.0, %v735_v1  ;;  %vm1400_vm12 = vcmp.le.f32.partialorder %v4039_v56, %v4048_v58 }
 0x152   : > { %v4054_v6 = vsub.f32 %v3893_v53, %v1072_v0  ;;  %v1401_v10 = vsel %vm1400_vm12, %v4039_v56, %v4048_v58 }
 0x153   : > { %v4062_v13 = vsub.f32 %v3895_v55, %v1073_v4  ;;  %1403 = vmin.index.xlane.f32.xlu0 %v1401_v10  ;;  %v739_v16 = vpop.f32.mrb[24].mxu0 }
 0x154   : > { %v1074_v18 = vmul.f32 2.0, %v739_v16  ;;  %v741_v19 = vpop.f32.mrb[25].mxu0 }
 0x155   : > { %v1075_v20 = vmul.f32 2.0, %v741_v19  ;;  %vm1408_vm13 = vcmp.le.f32.partialorder %v4054_v6, %v4062_v13 }
 0x156   : > { %v4068_v30 = vsub.f32 %v3893_v53, %v1074_v18  ;;  %v1409_v31 = vsel %vm1408_vm13, %v4054_v6, %v4062_v13 }
 0x157   : > { %v4077_v32 = vsub.f32 %v3895_v55, %v1075_v20  ;;  %1411 = vmin.index.xlane.f32.xlu0 %v1409_v31  ;;  %v745_v36 = vpop.f32.mrb[26].mxu0 }
 0x158   : > { %v1076_v41 = vmul.f32 2.0, %v745_v36  ;;  %v747_v44 = vpop.f32.mrb[27].mxu0 }
 0x159   : > { %v1077_v47 = vmul.f32 2.0, %v747_v44  ;;  %vm1416_vm14 = vcmp.le.f32.partialorder %v4068_v30, %v4077_v32 }
 0x15a   : > { %v4083_v50 = vsub.f32 %v3893_v53, %v1076_v41  ;;  %v1417_v52 = vsel %vm1416_vm14, %v4068_v30, %v4077_v32 }
 0x15b   : > { %v4091_v54 = vsub.f32 %v3895_v55, %v1077_v47  ;;  %1419 = vmin.index.xlane.f32.xlu0 %v1417_v52  ;;  %v751_v57 = vpop.f32.mrb[28].mxu0 }
 0x15c   : > { %v1078_v62 = vmul.f32 2.0, %v751_v57  ;;  %v753_v0 = vpop.f32.mrb[29].mxu0 }
 0x15d   : > { %v1079_v1 = vmul.f32 2.0, %v753_v0  ;;  %vm1424_vm15 = vcmp.le.f32.partialorder %v4083_v50, %v4091_v54 }
 0x15e   : > { %v4096_v4 = vsub.f32 %v3893_v53, %v1078_v62  ;;  %v1425_v10 = vsel %vm1424_vm15, %v4083_v50, %v4091_v54 }
 0x15f   : > { %v4104_v16 = vsub.f32 %v3895_v55, %v1079_v1  ;;  %1427 = vmin.index.xlane.f32.xlu0 %v1425_v10  ;;  %v757_v18 = vpop.f32.mrb[30].mxu0 }
 0x160   : > { %v1080_v19 = vmul.f32 2.0, %v757_v18  ;;  %v759_v20 = vpop.f32.mrb[31].mxu0 }
 0x161   : > { %v1081_v25 = vmul.f32 2.0, %v759_v20  ;;  %vm1432_vm1 = vcmp.le.f32.partialorder %v4096_v4, %v4104_v16 }
 0x162   : > { %v4109_v31 = vsub.f32 %v3893_v53, %v1080_v19  ;;  %v1433_v36 = vsel %vm1432_vm1, %v4096_v4, %v4104_v16 }
 0x163   : > { %v4117_v41 = vsub.f32 %v3895_v55, %v1081_v25  ;;  %1435 = vmin.index.xlane.f32.xlu0 %v1433_v36  ;;  %v763_v44 = vpop.f32.mrb[32].mxu0 }
 0x164   : > { %v1082_v47 = vmul.f32 2.0, %v763_v44  ;;  %v765_v52 = vpop.f32.mrb[33].mxu0 }
 0x165   : > { %v1083_v57 = vmul.f32 2.0, %v765_v52  ;;  %vm5881_vm11 = vcmp.le.f32.partialorder %v4109_v31, %v4117_v41 }
 0x166   : > { %v4122_v62 = vsub.f32 %v3893_v53, %v1082_v47  ;;  %v1441_v0 = vsel %vm5881_vm11, %v4109_v31, %v4117_v41 }
 0x167   : > { %v4130_v1 = vsub.f32 %v3895_v55, %v1083_v57  ;;  %1443 = vmin.index.xlane.f32.xlu0 %v1441_v0  ;;  %v769_v10 = vpop.f32.mrb[34].mxu0 }
 0x168   : > { %v1084_v18 = vmul.f32 2.0, %v769_v10  ;;  %v771_v19 = vpop.f32.mrb[35].mxu0 }
 0x169   : > { %v1085_v20 = vmul.f32 2.0, %v771_v19  ;;  %vm5882_vm9 = vcmp.le.f32.partialorder %v4122_v62, %v4130_v1 }
 0x16a   : > { %v4135_v25 = vsub.f32 %v3893_v53, %v1084_v18  ;;  %v1449_v36 = vsel %vm5882_vm9, %v4122_v62, %v4130_v1 }
 0x16b   : > { %v4143_v44 = vsub.f32 %v3895_v55, %v1085_v20  ;;  %1451 = vmin.index.xlane.f32.xlu0 %v1449_v36  ;;  %v775_v47 = vpop.f32.mrb[36].mxu0 }
 0x16c   : > { %5977 = vst [vmem:[#allocation2_spill] sm:$0xff] %v4135_v25  ;;  %v1086_v52 = vmul.f32 2.0, %v775_v47  ;;  %v777_v57 = vpop.f32.mrb[37].mxu0 }
 0x16d   : > { %5978 = vst [vmem:[#allocation3_spill] sm:$0xff] %v4143_v44  ;;  %v1087_v0 = vmul.f32 2.0, %v777_v57  ;;  %vm5885_vm11 = vcmp.le.f32.partialorder %v4135_v25, %v4143_v44 }
 0x16e   : > { %v4148_v10 = vsub.f32 %v3893_v53, %v1086_v52  ;;  %v1457_v18 = vsel %vm5885_vm11, %v4135_v25, %v4143_v44  ;;  %v269_v25 = vld [vmem:[%s3617_s16 + $0x1b0] sm:$0xff] }
 0x16f   : > { %v4156_v19 = vsub.f32 %v3895_v55, %v1087_v0  ;;  %1459 = vmin.index.xlane.f32.xlu0 %v1457_v18  ;;  %v781_v20 = vpop.f32.mrb[38].mxu0  ;;  %3325 = vmatprep.mubr.msk.f32.mxu0 %vm5934_vm0, %v269_v25 }
 0x170   : > { %5979 = vst [vmem:[#allocation4_spill] sm:$0xff] %v4148_v10  ;;  %v1088_v36 = vmul.f32 2.0, %v781_v20  ;;  %v783_v47 = vpop.f32.mrb[39].mxu0  ;;  %3326 = vmatmul.mubr.msk.f32.gmra.mrb[108].mxu0 %vm5934_vm0, %v269_v25 }
 0x171   : > { %5980 = vst [vmem:[#allocation5_spill] sm:$0xff] %v4156_v19  ;;  %v1089_v57 = vmul.f32 2.0, %v783_v47  ;;  %vm5889_vm9 = vcmp.le.f32.partialorder %v4148_v10, %v4156_v19 }
 0x172   : > { %v4161_v52 = vsub.f32 %v3893_v53, %v1088_v36  ;;  %v1465_v43 = vsel %vm5889_vm9, %v4148_v10, %v4156_v19 }
 0x173   : > { %v4169_v0 = vsub.f32 %v3895_v55, %v1089_v57  ;;  %1467 = vmin.index.xlane.f32.xlu0 %v1465_v43  ;;  %v787_v18 = vpop.f32.mrb[40].mxu0 }
 0x174   : > { %v1090_v20 = vmul.f32 2.0, %v787_v18  ;;  %v789_v44 = vpop.f32.mrb[41].mxu0 }
 0x175   : > { %5981 = vst [vmem:[#allocation6_spill] sm:$0xff] %v4169_v0  ;;  %v1091_v47 = vmul.f32 2.0, %v789_v44  ;;  %vm5891_vm11 = vcmp.le.f32.partialorder %v4161_v52, %v4169_v0 }
 0x176   : > { %v4175_v36 = vsub.f32 %v3893_v53, %v1090_v20  ;;  %v1473_v19 = vsel %vm5891_vm11, %v4161_v52, %v4169_v0 }
 0x177   : > { %v4184_v43 = vsub.f32 %v3895_v55, %v1091_v47  ;;  %1475 = vmin.index.xlane.f32.xlu0 %v1473_v19  ;;  %v793_v44 = vpop.f32.mrb[42].mxu0 }
 0x178   : > { %5982 = vst [vmem:[#allocation7_spill] sm:$0xff] %v4175_v36  ;;  %v1092_v57 = vmul.f32 2.0, %v793_v44  ;;  %v795_v18 = vpop.f32.mrb[43].mxu0 }
 0x179   : > { %5983 = vst [vmem:[#allocation8_spill] sm:$0xff] %v4184_v43  ;;  %v1093_v10 = vmul.f32 2.0, %v795_v18  ;;  %vm5894_vm9 = vcmp.le.f32.partialorder %v4175_v36, %v4184_v43 }
 0x17a   : > { %v4190_v20 = vsub.f32 %v3893_v53, %v1092_v57  ;;  %v1481_v47 = vsel %vm5894_vm9, %v4175_v36, %v4184_v43 }
 0x17b   : > { %v4198_v19 = vsub.f32 %v3895_v55, %v1093_v10  ;;  %1483 = vmin.index.xlane.f32.xlu0 %v1481_v47  ;;  %v799_v25 = vpop.f32.mrb[44].mxu0 }
 0x17c   : > { %5984 = vst [vmem:[#allocation9_spill] sm:$0xff] %v4190_v20  ;;  %v1094_v44 = vmul.f32 2.0, %v799_v25  ;;  %v801_v0 = vpop.f32.mrb[45].mxu0 }
 0x17d   : > { %5985 = vst [vmem:[#allocation10_spill] sm:$0xff] %v4198_v19  ;;  %v1095_v18 = vmul.f32 2.0, %v801_v0  ;;  %vm5897_vm11 = vcmp.le.f32.partialorder %v4190_v20, %v4198_v19 }
 0x17e   : > { %v4203_v57 = vsub.f32 %v3893_v53, %v1094_v44  ;;  %v1489_v43 = vsel %vm5897_vm11, %v4190_v20, %v4198_v19 }
 0x17f   : > { %v4211_v10 = vsub.f32 %v3895_v55, %v1095_v18  ;;  %1491 = vmin.index.xlane.f32.xlu0 %v1489_v43  ;;  %v805_v47 = vpop.f32.mrb[46].mxu0 }
 0x180   : > { %5986 = vst [vmem:[#allocation11_spill] sm:$0xff] %v4203_v57  ;;  %v1096_v25 = vmul.f32 2.0, %v805_v47  ;;  %v807_v36 = vpop.f32.mrb[47].mxu0 }
 0x181   : > { %5987 = vst [vmem:[#allocation12_spill] sm:$0xff] %v4211_v10  ;;  %v1097_v0 = vmul.f32 2.0, %v807_v36  ;;  %vm5900_vm9 = vcmp.le.f32.partialorder %v4203_v57, %v4211_v10 }
 0x182   : > { %v4216_v44 = vsub.f32 %v3893_v53, %v1096_v25  ;;  %v1497_v19 = vsel %vm5900_vm9, %v4203_v57, %v4211_v10 }
 0x183   : > { %v4224_v18 = vsub.f32 %v3895_v55, %v1097_v0  ;;  %1499 = vmin.index.xlane.f32.xlu0 %v1497_v19  ;;  %v811_v43 = vpop.f32.mrb[48].mxu0 }
 0x184   : > { %5988 = vst [vmem:[#allocation13_spill] sm:$0xff] %v4216_v44  ;;  %v1098_v47 = vmul.f32 2.0, %v811_v43  ;;  %v813_v20 = vpop.f32.mrb[49].mxu0 }
 0x185   : > { %5989 = vst [vmem:[#allocation14_spill] sm:$0xff] %v4224_v18  ;;  %v1099_v36 = vmul.f32 2.0, %v813_v20  ;;  %vm5903_vm11 = vcmp.le.f32.partialorder %v4216_v44, %v4224_v18 }
 0x186   : > { %v4229_v25 = vsub.f32 %v3893_v53, %v1098_v47  ;;  %v1505_v10 = vsel %vm5903_vm11, %v4216_v44, %v4224_v18 }
 0x187   : > { %v4237_v0 = vsub.f32 %v3895_v55, %v1099_v36  ;;  %1507 = vmin.index.xlane.f32.xlu0 %v1505_v10  ;;  %v817_v19 = vpop.f32.mrb[50].mxu0 }
 0x188   : > { %5990 = vst [vmem:[#allocation15_spill] sm:$0xff] %v4229_v25  ;;  %v1100_v43 = vmul.f32 2.0, %v817_v19  ;;  %v819_v57 = vpop.f32.mrb[51].mxu0 }
 0x189   : > { %5991 = vst [vmem:[#allocation16_spill] sm:$0xff] %v4237_v0  ;;  %v1101_v20 = vmul.f32 2.0, %v819_v57  ;;  %vm5906_vm9 = vcmp.le.f32.partialorder %v4229_v25, %v4237_v0 }
 0x18a   : > { %v4242_v47 = vsub.f32 %v3893_v53, %v1100_v43  ;;  %v1513_v18 = vsel %vm5906_vm9, %v4229_v25, %v4237_v0 }
 0x18b   : > { %v4250_v36 = vsub.f32 %v3895_v55, %v1101_v20  ;;  %1515 = vmin.index.xlane.f32.xlu0 %v1513_v18  ;;  %v823_v10 = vpop.f32.mrb[52].mxu0 }
 0x18c   : > { %5992 = vst [vmem:[#allocation17_spill] sm:$0xff] %v4242_v47  ;;  %v1102_v19 = vmul.f32 2.0, %v823_v10  ;;  %v825_v44 = vpop.f32.mrb[53].mxu0 }
 0x18d   : > { %5993 = vst [vmem:[#allocation18_spill] sm:$0xff] %v4250_v36  ;;  %v1103_v57 = vmul.f32 2.0, %v825_v44  ;;  %vm5909_vm11 = vcmp.le.f32.partialorder %v4242_v47, %v4250_v36 }
 0x18e   : > { %v4255_v43 = vsub.f32 %v3893_v53, %v1102_v19  ;;  %v1521_v0 = vsel %vm5909_vm11, %v4242_v47, %v4250_v36 }
 0x18f   : > { %v4263_v20 = vsub.f32 %v3895_v55, %v1103_v57  ;;  %1523 = vmin.index.xlane.f32.xlu0 %v1521_v0  ;;  %v829_v18 = vpop.f32.mrb[54].mxu0  ;;  %v5911_v57 = vmov 0.0|0.0  }
 0x190   : > { %5994 = vst [vmem:[#allocation19_spill] sm:$0xff] %v4255_v43  ;;  %v1104_v10 = vmul.f32 2.0, %v829_v18  ;;  %v831_v25 = vpop.f32.mrb[55].mxu0  ;;  %3393 = vmatprep.subr.bf16.mxu1 %v5911_v57 }
 0x191   : > { %5995 = vst [vmem:[#allocation20_spill] sm:$0xff] %v4263_v20  ;;  %v1105_v44 = vmul.f32 2.0, %v831_v25  ;;  %vm5913_vm9 = vcmp.le.f32.partialorder %v4255_v43, %v4263_v20  ;;  %3395 = vmatpush1.bf16.msra.mxu1 %v3581_v7 }
 0x192   : > { %v4268_v19 = vsub.f32 %v3893_v53, %v1104_v10  ;;  %v1529_v36 = vsel %vm5913_vm9, %v4255_v43, %v4263_v20  ;;  %3396 = vmatprep.subr.bf16.mxu1 %v5911_v57  ;;  %v5998_v43 = vmov 0.0|0.0  }
 0x193   : > { %v4277_v0 = vsub.f32 %v3895_v55, %v1105_v44  ;;  %1531 = vmin.index.xlane.f32.xlu0 %v1529_v36  ;;  %v835_v25 = vpop.f32.mrb[56].mxu0  ;;  %v270_v44 = vld [vmem:[%s3617_s16 + $0x1b8] sm:$0xff] }
 0x194   : > { %v1106_v18 = vmul.f32 2.0, %v835_v25  ;;  %v837_v47 = vpop.f32.mrb[57].mxu0  ;;  %3327 = vmatprep.mubr.msk.f32.mxu0 %vm5934_vm0, %v270_v44 }
 0x195   : > { %5996 = vst [vmem:[#allocation21_spill] sm:$0xff] %v4277_v0  ;;  %v1107_v10 = vmul.f32 2.0, %v837_v47  ;;  %vm5916_vm11 = vcmp.le.f32.partialorder %v4268_v19, %v4277_v0  ;;  %3398 = vmatpush1.bf16.msra.mxu1 %v3611_v14  ;;  %3328 = vmatmul.mubr.msk.f32.gmra.mrb[110].mxu0 %vm5934_vm0, %v270_v44 }
 0x196   : > { %v4284_v20 = vsub.f32 %v3893_v53, %v1106_v18  ;;  %v1537_v36 = vsel %vm5916_vm11, %v4268_v19, %v4277_v0  ;;  %3399 = vmatprep.subr.bf16.mxu1 %v5998_v43 }
 0x197   : > { %v4293_v7 = vsub.f32 %v3895_v55, %v1107_v10  ;;  %1539 = vmin.index.xlane.f32.xlu0 %v1537_v36  ;;  %v841_v25 = vpop.f32.mrb[58].mxu0  ;;  %v271_v36 = vld [vmem:[%s3617_s16 + $0x1c0] sm:$0xff] }
 0x198   : > { %v1108_v47 = vmul.f32 2.0, %v841_v25  ;;  %v843_v57 = vpop.f32.mrb[59].mxu0  ;;  %3329 = vmatprep.mubr.msk.f32.mxu0 %vm5934_vm0, %v271_v36 }
 0x199   : > { %5997 = vst [vmem:[#allocation22_spill] sm:$0xff] %v4293_v7  ;;  %v1109_v18 = vmul.f32 2.0, %v843_v57  ;;  %vm5918_vm9 = vcmp.le.f32.partialorder %v4284_v20, %v4293_v7  ;;  %3401 = vmatpush1.bf16.msra.mxu1 %v3641_v21  ;;  %3330 = vmatmul.mubr.msk.f32.gmra.mrb[112].mxu0 %vm5934_vm0, %v271_v36 }
 0x19a   : > { %v4302_v0 = vsub.f32 %v3893_v53, %v1108_v47  ;;  %v1545_v10 = vsel %vm5918_vm9, %v4284_v20, %v4293_v7  ;;  %3402 = vmatprep.subr.bf16.mxu1 %v5998_v43 }
 0x19b   : > { %v4311_v14 = vsub.f32 %v3895_v55, %v1109_v18  ;;  %1547 = vmin.index.xlane.f32.xlu0 %v1545_v10  ;;  %v847_v57 = vpop.f32.mrb[60].mxu0 }
 0x19c   : > { %v1110_v44 = vmul.f32 2.0, %v847_v57  ;;  %v849_v25 = vpop.f32.mrb[61].mxu0  ;;  %v272_v57 = vld [vmem:[%s3617_s16 + $0x1c8] sm:$0xff] }
 0x19d   : > { %5999 = vst [vmem:[#allocation23_spill] sm:$0xff] %v4311_v14  ;;  %v1111_v47 = vmul.f32 2.0, %v849_v25  ;;  %vm5920_vm11 = vcmp.le.f32.partialorder %v4302_v0, %v4311_v14  ;;  %3331 = vmatprep.mubr.msk.f32.mxu0 %vm5934_vm0, %v272_v57  ;;  %3404 = vmatpush1.bf16.msra.mxu1 %v3663_v27 }
 0x19e   : > { %v4320_v18 = vsub.f32 %v3893_v53, %v1110_v44  ;;  %v1553_v10 = vsel %vm5920_vm11, %v4302_v0, %v4311_v14  ;;  %3332 = vmatmul.mubr.msk.f32.gmra.mrb[114].mxu0 %vm5934_vm0, %v272_v57  ;;  %3405 = vmatprep.subr.bf16.mxu1 %v5998_v43  ;;  %v273_v14 = vld [vmem:[%s3617_s16 + $0x1d0] sm:$0xff] }
 0x19f   : > { %v4329_v21 = vsub.f32 %v3895_v55, %v1111_v47  ;;  %1555 = vmin.index.xlane.f32.xlu0 %v1553_v10  ;;  %v853_v36 = vpop.f32.mrb[62].mxu0  ;;  %3333 = vmatprep.mubr.msk.f32.mxu0 %vm5934_vm0, %v273_v14 }
 0x1a0   : > { %6000 = vst [vmem:[#allocation24_spill] sm:$0xff] %v4320_v18  ;;  %v1112_v25 = vmul.f32 2.0, %v853_v36  ;;  %v855_v7 = vpop.f32.mrb[63].mxu0 }
 0x1a1   : > { %6001 = vst [vmem:[#allocation25_spill] sm:$0xff] %v4329_v21  ;;  %v1113_v44 = vmul.f32 2.0, %v855_v7  ;;  %vm5923_vm9 = vcmp.le.f32.partialorder %v4320_v18, %v4329_v21  ;;  %3407 = vmatpush1.bf16.msra.mxu1 %v3685_v33 }
 0x1a2   : > { %v4339_v47 = vsub.f32 %v3893_v53, %v1112_v25  ;;  %v1561_v10 = vsel %vm5923_vm9, %v4320_v18, %v4329_v21  ;;  %3334 = vmatmul.mubr.msk.f32.gmra.mrb[116].mxu0 %vm5934_vm0, %v273_v14  ;;  %3408 = vmatprep.subr.bf16.mxu1 %v5998_v43  ;;  %v274_v21 = vld [vmem:[%s3617_s16 + $0x1d8] sm:$0xff] }
 0x1a3   : > { %v4348_v27 = vsub.f32 %v3895_v55, %v1113_v44  ;;  %1563 = vmin.index.xlane.f32.xlu0 %v1561_v10  ;;  %v859_v7 = vpop.f32.mrb[64].mxu0  ;;  %3335 = vmatprep.mubr.msk.f32.mxu0 %vm5934_vm0, %v274_v21 }
 0x1a4   : > { %v1114_v57 = vmul.f32 2.0, %v859_v7  ;;  %v861_v36 = vpop.f32.mrb[65].mxu0 }
 0x1a5   : > { %6002 = vst [vmem:[#allocation26_spill] sm:$0xff] %v4348_v27  ;;  %v1115_v25 = vmul.f32 2.0, %v861_v36  ;;  %vm5925_vm11 = vcmp.le.f32.partialorder %v4339_v47, %v4348_v27  ;;  %3410 = vmatpush1.bf16.msra.mxu1 %v3707_v39  ;;  %v275_v36 = vld [vmem:[%s3617_s16 + $0x1e0] sm:$0xff] }
 0x1a6   : > { %v4357_v18 = vsub.f32 %v3893_v53, %v1114_v57  ;;  %v1569_v44 = vsel %vm5925_vm11, %v4339_v47, %v4348_v27  ;;  %3336 = vmatmul.mubr.msk.f32.gmra.mrb[118].mxu0 %vm5934_vm0, %v274_v21  ;;  %3411 = vmatprep.subr.bf16.mxu1 %v5998_v43 }
 0x1a7   : > { %v4366_v33 = vsub.f32 %v3895_v55, %v1115_v25  ;;  %1571 = vmin.index.xlane.f32.xlu0 %v1569_v44  ;;  %v865_v14 = vpop.f32.mrb[66].mxu0  ;;  %3337 = vmatprep.mubr.msk.f32.mxu0 %vm5934_vm0, %v275_v36 }
 0x1a8   : > { %v1116_v10 = vmul.f32 2.0, %v865_v14  ;;  %v867_v7 = vpop.f32.mrb[67].mxu0 }
 0x1a9   : > { %6003 = vst [vmem:[#allocation27_spill] sm:$0xff] %v4366_v33  ;;  %v1117_v57 = vmul.f32 2.0, %v867_v7  ;;  %vm5927_vm9 = vcmp.le.f32.partialorder %v4357_v18, %v4366_v33  ;;  %3413 = vmatpush1.bf16.msra.mxu1 %v3729_v45  ;;  %v276_v7 = vld [vmem:[%s3617_s16 + $0x1e8] sm:$0xff] }
 0x1aa   : > { %v4375_v27 = vsub.f32 %v3893_v53, %v1116_v10  ;;  %v1577_v25 = vsel %vm5927_vm9, %v4357_v18, %v4366_v33  ;;  %3338 = vmatmul.mubr.msk.f32.gmra.mrb[120].mxu0 %vm5934_vm0, %v275_v36  ;;  %3414 = vmatprep.subr.bf16.mxu1 %v5998_v43 }
 0x1ab   : > { %v4384_v39 = vsub.f32 %v3895_v55, %v1117_v57  ;;  %1579 = vmin.index.xlane.f32.xlu0 %v1577_v25  ;;  %v871_v21 = vpop.f32.mrb[68].mxu0  ;;  %3339 = vmatprep.mubr.msk.f32.mxu0 %vm5934_vm0, %v276_v7 }
 0x1ac   : > { %v1118_v44 = vmul.f32 2.0, %v871_v21  ;;  %v873_v14 = vpop.f32.mrb[69].mxu0 }
 0x1ad   : > { %6004 = vst [vmem:[#allocation28_spill] sm:$0xff] %v4384_v39  ;;  %v1119_v10 = vmul.f32 2.0, %v873_v14  ;;  %vm5929_vm11 = vcmp.le.f32.partialorder %v4375_v27, %v4384_v39  ;;  %3416 = vmatpush1.bf16.msra.mxu1 %v3745_v49  ;;  %v277_v14 = vld [vmem:[%s3617_s16 + $0x1f0] sm:$0xff] }
 0x1ae   : > { %v4393_v33 = vsub.f32 %v3893_v53, %v1118_v44  ;;  %v1585_v57 = vsel %vm5929_vm11, %v4375_v27, %v4384_v39  ;;  %3340 = vmatmul.mubr.msk.f32.gmra.mrb[122].mxu0 %vm5934_vm0, %v276_v7  ;;  %3417 = vmatprep.subr.bf16.mxu1 %v5998_v43 }
 0x1af   : > { %v4402_v45 = vsub.f32 %v3895_v55, %v1119_v10  ;;  %1587 = vmin.index.xlane.f32.xlu0 %v1585_v57  ;;  %v877_v36 = vpop.f32.mrb[70].mxu0  ;;  %3341 = vmatprep.mubr.msk.f32.mxu0 %vm5934_vm0, %v277_v14 }
 0x1b0   : > { %v1120_v25 = vmul.f32 2.0, %v877_v36  ;;  %v879_v21 = vpop.f32.mrb[71].mxu0 }
 0x1b1   : > { %6005 = vst [vmem:[#allocation29_spill] sm:$0xff] %v4402_v45  ;;  %v1121_v44 = vmul.f32 2.0, %v879_v21  ;;  %vm5931_vm9 = vcmp.le.f32.partialorder %v4393_v33, %v4402_v45  ;;  %3419 = vmatpush1.bf16.msra.mxu1 %v3567_v3  ;;  %v278_v21 = vld [vmem:[%s3617_s16 + $0x1f8] sm:$0xff] }
 0x1b2   : > { %v4411_v39 = vsub.f32 %v3893_v53, %v1120_v25  ;;  %v1593_v10 = vsel %vm5931_vm9, %v4393_v33, %v4402_v45  ;;  %3342 = vmatmul.mubr.msk.f32.gmra.mrb[124].mxu0 %vm5934_vm0, %v277_v14  ;;  %3420 = vmatprep.subr.bf16.mxu1 %v5998_v43 }
 0x1b3   : > { %v4420_v49 = vsub.f32 %v3895_v55, %v1121_v44  ;;  %1595 = vmin.index.xlane.f32.xlu0 %v1593_v10  ;;  %v883_v7 = vpop.f32.mrb[72].mxu0  ;;  %3343 = vmatprep.mubr.msk.f32.mxu0 %vm5934_vm0, %v278_v21 }
 0x1b4   : > { %6006 = vst [vmem:[#allocation30_spill] sm:$0xff] %v4411_v39  ;;  %v1122_v57 = vmul.f32 2.0, %v883_v7  ;;  %v885_v36 = vpop.f32.mrb[73].mxu0 }
 0x1b5   : > { %6007 = vst [vmem:[#allocation31_spill] sm:$0xff] %v4420_v49  ;;  %v1123_v25 = vmul.f32 2.0, %v885_v36  ;;  %vm1600_vm11 = vcmp.le.f32.partialorder %v4411_v39, %v4420_v49  ;;  %3422 = vmatpush1.bf16.msra.mxu1 %v3589_v9 }
 0x1b6   : > { %v4429_v45 = vsub.f32 %v3893_v53, %v1122_v57  ;;  %v1601_v44 = vsel %vm1600_vm11, %v4411_v39, %v4420_v49  ;;  %3344 = vmatmul.mubr.msk.f32.gmra.mrb[126].mxu0 %vm5934_vm0, %v278_v21  ;;  %3423 = vmatprep.subr.bf16.mxu1 %v5998_v43  ;;  %v6009_v49 = vlaneseq }
 0x1b7   : > { %v4438_v3 = vsub.f32 %v3895_v55, %v1123_v25  ;;  %1603 = vmin.index.xlane.f32.xlu0 %v1601_v44  ;;  %v889_v14 = vpop.f32.mrb[74].mxu0 }
 0x1b8   : > { %v1324_v10 = vpop.xlane.xlu0 %1323  ;;  %v1124_v7 = vmul.f32 2.0, %v889_v14  ;;  %v891_v36 = vpop.f32.mrb[75].mxu0  ;;  %v4446_v39 = vand.u32 127, %v6009_v49 }
 0x1b9   : > { %6008 = vst [vmem:[#allocation32_spill] sm:$0xff] %v4438_v3  ;;  %3451 = vset.pattern.permute.xlu0 %v1324_v10  ;;  %vm1608_vm9 = vcmp.le.f32.partialorder %v4429_v45, %v4438_v3  ;;  %v1125_v57 = vmul.f32 2.0, %v891_v36  ;;  %3425 = vmatpush1.bf16.msra.mxu1 %v3619_v15 }
 0x1ba   : > { %v1609_v25 = vsel %vm1608_vm9, %v4429_v45, %v4438_v3  ;;  %v4454_v9 = vsub.f32 %v3893_v53, %v1124_v7  ;;  %3426 = vmatprep.subr.bf16.mxu1 %v5998_v43  ;;  %v4464_v7 = vadd.s32 128, %v4446_v39 }
 0x1bb   : > { %1611 = vmin.index.xlane.f32.xlu0 %v1609_v25  ;;  %v4457_v21 = vsub.f32 %v3895_v55, %v1125_v57  ;;  %v895_v44 = vpop.f32.mrb[76].mxu0 }
 0x1bc   : > { %v1332_v14 = vpop.xlane.xlu1 %1331  ;;  %v1126_v10 = vmul.f32 2.0, %v895_v44  ;;  %v897_v36 = vpop.f32.mrb[77].mxu0 }
 0x1bd   : > { %6010 = vst [vmem:[#allocation33_spill] sm:$0xff] %v4457_v21  ;;  %3452 = vset.pattern.permute.xlu1 %v1332_v14  ;;  %vm5937_vm0 = vcmp.le.f32.partialorder %v4454_v9, %v4457_v21  ;;  %v1127_v49 = vmul.f32 2.0, %v897_v36  ;;  %v1330_v14 = vsel %vm1328_vm3, %v4446_v39, %v4464_v7  ;;  %3428 = vmatpush1.bf16.msra.mxu1 %v3643_v22 }
 0x1be   : > { %v4471_v57 = vsel %vm5937_vm0, %v4454_v9, %v4457_v21  ;;  %v4474_v25 = vsub.f32 %v3893_v53, %v1126_v10  ;;  %3429 = vmatprep.subr.bf16.mxu1 %v5998_v43 }
 0x1bf   : > { %v4477_v15 = vsub.f32 %v3895_v55, %v1127_v49  ;;  %v901_v44 = vpop.f32.mrb[78].mxu0 }
 0x1c0   : > { %v1128_v36 = vmul.f32 2.0, %v901_v44  ;;  %v903_v3 = vpop.f32.mrb[79].mxu0  ;;  %v1340_v5 = vpop.xlane.xlu1 %1339 }
 0x1c1   : > { %6011 = vst [vmem:[#allocation34_spill] sm:$0xff] %v4477_v15  ;;  %1334 = vperm.xlu1 %3452, %v1330_v14   ;;  %v1129_v21 = vmul.f32 2.0, %v903_v3  ;;  %vm1624_vm0 = vcmp.le.f32.partialorder %v4474_v25, %v4477_v15  ;;  %3431 = vmatpush1.bf16.msra.mxu1 %v3665_v28 }
 0x1c2   : > { %v4489_v10 = vsub.f32 %v3893_v53, %v1128_v36  ;;  %v4496_v2 = vsel %vm1624_vm0, %v4474_v25, %v4477_v15  ;;  %3432 = vmatprep.subr.bf16.mxu1 %v5998_v43 }
 0x1c3   : > { %v4499_v22 = vsub.f32 %v3895_v55, %v1129_v21  ;;  %v907_v3 = vpop.f32.mrb[80].mxu0 }
 0x1c4   : > { %v1348_v49 = vpop.xlane.xlu0 %1347  ;;  %v1130_v44 = vmul.f32 2.0, %v907_v3  ;;  %v909_v14 = vpop.f32.mrb[81].mxu0 }
 0x1c5   : > { %6012 = vst [vmem:[#allocation35_spill] sm:$0xff] %v4499_v22  ;;  %3454 = vset.pattern.permute.xlu1 %v1348_v49  ;;  %vm5939_vm3 = vcmp.le.f32.partialorder %v4489_v10, %v4499_v22  ;;  %v1131_v36 = vmul.f32 2.0, %v909_v14  ;;  %v1346_v49 = vsel %vm1344_vm5, %v4446_v39, %v4464_v7  ;;  %3434 = vmatpush1.bf16.msra.mxu1 %v3687_v34 }
 0x1c6   : > { %v4510_v21 = vsel %vm5939_vm3, %v4489_v10, %v4499_v22  ;;  %v4513_v15 = vsub.f32 %v3893_v53, %v1130_v44  ;;  %3435 = vmatprep.subr.bf16.mxu1 %v5998_v43 }
 0x1c7   : > { %v4516_v28 = vsub.f32 %v3895_v55, %v1131_v36  ;;  %v913_v14 = vpop.f32.mrb[82].mxu0 }
 0x1c8   : > { %v1356_v3 = vpop.xlane.xlu1 %1355  ;;  %v1132_v22 = vmul.f32 2.0, %v913_v14  ;;  %v915_v24 = vpop.f32.mrb[83].mxu0 }
 0x1c9   : > { %6013 = vst [vmem:[#allocation36_spill] sm:$0xff] %v4516_v28  ;;  %1350 = vperm.xlu1 %3454, %v1346_v49   ;;  %vm1640_vm3 = vcmp.le.f32.partialorder %v4513_v15, %v4516_v28  ;;  %3437 = vmatpush1.bf16.msra.mxu1 %v3709_v40  ;;  %v1133_v34 = vmul.f32 2.0, %v915_v24  ;;  %v1322_v40 = vsel %vm1320_vm2, %v4446_v39, %v4464_v7 }
 0x1ca   : > { %v4532_v44 = vsel %vm1640_vm3, %v4513_v15, %v4516_v28  ;;  %3438 = vmatprep.subr.bf16.mxu1 %v5998_v43  ;;  %v4537_v26 = vsub.f32 %v3893_v53, %v1132_v22  ;;  %v1362_v28 = vsel %vm1360_vm7, %v4446_v39, %v4464_v7 }
 0x1cb   : > { %v4540_v49 = vsub.f32 %v3895_v55, %v1133_v34  ;;  %v919_v51 = vpop.f32.mrb[84].mxu0 }
 0x1cc   : > { %v1364_v36 = vpop.xlane.xlu1 %1363  ;;  %v1134_v22 = vmul.f32 2.0, %v919_v51  ;;  %v921_v14 = vpop.f32.mrb[85].mxu0  ;;  %v6087_v25 = vld [vmem:[#allocation35_spill] sm:$0xff] }
 0x1cd   : > { %3456 = vset.pattern.permute.xlu1 %v1364_v36  ;;  %3440 = vmatpush1.bf16.msra.mxu1 %v3731_v46  ;;  %vm1648_vm5 = vcmp.le.f32.partialorder %v4537_v26, %v4540_v49  ;;  %v1135_v59 = vmul.f32 2.0, %v921_v14  ;;  %v1370_v36 = vsel %vm1368_vm8, %v4446_v39, %v4464_v7 }
 0x1ce   : > { %v4560_v48 = vsel %vm1648_vm5, %v4537_v26, %v4540_v49  ;;  %v4563_v61 = vsub.f32 %v3893_v53, %v1134_v22  ;;  %v1386_v22 = vsel %vm1384_vm10, %v4446_v39, %v4464_v7 }
 0x1cf   : > { %v925_v60 = vpop.f32.mrb[86].mxu0 }
 0x1d0   : > { %v1372_v43 = vpop.xlane.xlu0 %1371  ;;  %v1136_v34 = vmul.f32 2.0, %v925_v60 }
 0x1d1   : > { %1366 = vperm.xlu1 %3456, %v1362_v28   ;;  %1326 = vperm.xlu0 %3451, %v1322_v40   ;;  %v4566_v28 = vsub.f32 %v3895_v55, %v1135_v59  ;;  %v927_v40 = vpop.f32.mrb[87].mxu0 }
 0x1d2   : > { %v1137_v12 = vmul.f32 2.0, %v927_v40  ;;  %v4588_v17 = vsub.f32 %v3893_v53, %v1136_v34 }
 0x1d3   : > { %vm1656_vm2 = vcmp.le.f32.partialorder %v4563_v61, %v4566_v28  ;;  %v931_v23 = vpop.f32.mrb[88].mxu0 }
 0x1d4   : > { %v1380_v46 = vpop.xlane.xlu1 %1379  ;;  %v4585_v24 = vsel %vm1656_vm2, %v4563_v61, %v4566_v28  ;;  %v4591_v51 = vsub.f32 %v3895_v55, %v1137_v12  ;;  %v1138_v59 = vmul.f32 2.0, %v931_v23  ;;  %v1410_v23 = vsel %vm1408_vm13, %v4446_v39, %v4464_v7 }
 0x1d5   : > { %3457 = vset.pattern.permute.xlu1 %v1372_v43  ;;  %3453 = vset.pattern.permute.xlu0 %v1340_v5  ;;  %v1338_v5 = vsel %vm1336_vm4, %v4446_v39, %v4464_v7  ;;  %vm6022_vm13 = vcmp.le.f32.partialorder %v4109_v31, %v4117_v41  ;;  %v1658_v26 = vsel %vm1656_vm2, %v4446_v39, %v4464_v7 }
 0x1d6   : > { %vm1664_vm4 = vcmp.le.f32.partialorder %v4588_v17, %v4591_v51  ;;  %v4613_v38 = vsub.f32 %v3893_v53, %v1138_v59 }
 0x1d7   : > { %v4610_v14 = vsel %vm1664_vm4, %v4588_v17, %v4591_v51  ;;  %v1666_v61 = vsel %vm1664_vm4, %v4446_v39, %v4464_v7 }
 0x1d8   : > { %v1388_v63 = vpop.xlane.xlu1 %1387 }
 0x1d9   : > { %1374 = vperm.xlu1 %3457, %v1370_v36   ;;  %1342 = vperm.xlu0 %3453, %v1338_v5   ;;  %v933_v36 = vpop.f32.mrb[89].mxu0 }
 0x1da   : > { %v1139_v35 = vmul.f32 2.0, %v933_v36  ;;  %v937_v34 = vpop.f32.mrb[90].mxu0 }
 0x1db   : > { %v1140_v12 = vmul.f32 2.0, %v937_v34 }
 0x1dc   : > { %v4616_v5 = vsub.f32 %v3895_v55, %v1139_v35 }
 0x1dd   : > { %3459 = vset.pattern.permute.xlu1 %v1388_v63  ;;  %3455 = vset.pattern.permute.xlu0 %v1356_v3  ;;  %v1354_v3 = vsel %vm1352_vm6, %v4446_v39, %v4464_v7  ;;  %v1402_v63 = vsel %vm1400_vm12, %v4446_v39, %v4464_v7  ;;  %v4633_v56 = vsub.f32 %v3893_v53, %v1140_v12 }
 0x1de   : > { %vm1672_vm6 = vcmp.le.f32.partialorder %v4613_v38, %v4616_v5 }
 0x1df   : > { %v1674_v17 = vsel %vm1672_vm6, %v4446_v39, %v4464_v7 }
 0x1e0   : > { %v1404_v43 = vpop.xlane.xlu0 %1403 }
 0x1e1   : > { %1390 = vperm.xlu1 %3459, %v1386_v22   ;;  %1358 = vperm.xlu0 %3455, %v1354_v3  }
 0x1e4   : > { %v1412_v29 = vpop.xlane.xlu0 %1411 }
 0x1e5   : > { %3461 = vset.pattern.permute.xlu1 %v1404_v43  ;;  %3458 = vset.pattern.permute.xlu0 %v1380_v46  ;;  %v4630_v46 = vsel %vm1672_vm6, %v4613_v38, %v4616_v5  ;;  %v939_v43 = vpop.f32.mrb[91].mxu0 }
 0x1e6   : > { %v1141_v22 = vmul.f32 2.0, %v939_v43  ;;  %v943_v59 = vpop.f32.mrb[92].mxu0  ;;  %v1418_v43 = vsel %vm1416_vm14, %v4446_v39, %v4464_v7 }
 0x1e7   : > { %v1142_v35 = vmul.f32 2.0, %v943_v59 }
 0x1e8   : > { %v1420_v60 = vpop.xlane.xlu0 %1419  ;;  %v4636_v58 = vsub.f32 %v3895_v55, %v1141_v22 }
 0x1e9   : > { %1406 = vperm.xlu1 %3461, %v1402_v63   ;;  %v945_v63 = vpop.f32.mrb[93].mxu0  ;;  %v4653_v6 = vsub.f32 %v3893_v53, %v1142_v35 }
 0x1ea   : > { %vm1680_vm7 = vcmp.le.f32.partialorder %v4633_v56, %v4636_v58  ;;  %v1143_v34 = vmul.f32 2.0, %v945_v63  ;;  %v949_v22 = vpop.f32.mrb[94].mxu0 }
 0x1eb   : > { %6014 = vst [vmem:[#allocation37_spill] sm:$0xff] %v4653_v6  ;;  %v1144_v59 = vmul.f32 2.0, %v949_v22  ;;  %v951_v35 = vpop.f32.mrb[95].mxu0  ;;  %v1682_v38 = vsel %vm1680_vm7, %v4446_v39, %v4464_v7 }
 0x1ec   : > { %v1428_v40 = vpop.xlane.xlu0 %1427  ;;  %v4656_v13 = vsub.f32 %v3895_v55, %v1143_v34  ;;  %v1145_v63 = vmul.f32 2.0, %v951_v35  ;;  %v955_v22 = vpop.f32.mrb[96].mxu0 }
 0x1ed   : > { %3462 = vset.pattern.permute.xlu1 %v1412_v29  ;;  %v4650_v29 = vsel %vm1680_vm7, %v4633_v56, %v4636_v58  ;;  %v4673_v30 = vsub.f32 %v3893_v53, %v1144_v59  ;;  %v957_v35 = vpop.f32.mrb[97].mxu0 }
 0x1ee   : > { %6015 = vst [vmem:[#allocation38_spill] sm:$0xff] %v4656_v13  ;;  %vm5965_vm8 = vcmp.le.f32.partialorder %v4653_v6, %v4656_v13  ;;  %v4676_v32 = vsub.f32 %v3895_v55, %v1145_v63  ;;  %v1147_v63 = vmul.f32 2.0, %v957_v35 }
 0x1ef   : > { %6016 = vst [vmem:[#allocation39_spill] sm:$0xff] %v4673_v30 }
 0x1f0   : > { %v1436_v3 = vpop.xlane.xlu0 %1435  ;;  %6017 = vst [vmem:[#allocation40_spill] sm:$0xff] %v4676_v32  ;;  %vm5964_vm10 = vcmp.le.f32.partialorder %v4673_v30, %v4676_v32  ;;  %v4701_v54 = vsub.f32 %v3895_v55, %v1147_v63 }
 0x1f1   : > { %1414 = vperm.xlu1 %3462, %v1410_v23  }
 0x1f2   : > { %6019 = vst [vmem:[#allocation42_spill] sm:$0xff] %v4701_v54  ;;  %v6090_v58 = vld [vmem:[#allocation37_spill] sm:$0xff] }
 0x1f4   : > { %v1444_v36 = vpop.xlane.xlu0 %1443 }
 0x1f5   : > { %3463 = vset.pattern.permute.xlu1 %v1420_v60  ;;  %v4670_v60 = vsel %vm5965_vm8, %v4653_v6, %v4656_v13 }
 0x1f8   : > { %v1452_v12 = vpop.xlane.xlu0 %1451 }
 0x1f9   : > { %1422 = vperm.xlu1 %3463, %v1418_v43   ;;  %v1426_v43 = vsel %vm1424_vm15, %v4446_v39, %v4464_v7  ;;  %vm6023_vm15 = vcmp.le.f32.partialorder %v3996_v8, %v4004_v11 }
 0x1fa   : > { %v1378_v31 = vsel %vm6023_vm15, %v4446_v39, %v4464_v7  ;;  %vm6027_vm15 = vcmp.le.f32.partialorder %v4025_v37, %v4033_v42 }
 0x1fc   : > { %v1460_v23 = vpop.xlane.xlu0 %1459 }
 0x1fd   : > { %3464 = vset.pattern.permute.xlu1 %v1428_v40  ;;  %v4693_v40 = vsel %vm5964_vm10, %v4673_v30, %v4676_v32  ;;  %v1434_v32 = vsel %vm1432_vm1, %v4446_v39, %v4464_v7  ;;  %vm6026_vm1 = vcmp.le.f32.partialorder %v4122_v62, %v4130_v1  ;;  %v1394_v1 = vsel %vm6027_vm15, %v4446_v39, %v4464_v7 }
 0x200   : > { %v4678_v34 = vpop.xlane.xlu0 %1467  ;;  %1619 = vmin.index.xlane.f32.xlu0 %v4471_v57  ;;  %v1146_v57 = vmul.f32 2.0, %v955_v22  ;;  %v961_v22 = vpop.f32.mrb[98].mxu0 }
 0x201   : > { %1430 = vperm.xlu1 %3464, %v1426_v43   ;;  %v1148_v35 = vmul.f32 2.0, %v961_v22  ;;  %v963_v63 = vpop.f32.mrb[99].mxu0 }
 0x202   : > { %v4698_v50 = vsub.f32 %v3893_v53, %v1146_v57  ;;  %v1149_v30 = vmul.f32 2.0, %v963_v63 }
 0x203   : > { %v4722_v4 = vsub.f32 %v3893_v53, %v1148_v35 }
 0x204   : > { %v4695_v59 = vpop.xlane.xlu0 %1475  ;;  %6018 = vst [vmem:[#allocation41_spill] sm:$0xff] %v4698_v50  ;;  %vm5963_vm12 = vcmp.le.f32.partialorder %v4698_v50, %v4701_v54  ;;  %v4725_v16 = vsub.f32 %v3895_v55, %v1149_v30  ;;  %v967_v30 = vpop.f32.mrb[100].mxu0 }
 0x205   : > { %3465 = vset.pattern.permute.xlu1 %v1436_v3  ;;  %v4717_v3 = vsel %vm5963_vm12, %v4698_v50, %v4701_v54  ;;  %6020 = vst [vmem:[#allocation43_spill] sm:$0xff] %v4722_v4  ;;  %v1442_v54 = vsel %vm6022_vm13, %v4446_v39, %v4464_v7  ;;  %v1150_v22 = vmul.f32 2.0, %v967_v30  ;;  %v969_v35 = vpop.f32.mrb[101].mxu0  ;;  %v1396_v30 = vpop.xlane.xlu1 %1395 }
 0x206   : > { %6021 = vst [vmem:[#allocation44_spill] sm:$0xff] %v4725_v16  ;;  %vm5962_vm14 = vcmp.le.f32.partialorder %v4722_v4, %v4725_v16  ;;  %v1151_v50 = vmul.f32 2.0, %v969_v35  ;;  %v973_v11 = vpop.f32.mrb[102].mxu0 }
 0x207   : > { %v4751_v41 = vsub.f32 %v3893_v53, %v1150_v22  ;;  %v975_v22 = vpop.f32.mrb[103].mxu0 }
 0x208   : > { %v4703_v43 = vpop.xlane.xlu0 %1483  ;;  %v1153_v62 = vmul.f32 2.0, %v975_v22  ;;  %v6031_v22 = vld [vmem:[#allocation3_spill] sm:$0xff] }
 0x209   : > { %1438 = vperm.xlu1 %3465, %v1434_v32   ;;  %6024 = vst [vmem:[#allocation45_spill] sm:$0xff] %v4751_v41 }
 0x20c   : > { %v4719_v57 = vpop.xlane.xlu0 %1491 }
 0x20d   : > { %3466 = vset.pattern.permute.xlu1 %v1444_v36  ;;  %v4741_v36 = vsel %vm5962_vm14, %v4722_v4, %v4725_v16 }
 0x210   : > { %v4727_v32 = vpop.xlane.xlu0 %1499 }
 0x211   : > { %1446 = vperm.xlu1 %3466, %v1442_v54   ;;  %v4754_v54 = vsub.f32 %v3895_v55, %v1151_v50  ;;  %v1152_v50 = vmul.f32 2.0, %v973_v11  ;;  %v6030_v11 = vld [vmem:[#allocation2_spill] sm:$0xff] }
 0x213   : > { %6025 = vst [vmem:[#allocation46_spill] sm:$0xff] %v4754_v54  ;;  %vm5947_vm13 = vcmp.le.f32.partialorder %v4751_v41, %v4754_v54  ;;  %v979_v42 = vpop.f32.mrb[104].mxu0 }
 0x214   : > { %v4743_v63 = vpop.xlane.xlu0 %1507  ;;  %v4770_v8 = vsel %vm5947_vm13, %v4751_v41, %v4754_v54 }
 0x215   : > { %3467 = vset.pattern.permute.xlu1 %v1452_v12  ;;  %v1450_v12 = vsel %vm6026_vm1, %v4446_v39, %v4464_v7  ;;  %vm6032_vm1 = vcmp.le.f32.partialorder %v6030_v11, %v6031_v22 }
 0x216   : > { %1382 = vperm.xlu0 %3458, %v1378_v31   ;;  %v4780_v31 = vsub.f32 %v3893_v53, %v1152_v50  ;;  %v1154_v50 = vmul.f32 2.0, %v979_v42 }
 0x218   : > { %v4756_v16 = vpop.xlane.xlu0 %1515  ;;  %6028 = vst [vmem:[#allocation47_spill] sm:$0xff] %v4780_v31  ;;  %v4805_v11 = vsub.f32 %v3893_v53, %v1154_v50 }
 0x219   : > { %1454 = vperm.xlu1 %3467, %v1450_v12   ;;  %v4783_v12 = vsub.f32 %v3895_v55, %v1153_v62  ;;  %v981_v62 = vpop.f32.mrb[105].mxu0 }
 0x21a   : > { %3460 = vset.pattern.permute.xlu0 %v1396_v30  ;;  %v1155_v54 = vmul.f32 2.0, %v981_v62  ;;  %6033 = vst [vmem:[#allocation2_spill] sm:$0xff] %v4805_v11 }
 0x21b   : > { %6029 = vst [vmem:[#allocation48_spill] sm:$0xff] %v4783_v12  ;;  %vm5959_vm13 = vcmp.le.f32.partialorder %v4780_v31, %v4783_v12 }
 0x21c   : > { %v4772_v35 = vpop.xlane.xlu0 %1523  ;;  %v4799_v37 = vsel %vm5959_vm13, %v4780_v31, %v4783_v12  ;;  %v4808_v22 = vsub.f32 %v3895_v55, %v1155_v54  ;;  %v6035_v12 = vld [vmem:[#allocation4_spill] sm:$0xff]  ;;  %v6036_v31 = vld [vmem:[#allocation5_spill] sm:$0xff]  ;;  %v985_v54 = vpop.f32.mrb[106].mxu0 }
 0x21d   : > { %3468 = vset.pattern.permute.xlu1 %v1460_v23  ;;  %v1458_v23 = vsel %vm6032_vm1, %v4446_v39, %v4464_v7  ;;  %vm6037_vm15 = vcmp.le.f32.partialorder %v6035_v12, %v6036_v31  ;;  %v1156_v50 = vmul.f32 2.0, %v985_v54  ;;  %v987_v62 = vpop.f32.mrb[107].mxu0 }
 0x21e   : > { %1398 = vperm.xlu0 %3460, %v1394_v1   ;;  %6034 = vst [vmem:[#allocation3_spill] sm:$0xff] %v4808_v22  ;;  %v1466_v42 = vsel %vm6037_vm15, %v4446_v39, %v4464_v7  ;;  %vm5954_vm1 = vcmp.le.f32.partialorder %v4805_v11, %v4808_v22  ;;  %v1157_v4 = vmul.f32 2.0, %v987_v62 }
 0x21f   : > { %v4830_v31 = vsub.f32 %v3893_v53, %v1156_v50 }
 0x220   : > { %v4785_v30 = vpop.xlane.xlu0 %1531  ;;  %v4833_v12 = vsub.f32 %v3895_v55, %v1157_v4 }
 0x221   : > { %1462 = vperm.xlu1 %3468, %v1458_v23   ;;  %6038 = vst [vmem:[#allocation4_spill] sm:$0xff] %v4830_v31 }
 0x222   : > { %6039 = vst [vmem:[#allocation5_spill] sm:$0xff] %v4833_v12 }
 0x224   : > { %v4801_v1 = vpop.xlane.xlu0 %1539 }
 0x225   : > { %3469 = vset.pattern.permute.xlu1 %v4678_v34  ;;  %v4824_v34 = vsel %vm5954_vm1, %v4805_v11, %v4808_v22  ;;  %v6040_v22 = vld [vmem:[#allocation6_spill] sm:$0xff]  ;;  %vm5955_vm1 = vcmp.le.f32.partialorder %v4830_v31, %v4833_v12  ;;  %v6049_v11 = vld [vmem:[#allocation12_spill] sm:$0xff] }
 0x226   : > { %vm6041_vm15 = vcmp.le.f32.partialorder %v4161_v52, %v6040_v22  ;;  %v6042_v52 = vld [vmem:[#allocation7_spill] sm:$0xff]  ;;  %v6043_v22 = vld [vmem:[#allocation8_spill] sm:$0xff] }
 0x227   : > { %v1474_v54 = vsel %vm6041_vm15, %v4446_v39, %v4464_v7  ;;  %vm6044_vm15 = vcmp.le.f32.partialorder %v6042_v52, %v6043_v22  ;;  %v6045_v52 = vld [vmem:[#allocation9_spill] sm:$0xff]  ;;  %v6046_v22 = vld [vmem:[#allocation10_spill] sm:$0xff] }
 0x228   : > { %v4810_v23 = vpop.xlane.xlu0 %1547  ;;  %v1482_v62 = vsel %vm6044_vm15, %v4446_v39, %v4464_v7  ;;  %vm6047_vm15 = vcmp.le.f32.partialorder %v6045_v52, %v6046_v22 }
 0x229   : > { %1470 = vperm.xlu1 %3469, %v1466_v42  }
 0x22c   : > { %v4826_v41 = vpop.xlane.xlu0 %1555 }
 0x22d   : > { %3470 = vset.pattern.permute.xlu1 %v4695_v59  ;;  %v4849_v59 = vsel %vm5955_vm1, %v4830_v31, %v4833_v12  ;;  %vm2601_vm1 = vcmask 7168   ;;  %v6048_v31 = vld [vmem:[#allocation11_spill] sm:$0xff] }
 0x22e   : > { %vm6050_vm13 = vcmp.le.f32.partialorder %v6048_v31, %v6049_v11 }
 0x22f   : > { %v1498_v13 = vsel %vm6050_vm13, %v4446_v39, %v4464_v7 }
 0x230   : > { %v4835_v42 = vpop.xlane.xlu0 %1563 }
 0x231   : > { %1478 = vperm.xlu1 %3470, %v1474_v54  }
 0x234   : > { %v4851_v4 = vpop.xlane.xlu0 %1571 }
 0x235   : > { %3471 = vset.pattern.permute.xlu1 %v4703_v43 }
 0x238   : > { %v4854_v50 = vpop.xlane.xlu0 %1579 }
 0x239   : > { %1486 = vperm.xlu1 %3471, %v1482_v62   ;;  %v1490_v62 = vsel %vm6047_vm15, %v4446_v39, %v4464_v7 }
 0x23c   : > { %v4861_v54 = vpop.xlane.xlu0 %1587 }
 0x23d   : > { %3472 = vset.pattern.permute.xlu1 %v4719_v57  ;;  %1627 = vmin.index.xlane.f32.xlu0 %v4496_v2 }
 0x240   : > { %v1335_v43 = vpop.permute.xlu1 %1334  ;;  %v4871_v12 = vpop.xlane.xlu0 %1595 }
 0x241   : > { %2603 = vst.msk [vmem:[%s4869_s18 + $0x8] sm:$0xff] %vm2601_vm1, %v1335_v43  ;;  %1494 = vperm.xlu1 %3472, %v1490_v62   ;;  %1635 = vmin.index.xlane.f32.xlu0 %v4510_v21 }
 0x243   : > { %v991_v21 = vpop.f32.mrb[108].mxu0 }
 0x244   : > { %v4883_v2 = vpop.xlane.xlu0 %1603  ;;  %v993_v52 = vpop.f32.mrb[109].mxu0 }
 0x245   : > { %3473 = vset.pattern.permute.xlu1 %v4727_v32  ;;  %1643 = vmin.index.xlane.f32.xlu0 %v4532_v44  ;;  %v1158_v32 = vmul.f32 2.0, %v991_v21  ;;  %v1159_v22 = vmul.f32 2.0, %v993_v52  ;;  %v6052_v21 = vld [vmem:[#allocation14_spill] sm:$0xff]  ;;  %v6055_v52 = vld [vmem:[#allocation16_spill] sm:$0xff] }
 0x247   : > { %v4898_v11 = vsub.f32 %v3893_v53, %v1158_v32  ;;  %v4901_v31 = vsub.f32 %v3895_v55, %v1159_v22  ;;  %v6054_v32 = vld [vmem:[#allocation15_spill] sm:$0xff] }
 0x248   : > { %v1351_v57 = vpop.permute.xlu1 %1350  ;;  %v4893_v44 = vpop.xlane.xlu0 %1611 }
 0x249   : > { %2605 = vst.msk [vmem:[%s4869_s18 + $0x18] sm:$0xff] %vm2601_vm1, %v1351_v57  ;;  %1502 = vperm.xlu1 %3473, %v1498_v13   ;;  %1651 = vmin.index.xlane.f32.xlu0 %v4560_v48  ;;  %v6051_v48 = vld [vmem:[#allocation13_spill] sm:$0xff]  ;;  %vm1752_vm12 = vcmp.le.f32.partialorder %v4898_v11, %v4901_v31 }
 0x24a   : > { %vm6053_vm13 = vcmp.le.f32.partialorder %v6051_v48, %v6052_v21  ;;  %v6063_v48 = vld [vmem:[#allocation21_spill] sm:$0xff]  ;;  %v1754_v56 = vsel %vm1752_vm12, %v4446_v39, %v4464_v7 }
 0x24b   : > { %v1506_v6 = vsel %vm6053_vm13, %v4446_v39, %v4464_v7  ;;  %vm1835_vm13 = vcmp.eq.s32.totalorder %v4464_v7, %v1335_v43 }
 0x24d   : > { %3474 = vset.pattern.permute.xlu1 %v4743_v63  ;;  %1659 = vmin.index.xlane.f32.xlu0 %v4585_v24  ;;  %v5968_v24 = vmov 1.0  }
 0x250   : > { %v1367_v62 = vpop.permute.xlu1 %1366  ;;  %v1327_v13 = vpop.permute.xlu0 %1326 }
 0x251   : > { %2607 = vst.msk [vmem:[%s4869_s18 + $0x28] sm:$0xff] %vm2601_vm1, %v1367_v62  ;;  %2602 = vst.msk [vmem:[%s4869_s18] sm:$0xff] %vm2601_vm1, %v1327_v13  ;;  %1510 = vperm.xlu1 %3474, %v1506_v6   ;;  %vm1833_vm15 = vcmp.eq.s32.totalorder %v4464_v7, %v1327_v13  ;;  %vm1832_vm14 = vcmp.eq.s32.totalorder %v4446_v39, %v1327_v13  ;;  %1667 = vmin.index.xlane.f32.xlu0 %v4610_v14 }
 0x252   : > { %3055 = vmatprep.mubr.msk.f32.mxu1 %vm1833_vm15, %v5968_v24  ;;  %v4925_v6 = vsel %vm1752_vm12, %v4898_v11, %v4901_v31  ;;  %vm1834_vm15 = vcmp.eq.s32.totalorder %v4446_v39, %v1335_v43  ;;  %v6058_v43 = vld [vmem:[#allocation18_spill] sm:$0xff]  ;;  %v6093_v31 = vld [vmem:[#allocation39_spill] sm:$0xff] }
 0x253   : > { %3056 = vmatmul.mubr.msk.f32.vlgmr.msra.gmra.mrb[0].mxu1 %vm1832_vm14, %v5968_v24  ;;  %vm6056_vm14 = vcmp.le.f32.partialorder %v6054_v32, %v6055_v52 }
 0x254   : > { %3057 = vmatprep.mubr.msk.f32.mxu1 %vm1835_vm13, %v5968_v24  ;;  %v1514_v22 = vsel %vm6056_vm14, %v4446_v39, %v4464_v7  ;;  %vm1838_vm14 = vcmp.eq.s32.totalorder %v4446_v39, %v1351_v57 }
 0x255   : > { %3475 = vset.pattern.permute.xlu1 %v4756_v16  ;;  %1675 = vmin.index.xlane.f32.xlu0 %v4630_v46 }
 0x257   : > { %3058 = vmatmul.mubr.msk.f32.gmra.mrb[2].mxu1 %vm1834_vm15, %v5968_v24  ;;  %vm1839_vm15 = vcmp.eq.s32.totalorder %v4464_v7, %v1351_v57 }
 0x258   : > { %v1375_v14 = vpop.permute.xlu1 %1374  ;;  %v1343_v63 = vpop.permute.xlu0 %1342 }
 0x259   : > { %2608 = vst.msk [vmem:[%s4869_s18 + $0x30] sm:$0xff] %vm2601_vm1, %v1375_v14  ;;  %2604 = vst.msk [vmem:[%s4869_s18 + $0x10] sm:$0xff] %vm2601_vm1, %v1343_v63  ;;  %1518 = vperm.xlu1 %3475, %v1514_v22   ;;  %vm1837_vm13 = vcmp.eq.s32.totalorder %v4464_v7, %v1343_v63  ;;  %vm1836_vm10 = vcmp.eq.s32.totalorder %v4446_v39, %v1343_v63  ;;  %1683 = vmin.index.xlane.f32.xlu0 %v4650_v29  ;;  %v6057_v29 = vld [vmem:[#allocation17_spill] sm:$0xff] }
 0x25a   : > { %3059 = vmatprep.mubr.msk.f32.mxu1 %vm1837_vm13, %v5968_v24  ;;  %vm1845_vm8 = vcmp.eq.s32.totalorder %v4464_v7, %v1375_v14 }
 0x25b   : > { %3060 = vmatmul.mubr.msk.f32.gmra.mrb[4].mxu1 %vm1836_vm10, %v5968_v24  ;;  %vm6059_vm10 = vcmp.le.f32.partialorder %v6057_v29, %v6058_v43 }
 0x25c   : > { %3061 = vmatprep.mubr.msk.f32.mxu1 %vm1839_vm15, %v5968_v24  ;;  %v1522_v13 = vsel %vm6059_vm10, %v4446_v39, %v4464_v7  ;;  %vm1842_vm10 = vcmp.eq.s32.totalorder %v4446_v39, %v1367_v62 }
 0x25d   : > { %3476 = vset.pattern.permute.xlu1 %v4772_v35  ;;  %1691 = vmin.index.xlane.f32.xlu0 %v4670_v60  ;;  %v6061_v35 = vld [vmem:[#allocation20_spill] sm:$0xff] }
 0x25f   : > { %3062 = vmatmul.mubr.msk.f32.gmra.mrb[6].mxu1 %vm1838_vm14, %v5968_v24  ;;  %vm1843_vm14 = vcmp.eq.s32.totalorder %v4464_v7, %v1367_v62 }
 0x260   : > { %v4952_v46 = vpop.permute.xlu1 %1390  ;;  %v1359_v16 = vpop.permute.xlu0 %1358 }
 0x261   : > { %2610 = vst.msk [vmem:[%s4869_s18 + $0x40] sm:$0xff] %vm2601_vm1, %v4952_v46  ;;  %2606 = vst.msk [vmem:[%s4869_s18 + $0x20] sm:$0xff] %vm2601_vm1, %v1359_v16  ;;  %1526 = vperm.xlu1 %3476, %v1522_v13   ;;  %vm1841_vm13 = vcmp.eq.s32.totalorder %v4464_v7, %v1359_v16  ;;  %vm1840_vm15 = vcmp.eq.s32.totalorder %v4446_v39, %v1359_v16  ;;  %1699 = vmin.index.xlane.f32.xlu0 %v4693_v40  ;;  %v6060_v40 = vld [vmem:[#allocation19_spill] sm:$0xff] }
 0x262   : > { %3063 = vmatprep.mubr.msk.f32.mxu1 %vm1841_vm13, %v5968_v24  ;;  %vm6062_vm13 = vcmp.le.f32.partialorder %v6060_v40, %v6061_v35 }
 0x263   : > { %3064 = vmatmul.mubr.msk.f32.gmra.mrb[8].mxu1 %vm1840_vm15, %v5968_v24  ;;  %v1530_v57 = vsel %vm6062_vm13, %v4446_v39, %v4464_v7  ;;  %vm1844_vm15 = vcmp.eq.s32.totalorder %v4446_v39, %v1375_v14 }
 0x264   : > { %3065 = vmatprep.mubr.msk.f32.mxu1 %vm1843_vm14, %v5968_v24 }
 0x265   : > { %3477 = vset.pattern.permute.xlu1 %v4785_v30  ;;  %1707 = vmin.index.xlane.f32.xlu0 %v4717_v3 }
 0x267   : > { %3066 = vmatmul.mubr.msk.f32.gmra.mrb[10].mxu1 %vm1842_vm10, %v5968_v24 }
 0x268   : > { %v4976_v60 = vpop.permute.xlu1 %1406  ;;  %3067 = vmatprep.mubr.msk.f32.mxu1 %vm1845_vm8, %v5968_v24  ;;  %v4990_v3 = vpop.f32.mrb[110].mxu0  ;;  %vm6064_vm8 = vcmp.le.f32.partialorder %v4268_v19, %v6063_v48 }
 0x269   : > { %2612 = vst.msk [vmem:[%s4869_s18 + $0x50] sm:$0xff] %vm2601_vm1, %v4976_v60  ;;  %1534 = vperm.xlu1 %3477, %v1530_v57   ;;  %1715 = vmin.index.xlane.f32.xlu0 %v4741_v36  ;;  %v4994_v30 = vpop.f32.mrb[111].mxu0  ;;  %v1538_v21 = vsel %vm6064_vm8, %v4446_v39, %v4464_v7 }
 0x26b   : > { %3068 = vmatmul.mubr.msk.f32.gmra.mrb[12].mxu1 %vm1844_vm15, %v5968_v24 }
 0x26c   : > { %v1003_v36 = vpop.f32.mrb[112].mxu0 }
 0x26d   : > { %3478 = vset.pattern.permute.xlu1 %v4801_v1  ;;  %1723 = vmin.index.xlane.f32.xlu0 %v4770_v8  ;;  %v1162_v1 = vmul.f32 2.0, %v1003_v36  ;;  %v1005_v14 = vpop.f32.mrb[113].mxu0 }
 0x26e   : > { %v1163_v8 = vmul.f32 2.0, %v1005_v14 }
 0x26f   : > { %v5008_v32 = vsub.f32 %v3893_v53, %v1162_v1 }
 0x270   : > { %v4996_v62 = vpop.permute.xlu1 %1414  ;;  %v5012_v19 = vsub.f32 %v3895_v55, %v1163_v8 }
 0x271   : > { %2613 = vst.msk [vmem:[%s4869_s18 + $0x58] sm:$0xff] %vm2601_vm1, %v4996_v62  ;;  %1542 = vperm.xlu1 %3478, %v1538_v21   ;;  %1731 = vmin.index.xlane.f32.xlu0 %v4799_v37  ;;  %v1009_v63 = vpop.f32.mrb[114].mxu0 }
 0x272   : > { %v1164_v52 = vmul.f32 2.0, %v1009_v63  ;;  %v1011_v22 = vpop.f32.mrb[115].mxu0  ;;  %vm5974_vm14 = vcmp.le.f32.partialorder %v5008_v32, %v5012_v19 }
 0x273   : > { %v1165_v16 = vmul.f32 2.0, %v1011_v22 }
 0x274   : > { %v5016_v37 = vsub.f32 %v3893_v53, %v1164_v52 }
 0x275   : > { %3479 = vset.pattern.permute.xlu1 %v4810_v23  ;;  %1739 = vmin.index.xlane.f32.xlu0 %v4824_v34  ;;  %v5019_v29 = vsub.f32 %v3895_v55, %v1165_v16  ;;  %v6065_v23 = vld [vmem:[#allocation22_spill] sm:$0xff]  ;;  %v1769_v34 = vsel %vm5974_vm14, %v5008_v32, %v5012_v19  ;;  %v1015_v40 = vpop.f32.mrb[116].mxu0  ;;  %vm1849_vm14 = vcmp.eq.s32.totalorder %v4464_v7, %v4952_v46 }
 0x276   : > { %vm6066_vm10 = vcmp.le.f32.partialorder %v4284_v20, %v6065_v23  ;;  %v1166_v35 = vmul.f32 2.0, %v1015_v40  ;;  %v1017_v57 = vpop.f32.mrb[117].mxu0 }
 0x277   : > { %v1546_v13 = vsel %vm6066_vm10, %v4446_v39, %v4464_v7  ;;  %v1167_v48 = vmul.f32 2.0, %v1017_v57  ;;  %vm5973_vm13 = vcmp.le.f32.partialorder %v5016_v37, %v5019_v29 }
 0x278   : > { %v5023_v43 = vpop.permute.xlu1 %1422  ;;  %v5042_v21 = vsub.f32 %v3893_v53, %v1166_v35  ;;  %v1777_v36 = vsel %vm5973_vm13, %v5016_v37, %v5019_v29 }
 0x279   : > { %2614 = vst.msk [vmem:[%s4869_s18 + $0x60] sm:$0xff] %vm2601_vm1, %v5023_v43  ;;  %1550 = vperm.xlu1 %3479, %v1546_v13   ;;  %1747 = vmin.index.xlane.f32.xlu0 %v4849_v59  ;;  %v1021_v20 = vpop.f32.mrb[118].mxu0  ;;  %v5051_v59 = vsub.f32 %v3895_v55, %v1167_v48 }
 0x27a   : > { %v1168_v1 = vmul.f32 2.0, %v1021_v20  ;;  %v1023_v14 = vpop.f32.mrb[119].mxu0 }
 0x27b   : > { %v1169_v8 = vmul.f32 2.0, %v1023_v14  ;;  %vm5967_vm15 = vcmp.le.f32.partialorder %v5042_v21, %v5051_v59 }
 0x27c   : > { %v5055_v63 = vsub.f32 %v3893_v53, %v1168_v1 }
 0x27d   : > { %3480 = vset.pattern.permute.xlu1 %v4826_v41  ;;  %1755 = vmin.index.xlane.f32.xlu0 %v4925_v6  ;;  %v5058_v52 = vsub.f32 %v3895_v55, %v1169_v8  ;;  %v6067_v41 = vld [vmem:[#allocation23_spill] sm:$0xff]  ;;  %v1785_v6 = vsel %vm5967_vm15, %v5042_v21, %v5051_v59  ;;  %v1027_v23 = vpop.f32.mrb[120].mxu0 }
 0x27e   : > { %vm6068_vm8 = vcmp.le.f32.partialorder %v4302_v0, %v6067_v41  ;;  %v1170_v13 = vmul.f32 2.0, %v1027_v23  ;;  %v1029_v40 = vpop.f32.mrb[121].mxu0  ;;  %v6069_v23 = vld [vmem:[#allocation24_spill] sm:$0xff] }
 0x27f   : > { %v1554_v16 = vsel %vm6068_vm8, %v4446_v39, %v4464_v7  ;;  %v1171_v35 = vmul.f32 2.0, %v1029_v40  ;;  %vm5966_vm10 = vcmp.le.f32.partialorder %v5055_v63, %v5058_v52 }
 0x280   : > { %v5062_v22 = vpop.permute.xlu1 %1430  ;;  %v5080_v57 = vsub.f32 %v3893_v53, %v1170_v13  ;;  %v1793_v48 = vsel %vm5966_vm10, %v5055_v63, %v5058_v52 }
 0x281   : > { %2615 = vst.msk [vmem:[%s4869_s18 + $0x68] sm:$0xff] %vm2601_vm1, %v5062_v22  ;;  %1558 = vperm.xlu1 %3480, %v1554_v16   ;;  %1771 = vmin.index.xlane.f32.xlu0 %v1769_v34  ;;  %v1033_v0 = vpop.f32.mrb[122].mxu0  ;;  %v5089_v34 = vsub.f32 %v3895_v55, %v1171_v35 }
 0x282   : > { %v1172_v20 = vmul.f32 2.0, %v1033_v0  ;;  %v1035_v1 = vpop.f32.mrb[123].mxu0 }
 0x283   : > { %v1173_v14 = vmul.f32 2.0, %v1035_v1  ;;  %vm5971_vm8 = vcmp.le.f32.partialorder %v5080_v57, %v5089_v34 }
 0x284   : > { %v5092_v8 = vsub.f32 %v3893_v53, %v1172_v20 }
 0x285   : > { %3481 = vset.pattern.permute.xlu1 %v4835_v42  ;;  %1779 = vmin.index.xlane.f32.xlu0 %v1777_v36  ;;  %v5095_v41 = vsub.f32 %v3895_v55, %v1173_v14  ;;  %v6070_v42 = vld [vmem:[#allocation25_spill] sm:$0xff]  ;;  %v1801_v36 = vsel %vm5971_vm8, %v5080_v57, %v5089_v34  ;;  %v1039_v40 = vpop.f32.mrb[124].mxu0 }
 0x286   : > { %vm6071_vm10 = vcmp.le.f32.partialorder %v6069_v23, %v6070_v42  ;;  %v1174_v35 = vmul.f32 2.0, %v1039_v40  ;;  %v1041_v0 = vpop.f32.mrb[125].mxu0 }
 0x287   : > { %v1562_v13 = vsel %vm6071_vm10, %v4446_v39, %v4464_v7  ;;  %v1175_v20 = vmul.f32 2.0, %v1041_v0  ;;  %vm5970_vm15 = vcmp.le.f32.partialorder %v5092_v8, %v5095_v41 }
 0x288   : > { %v5099_v16 = vpop.permute.xlu1 %1438  ;;  %v5117_v14 = vsub.f32 %v3893_v53, %v1174_v35  ;;  %v1809_v23 = vsel %vm5970_vm15, %v5092_v8, %v5095_v41 }
 0x289   : > { %2616 = vst.msk [vmem:[%s4869_s18 + $0x70] sm:$0xff] %vm2601_vm1, %v5099_v16  ;;  %1566 = vperm.xlu1 %3481, %v1562_v13   ;;  %1787 = vmin.index.xlane.f32.xlu0 %v1785_v6  ;;  %v1045_v1 = vpop.f32.mrb[126].mxu0  ;;  %v5126_v6 = vsub.f32 %v3895_v55, %v1175_v20 }
 0x28a   : > { %v1176_v42 = vmul.f32 2.0, %v1045_v1  ;;  %v1047_v13 = vpop.f32.mrb[127].mxu0 }
 0x28b   : > { %v1177_v40 = vmul.f32 2.0, %v1047_v13  ;;  %vm5972_vm10 = vcmp.le.f32.partialorder %v5117_v14, %v5126_v6  ;;  %v6074_v13 = vmov 1.0  }
 0x28c   : > { %v5129_v0 = vsub.f32 %v3893_v53, %v1176_v42 }
 0x28d   : > { %3482 = vset.pattern.permute.xlu1 %v4851_v4  ;;  %1795 = vmin.index.xlane.f32.xlu0 %v1793_v48  ;;  %v5132_v35 = vsub.f32 %v3895_v55, %v1177_v40  ;;  %v6072_v4 = vld [vmem:[#allocation26_spill] sm:$0xff]  ;;  %v1817_v48 = vsel %vm5972_vm10, %v5117_v14, %v5126_v6  ;;  %v5148_v1 = vpop.xlane.xlu0 %1619  ;;  %v6075_v40 = vld [vmem:[#allocation27_spill] sm:$0xff] }
 0x28e   : > { %vm6073_vm15 = vcmp.le.f32.partialorder %v4339_v47, %v6072_v4  ;;  %vm6076_vm13 = vcmp.le.f32.partialorder %v4357_v18, %v6075_v40  ;;  %v6079_v4 = vld [vmem:[#allocation29_spill] sm:$0xff] }
 0x28f   : > { %v1570_v20 = vsel %vm6073_vm15, %v4446_v39, %v4464_v7  ;;  %vm1824_vm8 = vcmp.le.f32.partialorder %v5129_v0, %v5132_v35 }
 0x290   : > { %v5136_v24 = vpop.permute.xlu1 %1446  ;;  %v1825_v47 = vsel %vm1824_vm8, %v5129_v0, %v5132_v35 }
 0x291   : > { %2617 = vst.msk [vmem:[%s4869_s18 + $0x78] sm:$0xff] %vm2601_vm1, %v5136_v24  ;;  %1574 = vperm.xlu1 %3482, %v1570_v20   ;;  %1803 = vmin.index.xlane.f32.xlu0 %v1801_v36 }
 0x295   : > { %3483 = vset.pattern.permute.xlu1 %v4854_v50  ;;  %v1383_v42 = vpop.permute.xlu0 %1382  ;;  %1811 = vmin.index.xlane.f32.xlu0 %v1809_v23  ;;  %v1578_v50 = vsel %vm6076_vm13, %v4446_v39, %v4464_v7 }
 0x296   : > { %2609 = vst.msk [vmem:[%s4869_s18 + $0x38] sm:$0xff] %vm2601_vm1, %v1383_v42  ;;  %vm1847_vm15 = vcmp.eq.s32.totalorder %v4464_v7, %v1383_v42  ;;  %vm1846_vm10 = vcmp.eq.s32.totalorder %v4446_v39, %v1383_v42 }
 0x297   : > { %3069 = vmatprep.mubr.msk.f32.mxu1 %vm1847_vm15, %v6074_v13 }
 0x298   : > { %v5166_v36 = vpop.permute.xlu1 %1454  ;;  %3070 = vmatmul.mubr.msk.f32.gmra.mrb[14].mxu1 %vm1846_vm10, %v6074_v13  ;;  %vm1848_vm10 = vcmp.eq.s32.totalorder %v4446_v39, %v4952_v46  ;;  %v6077_v46 = vld [vmem:[#allocation28_spill] sm:$0xff] }
 0x299   : > { %2618 = vst.msk [vmem:[%s4869_s18 + $0x80] sm:$0xff] %vm2601_vm1, %v5166_v36  ;;  %1582 = vperm.xlu1 %3483, %v1578_v50   ;;  %3071 = vmatprep.mubr.msk.f32.mxu1 %vm1849_vm14, %v6074_v13  ;;  %vm6078_vm14 = vcmp.le.f32.partialorder %v4375_v27, %v6077_v46  ;;  %v1642_v46 = vsel %vm1640_vm3, %v4446_v39, %v4464_v7 }
 0x29a   : > { %1819 = vmin.index.xlane.f32.xlu0 %v1817_v48 }
 0x29c   : > { %3072 = vmatmul.mubr.msk.f32.gmra.mrb[16].mxu1 %vm1848_vm10, %v6074_v13  ;;  %vm1853_vm10 = vcmp.eq.s32.totalorder %v4464_v7, %v4976_v60 }
 0x29d   : > { %3484 = vset.pattern.permute.xlu1 %v4861_v54  ;;  %v1399_v18 = vpop.permute.xlu0 %1398  ;;  %v1586_v54 = vsel %vm6078_vm14, %v4446_v39, %v4464_v7  ;;  %vm1854_vm14 = vcmp.eq.s32.totalorder %v4446_v39, %v4996_v62 }
 0x29e   : > { %2611 = vst.msk [vmem:[%s4869_s18 + $0x48] sm:$0xff] %vm2601_vm1, %v1399_v18  ;;  %vm1851_vm13 = vcmp.eq.s32.totalorder %v4464_v7, %v1399_v18  ;;  %vm1850_vm15 = vcmp.eq.s32.totalorder %v4446_v39, %v1399_v18  ;;  %1827 = vmin.index.xlane.f32.xlu0 %v1825_v47 }
 0x29f   : > { %3073 = vmatprep.mubr.msk.f32.mxu1 %vm1851_vm13, %v6074_v13  ;;  %vm1852_vm13 = vcmp.eq.s32.totalorder %v4446_v39, %v4976_v60 }
 0x2a0   : > { %v1463_v23 = vpop.permute.xlu1 %1462  ;;  %3074 = vmatmul.mubr.msk.f32.gmra.mrb[18].mxu1 %vm1850_vm15, %v6074_v13  ;;  %vm1855_vm15 = vcmp.eq.s32.totalorder %v4464_v7, %v4996_v62 }
 0x2a1   : > { %2619 = vst.msk [vmem:[%s4869_s18 + $0x88] sm:$0xff] %vm2601_vm1, %v1463_v23  ;;  %1590 = vperm.xlu1 %3484, %v1586_v54   ;;  %3075 = vmatprep.mubr.msk.f32.mxu1 %vm1853_vm10, %v6074_v13  ;;  %vm6080_vm10 = vcmp.le.f32.partialorder %v4393_v33, %v6079_v4  ;;  %v1160_v4 = vmul.f32 2.0, %v4990_v3 }
 0x2a2   : > { %v1594_v60 = vsel %vm6080_vm10, %v4446_v39, %v4464_v7  ;;  %vm1858_vm10 = vcmp.eq.s32.totalorder %v4446_v39, %v5062_v22 }
 0x2a4   : > { %3076 = vmatmul.mubr.msk.f32.gmra.mrb[20].mxu1 %vm1852_vm13, %v6074_v13  ;;  %vm1857_vm13 = vcmp.eq.s32.totalorder %v4464_v7, %v5023_v43 }
 0x2a5   : > { %3485 = vset.pattern.permute.xlu1 %v4871_v12  ;;  %3077 = vmatprep.mubr.msk.f32.mxu1 %vm1855_vm15, %v6074_v13  ;;  %vm1856_vm15 = vcmp.eq.s32.totalorder %v4446_v39, %v5023_v43  ;;  %v1602_v43 = vsel %vm1600_vm11, %v4446_v39, %v4464_v7  ;;  %vm1862_vm11 = vcmp.eq.s32.totalorder %v4446_v39, %v5136_v24 }
 0x2a8   : > { %v1471_v27 = vpop.permute.xlu1 %1470  ;;  %3078 = vmatmul.mubr.msk.f32.gmra.mrb[22].mxu1 %vm1854_vm14, %v6074_v13  ;;  %vm1859_vm14 = vcmp.eq.s32.totalorder %v4464_v7, %v5062_v22 }
 0x2a9   : > { %2620 = vst.msk [vmem:[%s4869_s18 + $0x90] sm:$0xff] %vm2601_vm1, %v1471_v27  ;;  %1598 = vperm.xlu1 %3485, %v1594_v60   ;;  %3079 = vmatprep.mubr.msk.f32.mxu1 %vm1857_vm13, %v6074_v13  ;;  %vm1861_vm13 = vcmp.eq.s32.totalorder %v4464_v7, %v5099_v16  ;;  %v1161_v60 = vmul.f32 2.0, %v4994_v30  ;;  %v1650_v30 = vsel %vm1648_vm5, %v4446_v39, %v4464_v7 }
 0x2ab   : > { %v5336_v3 = vsub.f32 %v3895_v55, %v1161_v60  ;;  %v6099_v60 = vld [vmem:[#allocation43_spill] sm:$0xff] }
 0x2ac   : > { %3080 = vmatmul.mubr.msk.f32.gmra.mrb[24].mxu1 %vm1856_vm15, %v6074_v13  ;;  %vm1860_vm15 = vcmp.eq.s32.totalorder %v4446_v39, %v5099_v16  ;;  %v1610_v16 = vsel %vm1608_vm9, %v4446_v39, %v4464_v7  ;;  %vm1866_vm9 = vcmp.eq.s32.totalorder %v4446_v39, %v1463_v23 }
 0x2ad   : > { %3486 = vset.pattern.permute.xlu1 %v4883_v2  ;;  %3081 = vmatprep.mubr.msk.f32.mxu1 %vm1859_vm14, %v6074_v13  ;;  %vm1863_vm14 = vcmp.eq.s32.totalorder %v4464_v7, %v5136_v24 }
 0x2b0   : > { %v1479_v33 = vpop.permute.xlu1 %1478  ;;  %3082 = vmatmul.mubr.msk.f32.gmra.mrb[26].mxu1 %vm1858_vm10, %v6074_v13  ;;  %vm1865_vm10 = vcmp.eq.s32.totalorder %v4464_v7, %v5166_v36 }
 0x2b1   : > { %2621 = vst.msk [vmem:[%s4869_s18 + $0x98] sm:$0xff] %vm2601_vm1, %v1479_v33  ;;  %1606 = vperm.xlu1 %3486, %v1602_v43   ;;  %3083 = vmatprep.mubr.msk.f32.mxu1 %vm1861_vm13, %v6074_v13  ;;  %vm1864_vm13 = vcmp.eq.s32.totalorder %v4446_v39, %v5166_v36 }
 0x2b4   : > { %3084 = vmatmul.mubr.msk.f32.gmra.mrb[28].mxu1 %vm1860_vm15, %v6074_v13  ;;  %vm1867_vm15 = vcmp.eq.s32.totalorder %v4464_v7, %v1463_v23 }
 0x2b5   : > { %3487 = vset.pattern.permute.xlu1 %v4893_v44  ;;  %3085 = vmatprep.mubr.msk.f32.mxu1 %vm1863_vm14, %v6074_v13  ;;  %v6084_v44 = vld [vmem:[#allocation33_spill] sm:$0xff] }
 0x2b6   : > { %vm6085_vm14 = vcmp.le.f32.partialorder %v4454_v9, %v6084_v44 }
 0x2b7   : > { %v1618_v24 = vsel %vm6085_vm14, %v4446_v39, %v4464_v7 }
 0x2b8   : > { %v1487_v2 = vpop.permute.xlu1 %1486  ;;  %3086 = vmatmul.mubr.msk.f32.gmra.mrb[30].mxu1 %vm1862_vm11, %v6074_v13  ;;  %vm1869_vm11 = vcmp.eq.s32.totalorder %v4464_v7, %v1471_v27 }
 0x2b9   : > { %2622 = vst.msk [vmem:[%s4869_s18 + $0xa0] sm:$0xff] %vm2601_vm1, %v1487_v2  ;;  %1614 = vperm.xlu1 %3487, %v1610_v16   ;;  %3087 = vmatprep.mubr.msk.f32.mxu1 %vm1865_vm10, %v6074_v13  ;;  %vm1868_vm10 = vcmp.eq.s32.totalorder %v4446_v39, %v1471_v27  ;;  %vm1872_vm14 = vcmp.eq.s32.totalorder %v4446_v39, %v1487_v2 }
 0x2bc   : > { %3088 = vmatmul.mubr.msk.f32.gmra.mrb[32].mxu1 %vm1864_vm13, %v6074_v13  ;;  %vm1871_vm13 = vcmp.eq.s32.totalorder %v4464_v7, %v1479_v33 }
 0x2bd   : > { %3488 = vset.pattern.permute.xlu1 %v5148_v1  ;;  %3089 = vmatprep.mubr.msk.f32.mxu1 %vm1867_vm15, %v6074_v13  ;;  %vm1870_vm15 = vcmp.eq.s32.totalorder %v4446_v39, %v1479_v33  ;;  %v1626_v1 = vsel %vm1624_vm0, %v4446_v39, %v4464_v7  ;;  %v5333_v33 = vsub.f32 %v3893_v53, %v1160_v4 }
 0x2bf   : > { %vm1760_vm3 = vcmp.le.f32.partialorder %v5333_v33, %v5336_v3 }
 0x2c0   : > { %v1495_v45 = vpop.permute.xlu1 %1494  ;;  %3090 = vmatmul.mubr.msk.f32.gmra.mrb[34].mxu1 %vm1866_vm9, %v6074_v13  ;;  %vm1873_vm9 = vcmp.eq.s32.totalorder %v4464_v7, %v1487_v2  ;;  %v5354_v53 = vsel %vm1760_vm3, %v5333_v33, %v5336_v3 }
 0x2c1   : > { %2623 = vst.msk [vmem:[%s4869_s18 + $0xa8] sm:$0xff] %vm2601_vm1, %v1495_v45  ;;  %1622 = vperm.xlu1 %3488, %v1618_v24   ;;  %3091 = vmatprep.mubr.msk.f32.mxu1 %vm1869_vm11, %v6074_v13  ;;  %vm1875_vm11 = vcmp.eq.s32.totalorder %v4464_v7, %v1495_v45 }
 0x2c4   : > { %3092 = vmatmul.mubr.msk.f32.gmra.mrb[36].mxu1 %vm1868_vm10, %v6074_v13  ;;  %vm1874_vm10 = vcmp.eq.s32.totalorder %v4446_v39, %v1495_v45 }
 0x2c5   : > { %3093 = vmatprep.mubr.msk.f32.mxu1 %vm1871_vm13, %v6074_v13 }
 0x2c8   : > { %v1503_v20 = vpop.permute.xlu1 %1502  ;;  %3094 = vmatmul.mubr.msk.f32.gmra.mrb[38].mxu1 %vm1870_vm15, %v6074_v13 }
 0x2c9   : > { %2624 = vst.msk [vmem:[%s4869_s18 + $0xb0] sm:$0xff] %vm2601_vm1, %v1503_v20  ;;  %3095 = vmatprep.mubr.msk.f32.mxu1 %vm1873_vm9, %v6074_v13  ;;  %vm1877_vm13 = vcmp.eq.s32.totalorder %v4464_v7, %v1503_v20  ;;  %vm1876_vm15 = vcmp.eq.s32.totalorder %v4446_v39, %v1503_v20  ;;  %vm6088_vm9 = vcmp.le.f32.partialorder %v4489_v10, %v6087_v25 }
 0x2ca   : > { %v1628_v9 = vpop.xlane.xlu0 %1627  ;;  %v1634_v40 = vsel %vm6088_vm9, %v4446_v39, %v4464_v7 }
 0x2cb   : > { %3489 = vset.pattern.permute.xlu1 %v1628_v9  ;;  %v6091_v9 = vld [vmem:[#allocation38_spill] sm:$0xff] }
 0x2cc   : > { %3096 = vmatmul.mubr.msk.f32.gmra.mrb[40].mxu1 %vm1872_vm14, %v6074_v13  ;;  %vm6092_vm7 = vcmp.le.f32.partialorder %v6090_v58, %v6091_v9 }
 0x2cd   : > { %3097 = vmatprep.mubr.msk.f32.mxu1 %vm1875_vm11, %v6074_v13  ;;  %v1690_v48 = vsel %vm6092_vm7, %v4446_v39, %v4464_v7 }
 0x2ce   : > { %v1636_v47 = vpop.xlane.xlu0 %1635 }
 0x2cf   : > { %1630 = vperm.xlu1 %3489, %v1626_v1  }
 0x2d0   : > { %v1511_v42 = vpop.permute.xlu1 %1510  ;;  %3098 = vmatmul.mubr.msk.f32.gmra.mrb[42].mxu1 %vm1874_vm10, %v6074_v13 }
 0x2d1   : > { %2625 = vst.msk [vmem:[%s4869_s18 + $0xb8] sm:$0xff] %vm2601_vm1, %v1511_v42  ;;  %3099 = vmatprep.mubr.msk.f32.mxu1 %vm1877_vm13, %v6074_v13  ;;  %vm1879_vm0 = vcmp.eq.s32.totalorder %v4464_v7, %v1511_v42  ;;  %vm1878_vm14 = vcmp.eq.s32.totalorder %v4446_v39, %v1511_v42  ;;  %v6094_v42 = vld [vmem:[#allocation40_spill] sm:$0xff] }
 0x2d2   : > { %v1644_v36 = vpop.xlane.xlu0 %1643  ;;  %vm6095_vm12 = vcmp.le.f32.partialorder %v6093_v31, %v6094_v42  ;;  %v6114_v31 = vld [vmem:[#allocation2_spill] sm:$0xff]  ;;  %v6115_v42 = vld [vmem:[#allocation3_spill] sm:$0xff] }
 0x2d3   : > { %3490 = vset.pattern.permute.xlu1 %v1636_v47 }
 0x2d4   : > { %3100 = vmatmul.mubr.msk.f32.gmra.mrb[44].mxu1 %vm1876_vm15, %v6074_v13 }
 0x2d5   : > { %3101 = vmatprep.mubr.msk.f32.mxu1 %vm1879_vm0, %v6074_v13 }
 0x2d6   : > { %v1652_v50 = vpop.xlane.xlu0 %1651 }
 0x2d7   : > { %1638 = vperm.xlu1 %3490, %v1634_v40  }
 0x2d8   : > { %v1519_v18 = vpop.permute.xlu1 %1518  ;;  %3102 = vmatmul.mubr.msk.f32.gmra.mrb[46].mxu1 %vm1878_vm14, %v6074_v13 }
 0x2d9   : > { %2626 = vst.msk [vmem:[%s4869_s18 + $0xc0] sm:$0xff] %vm2601_vm1, %v1519_v18  ;;  %vm1881_vm11 = vcmp.eq.s32.totalorder %v4464_v7, %v1519_v18  ;;  %vm1880_vm10 = vcmp.eq.s32.totalorder %v4446_v39, %v1519_v18  ;;  %v6096_v18 = vld [vmem:[#allocation41_spill] sm:$0xff] }
 0x2da   : > { %3103 = vmatprep.mubr.msk.f32.mxu1 %vm1881_vm11, %v6074_v13  ;;  %v1660_v23 = vpop.xlane.xlu0 %1659 }
 0x2db   : > { %3491 = vset.pattern.permute.xlu1 %v1644_v36  ;;  %v1698_v36 = vsel %vm6095_vm12, %v4446_v39, %v4464_v7 }
 0x2dc   : > { %3104 = vmatmul.mubr.msk.f32.gmra.mrb[48].mxu1 %vm1880_vm10, %v6074_v13 }
 0x2de   : > { %v1668_v54 = vpop.xlane.xlu0 %1667 }
 0x2df   : > { %1646 = vperm.xlu1 %3491, %v1642_v46  }
 0x2e0   : > { %v1527_v27 = vpop.permute.xlu1 %1526 }
 0x2e1   : > { %2627 = vst.msk [vmem:[%s4869_s18 + $0xc8] sm:$0xff] %vm2601_vm1, %v1527_v27  ;;  %vm1883_vm13 = vcmp.eq.s32.totalorder %v4464_v7, %v1527_v27  ;;  %vm1882_vm15 = vcmp.eq.s32.totalorder %v4446_v39, %v1527_v27 }
 0x2e2   : > { %3105 = vmatprep.mubr.msk.f32.mxu1 %vm1883_vm13, %v6074_v13  ;;  %v1676_v15 = vpop.xlane.xlu0 %1675 }
 0x2e3   : > { %3106 = vmatmul.mubr.msk.f32.gmra.mrb[50].mxu1 %vm1882_vm15, %v6074_v13  ;;  %3492 = vset.pattern.permute.xlu1 %v1652_v50 }
 0x2e6   : > { %v1684_v12 = vpop.xlane.xlu0 %1683 }
 0x2e7   : > { %1654 = vperm.xlu1 %3492, %v1650_v30  }
 0x2e8   : > { %v1535_v62 = vpop.permute.xlu1 %1534 }
 0x2e9   : > { %2628 = vst.msk [vmem:[%s4869_s18 + $0xd0] sm:$0xff] %vm2601_vm1, %v1535_v62  ;;  %vm1885_vm0 = vcmp.eq.s32.totalorder %v4464_v7, %v1535_v62  ;;  %vm1884_vm9 = vcmp.eq.s32.totalorder %v4446_v39, %v1535_v62 }
 0x2ea   : > { %3107 = vmatprep.mubr.msk.f32.mxu1 %vm1885_vm0, %v6074_v13  ;;  %v1692_v55 = vpop.xlane.xlu0 %1691 }
 0x2eb   : > { %3108 = vmatmul.mubr.msk.f32.gmra.mrb[52].mxu1 %vm1884_vm9, %v6074_v13  ;;  %3493 = vset.pattern.permute.xlu1 %v1660_v23  ;;  %v6097_v23 = vld [vmem:[#allocation42_spill] sm:$0xff] }
 0x2ee   : > { %v1700_v49 = vpop.xlane.xlu0 %1699 }
 0x2ef   : > { %1662 = vperm.xlu1 %3493, %v1658_v26  }
 0x2f0   : > { %v1543_v43 = vpop.permute.xlu1 %1542 }
 0x2f1   : > { %2629 = vst.msk [vmem:[%s4869_s18 + $0xd8] sm:$0xff] %vm2601_vm1, %v1543_v43  ;;  %vm1887_vm5 = vcmp.eq.s32.totalorder %v4464_v7, %v1543_v43  ;;  %vm1886_vm14 = vcmp.eq.s32.totalorder %v4446_v39, %v1543_v43 }
 0x2f2   : > { %3109 = vmatprep.mubr.msk.f32.mxu1 %vm1887_vm5, %v6074_v13  ;;  %v1708_v2 = vpop.xlane.xlu0 %1707 }
 0x2f3   : > { %3110 = vmatmul.mubr.msk.f32.gmra.mrb[54].mxu1 %vm1886_vm14, %v6074_v13  ;;  %3494 = vset.pattern.permute.xlu1 %v1668_v54  ;;  %vm6098_vm14 = vcmp.le.f32.partialorder %v6096_v18, %v6097_v23  ;;  %v6119_v23 = vld [vmem:[#allocation5_spill] sm:$0xff] }
 0x2f4   : > { %v1706_v10 = vsel %vm6098_vm14, %v4446_v39, %v4464_v7 }
 0x2f6   : > { %v5374_v28 = vpop.xlane.xlu0 %1715 }
 0x2f7   : > { %1670 = vperm.xlu1 %3494, %v1666_v61  }
 0x2f8   : > { %v1551_v22 = vpop.permute.xlu1 %1550 }
 0x2f9   : > { %2630 = vst.msk [vmem:[%s4869_s18 + $0xe0] sm:$0xff] %vm2601_vm1, %v1551_v22  ;;  %vm1889_vm2 = vcmp.eq.s32.totalorder %v4464_v7, %v1551_v22  ;;  %vm1888_vm11 = vcmp.eq.s32.totalorder %v4446_v39, %v1551_v22  ;;  %v6105_v22 = vld [vmem:[#allocation46_spill] sm:$0xff] }
 0x2fa   : > { %3111 = vmatprep.mubr.msk.f32.mxu1 %vm1889_vm2, %v6074_v13  ;;  %v5382_v16 = vpop.xlane.xlu0 %1723 }
 0x2fb   : > { %3112 = vmatmul.mubr.msk.f32.gmra.mrb[56].mxu1 %vm1888_vm11, %v6074_v13  ;;  %3495 = vset.pattern.permute.xlu1 %v1676_v15  ;;  %v6100_v15 = vld [vmem:[#allocation44_spill] sm:$0xff] }
 0x2fe   : > { %v5389_v51 = vpop.xlane.xlu0 %1731 }
 0x2ff   : > { %1678 = vperm.xlu1 %3495, %v1674_v17  }
 0x300   : > { %v1559_v45 = vpop.permute.xlu1 %1558 }
 0x301   : > { %2631 = vst.msk [vmem:[%s4869_s18 + $0xe8] sm:$0xff] %vm2601_vm1, %v1559_v45  ;;  %vm1891_vm4 = vcmp.eq.s32.totalorder %v4464_v7, %v1559_v45  ;;  %vm1890_vm10 = vcmp.eq.s32.totalorder %v4446_v39, %v1559_v45 }
 0x302   : > { %3113 = vmatprep.mubr.msk.f32.mxu1 %vm1891_vm4, %v6074_v13  ;;  %v5397_v44 = vpop.xlane.xlu0 %1739  ;;  %vm6101_vm4 = vcmp.le.f32.partialorder %v6099_v60, %v6100_v15 }
 0x303   : > { %3114 = vmatmul.mubr.msk.f32.gmra.mrb[58].mxu1 %vm1890_vm10, %v6074_v13  ;;  %3496 = vset.pattern.permute.xlu1 %v1684_v12  ;;  %v1714_v30 = vsel %vm6101_vm4, %v4446_v39, %v4464_v7  ;;  %vm6102_vm10 = vcmask 261120  }
 0x304   : > { %vm6103_vm7 = vmmov %vm6102_vm10 }
 0x306   : > { %v5404_v5 = vpop.xlane.xlu0 %1747 }
 0x307   : > { %1686 = vperm.xlu1 %3496, %v1682_v38  }
 0x308   : > { %v1567_v24 = vpop.permute.xlu1 %1566 }
 0x309   : > { %2632 = vst.msk [vmem:[%s4869_s18 + $0xf0] sm:$0xff] %vm2601_vm1, %v1567_v24  ;;  %vm1893_vm6 = vcmp.eq.s32.totalorder %v4464_v7, %v1567_v24  ;;  %vm1892_vm13 = vcmp.eq.s32.totalorder %v4446_v39, %v1567_v24  ;;  %v6109_v24 = vld [vmem:[#allocation47_spill] sm:$0xff] }
 0x30a   : > { %3115 = vmatprep.mubr.msk.f32.mxu1 %vm1893_vm6, %v6074_v13  ;;  %v1756_v20 = vpop.xlane.xlu0 %1755 }
 0x30b   : > { %3116 = vmatmul.mubr.msk.f32.gmra.mrb[60].mxu1 %vm1892_vm13, %v6074_v13  ;;  %3497 = vset.pattern.permute.xlu1 %v1692_v55 }
 0x30c   : > { %3505 = vset.pattern.permute.xlu0 %v1756_v20  ;;  %v6110_v20 = vld [vmem:[#allocation48_spill] sm:$0xff] }
 0x30e   : > { %v5422_v1 = vpop.xlane.xlu0 %1771 }
 0x30f   : > { %1694 = vperm.xlu1 %3497, %v1690_v48  }
 0x310   : > { %v1575_v47 = vpop.permute.xlu1 %1574  ;;  %1758 = vperm.xlu0 %3505, %v1754_v56  }
 0x311   : > { %2633 = vst.msk [vmem:[%s4869_s18 + $0xf8] sm:$0xff] %vm2601_vm1, %v1575_v47  ;;  %vm1895_vm15 = vcmp.eq.s32.totalorder %v4464_v7, %v1575_v47  ;;  %vm1894_vm0 = vcmp.eq.s32.totalorder %v4446_v39, %v1575_v47 }
 0x312   : > { %3117 = vmatprep.mubr.msk.f32.mxu1 %vm1895_vm15, %v6074_v13  ;;  %v5430_v11 = vpop.xlane.xlu0 %1779 }
 0x313   : > { %3118 = vmatmul.mubr.msk.f32.gmra.mrb[62].mxu1 %vm1894_vm0, %v6074_v13  ;;  %3498 = vset.pattern.permute.xlu1 %v1700_v49  ;;  %vm6107_vm0 = vmmov %vm6103_vm7 }
 0x314   : > { %vm6112_vm14 = vmmov %vm6107_vm0 }
 0x315   : > { %vm6113_vm4 = vmmov %vm6107_vm0 }
 0x316   : > { %v5437_v25 = vpop.xlane.xlu0 %1787 }
 0x317   : > { %1702 = vperm.xlu1 %3498, %v1698_v36  }
 0x318   : > { %v1583_v40 = vpop.permute.xlu1 %1582 }
 0x319   : > { %2634 = vst.msk [vmem:[%s4869_s18 + $0x100] sm:$0xff] %vm2601_vm1, %v1583_v40  ;;  %vm1897_vm9 = vcmp.eq.s32.totalorder %v4464_v7, %v1583_v40  ;;  %vm1896_vm5 = vcmp.eq.s32.totalorder %v4446_v39, %v1583_v40 }
 0x31a   : > { %3119 = vmatprep.mubr.msk.f32.mxu1 %vm1897_vm9, %v6074_v13  ;;  %v5445_v50 = vpop.xlane.xlu0 %1795  ;;  %vm6108_vm9 = vmmov %vm6107_vm0 }
 0x31b   : > { %3120 = vmatmul.mubr.msk.f32.gmra.mrb[64].mxu1 %vm1896_vm5, %v6074_v13  ;;  %3499 = vset.pattern.permute.xlu1 %v1708_v2  ;;  %v1826_v2 = vsel %vm1824_vm8, %v4446_v39, %v4464_v7  ;;  %vm6111_vm5 = vcmp.le.f32.partialorder %v6109_v24, %v6110_v20 }
 0x31c   : > { %v1730_v56 = vsel %vm6111_vm5, %v4446_v39, %v4464_v7 }
 0x31e   : > { %v5452_v46 = vpop.xlane.xlu0 %1803 }
 0x31f   : > { %1710 = vperm.xlu1 %3499, %v1706_v10  }
 0x320   : > { %v1591_v54 = vpop.permute.xlu1 %1590 }
 0x321   : > { %2635 = vst.msk [vmem:[%s4869_s18 + $0x108] sm:$0xff] %vm2601_vm1, %v1591_v54  ;;  %vm1899_vm2 = vcmp.eq.s32.totalorder %v4464_v7, %v1591_v54  ;;  %vm1898_vm11 = vcmp.eq.s32.totalorder %v4446_v39, %v1591_v54 }
 0x322   : > { %3121 = vmatprep.mubr.msk.f32.mxu1 %vm1899_vm2, %v6074_v13  ;;  %v5461_v27 = vpop.xlane.xlu0 %1811 }
 0x323   : > { %3122 = vmatmul.mubr.msk.f32.gmra.mrb[66].mxu1 %vm1898_vm11, %v6074_v13  ;;  %3500 = vset.pattern.permute.xlu1 %v5374_v28  ;;  %v6104_v28 = vld [vmem:[#allocation45_spill] sm:$0xff] }
 0x324   : > { %vm6106_vm15 = vcmp.le.f32.partialorder %v6104_v28, %v6105_v22 }
 0x325   : > { %v1722_v17 = vsel %vm6106_vm15, %v4446_v39, %v4464_v7 }
 0x326   : > { %v2282_v4 = vpop.f32.mrb[0].mxu1 }
 0x327   : > { %2666 = vst.msk [vmem:[%s5467_s21] sm:$0xff] %vm6102_vm10, %v2282_v4  ;;  %v2284_v12 = vpop.f32.mrb[1].mxu1  ;;  %1718 = vperm.xlu1 %3500, %v1714_v30   ;;  %v5476_v62 = vpop.xlane.xlu0 %1819  ;;  %vm6116_vm10 = vcmp.le.f32.partialorder %v6114_v31, %v6115_v42 }
 0x328   : > { %v1599_v55 = vpop.permute.xlu1 %1598  ;;  %v1738_v36 = vsel %vm6116_vm10, %v4446_v39, %v4464_v7 }
 0x329   : > { %2636 = vst.msk [vmem:[%s4869_s18 + $0x110] sm:$0xff] %vm2601_vm1, %v1599_v55  ;;  %vm1901_vm6 = vcmp.eq.s32.totalorder %v4464_v7, %v1599_v55  ;;  %vm1900_vm13 = vcmp.eq.s32.totalorder %v4446_v39, %v1599_v55 }
 0x32a   : > { %v2287_v26 = vpop.f32.mrb[2].mxu1  ;;  %3123 = vmatprep.mubr.msk.f32.mxu1 %vm1901_vm6, %v6074_v13  ;;  %vm6117_vm6 = vmmov %vm6107_vm0 }
 0x32b   : > { %2667 = vst.msk [vmem:[%s5467_s21 + $0x8] sm:$0xff] %vm6103_vm7, %v2287_v26  ;;  %v2289_v49 = vpop.f32.mrb[3].mxu1  ;;  %3124 = vmatmul.mubr.msk.f32.gmra.mrb[68].mxu1 %vm1900_vm13, %v6074_v13  ;;  %3501 = vset.pattern.permute.xlu1 %v5382_v16  ;;  %v1828_v43 = vpop.xlane.xlu0 %1827 }
 0x32c   : > { %3514 = vset.pattern.permute.xlu0 %v1828_v43 }
 0x32e   : > { %v2292_v61 = vpop.f32.mrb[4].mxu1 }
 0x32f   : > { %2668 = vst.msk [vmem:[%s5467_s21 + $0x10] sm:$0xff] %vm6107_vm0, %v2292_v61  ;;  %v2294_v16 = vpop.f32.mrb[5].mxu1  ;;  %1726 = vperm.xlu1 %3501, %v1722_v17  }
 0x330   : > { %v1607_v45 = vpop.permute.xlu1 %1606  ;;  %1830 = vperm.xlu0 %3514, %v1826_v2  }
 0x331   : > { %2637 = vst.msk [vmem:[%s4869_s18 + $0x118] sm:$0xff] %vm2601_vm1, %v1607_v45  ;;  %vm1903_vm12 = vcmp.eq.s32.totalorder %v4464_v7, %v1607_v45  ;;  %vm1902_vm8 = vcmp.eq.s32.totalorder %v4446_v39, %v1607_v45 }
 0x332   : > { %v2297_v0 = vpop.f32.mrb[6].mxu1  ;;  %3125 = vmatprep.mubr.msk.f32.mxu1 %vm1903_vm12, %v6074_v13 }
 0x333   : > { %2669 = vst.msk [vmem:[%s5467_s21 + $0x18] sm:$0xff] %vm6108_vm9, %v2297_v0  ;;  %v2299_v35 = vpop.f32.mrb[7].mxu1  ;;  %3126 = vmatmul.mubr.msk.f32.gmra.mrb[70].mxu1 %vm1902_vm8, %v6074_v13  ;;  %3502 = vset.pattern.permute.xlu1 %v5389_v51 }
 0x336   : > { %v2302_v38 = vpop.f32.mrb[8].mxu1 }
 0x337   : > { %2670 = vst.msk [vmem:[%s5467_s21 + $0x20] sm:$0xff] %vm6112_vm14, %v2302_v38  ;;  %v2304_v58 = vpop.f32.mrb[9].mxu1  ;;  %1734 = vperm.xlu1 %3502, %v1730_v56  }
 0x338   : > { %v1615_v9 = vpop.permute.xlu1 %1614 }
 0x339   : > { %2638 = vst.msk [vmem:[%s4869_s18 + $0x120] sm:$0xff] %vm2601_vm1, %v1615_v9  ;;  %vm1905_vm2 = vcmp.eq.s32.totalorder %v4464_v7, %v1615_v9  ;;  %vm1904_vm11 = vcmp.eq.s32.totalorder %v4446_v39, %v1615_v9 }
 0x33a   : > { %v2307_v51 = vpop.f32.mrb[10].mxu1  ;;  %3127 = vmatprep.mubr.msk.f32.mxu1 %vm1905_vm2, %v6074_v13 }
 0x33b   : > { %2671 = vst.msk [vmem:[%s5467_s21 + $0x28] sm:$0xff] %vm6113_vm4, %v2307_v51  ;;  %v2309_v48 = vpop.f32.mrb[11].mxu1  ;;  %3128 = vmatmul.mubr.msk.f32.gmra.mrb[72].mxu1 %vm1904_vm11, %v6074_v13  ;;  %3503 = vset.pattern.permute.xlu1 %v5397_v44  ;;  %v6118_v44 = vld [vmem:[#allocation4_spill] sm:$0xff] }
 0x33c   : > { %vm6120_vm15 = vcmp.le.f32.partialorder %v6118_v44, %v6119_v23 }
 0x33d   : > { %v1746_v10 = vsel %vm6120_vm15, %v4446_v39, %v4464_v7 }
 0x33e   : > { %v2312_v47 = vpop.f32.mrb[12].mxu1 }
 0x33f   : > { %2672 = vst.msk [vmem:[%s5467_s21 + $0x30] sm:$0xff] %vm6117_vm6, %v2312_v47  ;;  %v2314_v40 = vpop.f32.mrb[13].mxu1  ;;  %1742 = vperm.xlu1 %3503, %v1738_v36  }
 0x340   : > { %v1623_v18 = vpop.permute.xlu1 %1622 }
 0x341   : > { %2639 = vst.msk [vmem:[%s4869_s18 + $0x128] sm:$0xff] %vm2601_vm1, %v1623_v18  ;;  %vm1907_vm13 = vcmp.eq.s32.totalorder %v4464_v7, %v1623_v18  ;;  %vm1906_vm7 = vcmp.eq.s32.totalorder %v4446_v39, %v1623_v18 }
 0x342   : > { %3129 = vmatprep.mubr.msk.f32.mxu1 %vm1907_vm13, %v6074_v13  ;;  %vm6121_vm13 = vmmov %vm6113_vm4 }
 0x343   : > { %3130 = vmatmul.mubr.msk.f32.gmra.mrb[74].mxu1 %vm1906_vm7, %v6074_v13  ;;  %3504 = vset.pattern.permute.xlu1 %v5404_v5  ;;  %vm6122_vm7 = vmmov %vm6113_vm4 }
 0x347   : > { %1750 = vperm.xlu1 %3504, %v1746_v10  }
 0x34e   : > { %v1631_v54 = vpop.permute.xlu1 %1630 }
 0x34f   : > { %2640 = vst.msk [vmem:[%s4869_s18 + $0x130] sm:$0xff] %vm2601_vm1, %v1631_v54  ;;  %vm1909_vm0 = vcmp.eq.s32.totalorder %v4464_v7, %v1631_v54  ;;  %vm1908_vm12 = vcmp.eq.s32.totalorder %v4446_v39, %v1631_v54 }
 0x350   : > { %3131 = vmatprep.mubr.msk.f32.mxu1 %vm1909_vm0, %v6074_v13 }
 0x351   : > { %3132 = vmatmul.mubr.msk.f32.gmra.mrb[76].mxu1 %vm1908_vm12, %v6074_v13  ;;  %vm6123_vm12 = vmmov %vm6113_vm4 }
 0x356   : > { %v1639_v5 = vpop.permute.xlu1 %1638 }
 0x357   : > { %2641 = vst.msk [vmem:[%s4869_s18 + $0x138] sm:$0xff] %vm2601_vm1, %v1639_v5  ;;  %vm1911_vm8 = vcmp.eq.s32.totalorder %v4464_v7, %v1639_v5  ;;  %vm1910_vm9 = vcmp.eq.s32.totalorder %v4446_v39, %v1639_v5 }
 0x358   : > { %3133 = vmatprep.mubr.msk.f32.mxu1 %vm1911_vm8, %v6074_v13  ;;  %vm6124_vm8 = vmmov %vm6113_vm4 }
 0x359   : > { %3134 = vmatmul.mubr.msk.f32.gmra.mrb[78].mxu1 %vm1910_vm9, %v6074_v13 }
 0x35e   : > { %v1647_v4 = vpop.permute.xlu1 %1646 }
 0x35f   : > { %2642 = vst.msk [vmem:[%s4869_s18 + $0x140] sm:$0xff] %vm2601_vm1, %v1647_v4  ;;  %vm1913_vm5 = vcmp.eq.s32.totalorder %v4464_v7, %v1647_v4  ;;  %vm1912_vm14 = vcmp.eq.s32.totalorder %v4446_v39, %v1647_v4 }
 0x360   : > { %3135 = vmatprep.mubr.msk.f32.mxu1 %vm1913_vm5, %v6074_v13 }
 0x361   : > { %3136 = vmatmul.mubr.msk.f32.gmra.mrb[80].mxu1 %vm1912_vm14, %v6074_v13  ;;  %vm6125_vm14 = vmmov %vm6113_vm4 }
 0x366   : > { %v1655_v60 = vpop.permute.xlu1 %1654 }
 0x367   : > { %2643 = vst.msk [vmem:[%s4869_s18 + $0x148] sm:$0xff] %vm2601_vm1, %v1655_v60  ;;  %vm1915_vm2 = vcmp.eq.s32.totalorder %v4464_v7, %v1655_v60  ;;  %vm1914_vm11 = vcmp.eq.s32.totalorder %v4446_v39, %v1655_v60 }
 0x368   : > { %3137 = vmatprep.mubr.msk.f32.mxu1 %vm1915_vm2, %v6074_v13  ;;  %vm6126_vm2 = vmmov %vm6113_vm4 }
 0x369   : > { %3138 = vmatmul.mubr.msk.f32.gmra.mrb[82].mxu1 %vm1914_vm11, %v6074_v13 }
 0x36b   : > { %v2317_v15 = vpop.f32.mrb[14].mxu1  ;;  %1763 = vmin.index.xlane.f32.xlu1 %v5354_v53 }
 0x36c   : > { %2673 = vst.msk [vmem:[%s5467_s21 + $0x38] sm:$0xff] %vm6113_vm4, %v2317_v15  ;;  %v2319_v30 = vpop.f32.mrb[15].mxu1 }
 0x36e   : > { %v1663_v12 = vpop.permute.xlu1 %1662 }
 0x36f   : > { %2644 = vst.msk [vmem:[%s4869_s18 + $0x150] sm:$0xff] %vm2601_vm1, %v1663_v12  ;;  %v2322_v55 = vpop.f32.mrb[16].mxu1  ;;  %vm1917_vm10 = vcmp.eq.s32.totalorder %v4464_v7, %v1663_v12  ;;  %vm1916_vm6 = vcmp.eq.s32.totalorder %v4446_v39, %v1663_v12 }
 0x370   : > { %2674 = vst.msk [vmem:[%s5467_s21 + $0x40] sm:$0xff] %vm6121_vm13, %v2322_v55  ;;  %v2324_v26 = vpop.f32.mrb[17].mxu1  ;;  %3139 = vmatprep.mubr.msk.f32.mxu1 %vm1917_vm10, %v6074_v13  ;;  %vm6127_vm10 = vmmov %vm6126_vm2 }
 0x371   : > { %3140 = vmatmul.mubr.msk.f32.gmra.mrb[84].mxu1 %vm1916_vm6, %v6074_v13  ;;  %vm6128_vm6 = vmmov %vm6126_vm2 }
 0x373   : > { %v2327_v53 = vpop.f32.mrb[18].mxu1 }
 0x374   : > { %2675 = vst.msk [vmem:[%s5467_s21 + $0x48] sm:$0xff] %vm6122_vm7, %v2327_v53  ;;  %v2329_v49 = vpop.f32.mrb[19].mxu1 }
 0x376   : > { %v1671_v43 = vpop.permute.xlu1 %1670 }
 0x377   : > { %2645 = vst.msk [vmem:[%s4869_s18 + $0x158] sm:$0xff] %vm2601_vm1, %v1671_v43  ;;  %v2332_v2 = vpop.f32.mrb[20].mxu1  ;;  %vm1919_vm15 = vcmp.eq.s32.totalorder %v4464_v7, %v1671_v43  ;;  %vm1918_vm0 = vcmp.eq.s32.totalorder %v4446_v39, %v1671_v43 }
 0x378   : > { %2676 = vst.msk [vmem:[%s5467_s21 + $0x50] sm:$0xff] %vm6123_vm12, %v2332_v2  ;;  %v2334_v61 = vpop.f32.mrb[21].mxu1  ;;  %3141 = vmatprep.mubr.msk.f32.mxu1 %vm1919_vm15, %v6074_v13  ;;  %vm6129_vm15 = vmmov %vm6126_vm2 }
 0x379   : > { %3142 = vmatmul.mubr.msk.f32.gmra.mrb[86].mxu1 %vm1918_vm0, %v6074_v13  ;;  %vm6130_vm0 = vmmov %vm6126_vm2 }
 0x37b   : > { %v2337_v28 = vpop.f32.mrb[22].mxu1 }
 0x37c   : > { %2677 = vst.msk [vmem:[%s5467_s21 + $0x58] sm:$0xff] %vm6124_vm8, %v2337_v28  ;;  %v2339_v22 = vpop.f32.mrb[23].mxu1 }
 0x37e   : > { %v1679_v17 = vpop.permute.xlu1 %1678 }
 0x37f   : > { %2646 = vst.msk [vmem:[%s4869_s18 + $0x160] sm:$0xff] %vm2601_vm1, %v1679_v17  ;;  %v2342_v16 = vpop.f32.mrb[24].mxu1  ;;  %vm1921_vm9 = vcmp.eq.s32.totalorder %v4464_v7, %v1679_v17  ;;  %vm1920_vm5 = vcmp.eq.s32.totalorder %v4446_v39, %v1679_v17 }
 0x380   : > { %2678 = vst.msk [vmem:[%s5467_s21 + $0x60] sm:$0xff] %vm6125_vm14, %v2342_v16  ;;  %v2344_v45 = vpop.f32.mrb[25].mxu1  ;;  %3143 = vmatprep.mubr.msk.f32.mxu1 %vm1921_vm9, %v6074_v13  ;;  %vm6131_vm9 = vmmov %vm6130_vm0 }
 0x381   : > { %3144 = vmatmul.mubr.msk.f32.gmra.mrb[88].mxu1 %vm1920_vm5, %v6074_v13  ;;  %vm6132_vm5 = vmmov %vm6130_vm0 }
 0x383   : > { %v2347_v0 = vpop.f32.mrb[26].mxu1 }
 0x384   : > { %2679 = vst.msk [vmem:[%s5467_s21 + $0x68] sm:$0xff] %vm6126_vm2, %v2347_v0  ;;  %v2349_v35 = vpop.f32.mrb[27].mxu1 }
 0x386   : > { %v1687_v38 = vpop.permute.xlu1 %1686 }
 0x387   : > { %2647 = vst.msk [vmem:[%s4869_s18 + $0x168] sm:$0xff] %vm2601_vm1, %v1687_v38  ;;  %v2352_v24 = vpop.f32.mrb[28].mxu1  ;;  %vm1923_vm11 = vcmp.eq.s32.totalorder %v4464_v7, %v1687_v38  ;;  %vm1922_vm4 = vcmp.eq.s32.totalorder %v4446_v39, %v1687_v38 }
 0x388   : > { %2680 = vst.msk [vmem:[%s5467_s21 + $0x70] sm:$0xff] %vm6127_vm10, %v2352_v24  ;;  %v2354_v20 = vpop.f32.mrb[29].mxu1  ;;  %3145 = vmatprep.mubr.msk.f32.mxu1 %vm1923_vm11, %v6074_v13  ;;  %vm6133_vm11 = vmmov %vm6130_vm0 }
 0x389   : > { %3146 = vmatmul.mubr.msk.f32.gmra.mrb[90].mxu1 %vm1922_vm4, %v6074_v13  ;;  %vm6134_vm4 = vmmov %vm6130_vm0 }
 0x38b   : > { %v2357_v56 = vpop.f32.mrb[30].mxu1 }
 0x38c   : > { %2681 = vst.msk [vmem:[%s5467_s21 + $0x78] sm:$0xff] %vm6128_vm6, %v2357_v56  ;;  %v2359_v58 = vpop.f32.mrb[31].mxu1 }
 0x38e   : > { %v1695_v9 = vpop.permute.xlu1 %1694 }
 0x38f   : > { %2648 = vst.msk [vmem:[%s4869_s18 + $0x170] sm:$0xff] %vm2601_vm1, %v1695_v9  ;;  %v2362_v51 = vpop.f32.mrb[32].mxu1  ;;  %vm1925_vm13 = vcmp.eq.s32.totalorder %v4464_v7, %v1695_v9  ;;  %vm1924_vm7 = vcmp.eq.s32.totalorder %v4446_v39, %v1695_v9  ;;  %v5614_v48 = vpop.permute.xlu0 %1758 }
 0x390   : > { %2682 = vst.msk [vmem:[%s5467_s21 + $0x80] sm:$0xff] %vm6129_vm15, %v2362_v51  ;;  %v2364_v47 = vpop.f32.mrb[33].mxu1  ;;  %3147 = vmatprep.mubr.msk.f32.mxu1 %vm1925_vm13, %v6074_v13  ;;  %vm6135_vm13 = vmmov %vm6130_vm0 }
 0x391   : > { %2656 = vst.msk [vmem:[%s4869_s18 + $0x1b0] sm:$0xff] %vm2601_vm1, %v5614_v48  ;;  %3148 = vmatmul.mubr.msk.f32.gmra.mrb[92].mxu1 %vm1924_vm7, %v6074_v13  ;;  %vm6136_vm7 = vmmov %vm6130_vm0 }
 0x393   : > { %v2367_v31 = vpop.f32.mrb[34].mxu1 }
 0x394   : > { %2683 = vst.msk [vmem:[%s5467_s21 + $0x88] sm:$0xff] %vm6130_vm0, %v2367_v31  ;;  %v2369_v42 = vpop.f32.mrb[35].mxu1 }
 0x396   : > { %v1703_v36 = vpop.permute.xlu1 %1702 }
 0x397   : > { %2649 = vst.msk [vmem:[%s4869_s18 + $0x178] sm:$0xff] %vm2601_vm1, %v1703_v36  ;;  %v2372_v40 = vpop.f32.mrb[36].mxu1  ;;  %vm1927_vm12 = vcmp.eq.s32.totalorder %v4464_v7, %v1703_v36  ;;  %vm1926_vm8 = vcmp.eq.s32.totalorder %v4446_v39, %v1703_v36 }
 0x398   : > { %2684 = vst.msk [vmem:[%s5467_s21 + $0x90] sm:$0xff] %vm6131_vm9, %v2372_v40  ;;  %v2374_v18 = vpop.f32.mrb[37].mxu1  ;;  %3149 = vmatprep.mubr.msk.f32.mxu1 %vm1927_vm12, %v6074_v13  ;;  %vm6137_vm12 = vmmov %vm6134_vm4 }
 0x399   : > { %3150 = vmatmul.mubr.msk.f32.gmra.mrb[94].mxu1 %vm1926_vm8, %v6074_v13  ;;  %vm6138_vm8 = vmmov %vm6134_vm4 }
 0x39b   : > { %v2377_v44 = vpop.f32.mrb[38].mxu1 }
 0x39c   : > { %2685 = vst.msk [vmem:[%s5467_s21 + $0x98] sm:$0xff] %vm6132_vm5, %v2377_v44  ;;  %v2379_v23 = vpop.f32.mrb[39].mxu1  ;;  %v1762_v44 = vsel %vm1760_vm3, %v4446_v39, %v4464_v7  ;;  %vm6149_vm3 = vcmp.le.f32.partialorder %v5016_v37, %v5019_v29 }
 0x39d   : > { %v1778_v3 = vsel %vm6149_vm3, %v4446_v39, %v4464_v7 }
 0x39e   : > { %v1711_v10 = vpop.permute.xlu1 %1710 }
 0x39f   : > { %2650 = vst.msk [vmem:[%s4869_s18 + $0x180] sm:$0xff] %vm2601_vm1, %v1711_v10  ;;  %v2382_v54 = vpop.f32.mrb[40].mxu1  ;;  %vm1929_vm14 = vcmp.eq.s32.totalorder %v4464_v7, %v1711_v10  ;;  %vm1928_vm2 = vcmp.eq.s32.totalorder %v4446_v39, %v1711_v10 }
 0x3a0   : > { %2686 = vst.msk [vmem:[%s5467_s21 + $0xa0] sm:$0xff] %vm6133_vm11, %v2382_v54  ;;  %v2384_v5 = vpop.f32.mrb[41].mxu1  ;;  %3151 = vmatprep.mubr.msk.f32.mxu1 %vm1929_vm14, %v6074_v13  ;;  %vm6139_vm14 = vmmov %vm6134_vm4 }
 0x3a1   : > { %3152 = vmatmul.mubr.msk.f32.gmra.mrb[96].mxu1 %vm1928_vm2, %v6074_v13 }
 0x3a3   : > { %v2387_v4 = vpop.f32.mrb[42].mxu1 }
 0x3a4   : > { %2687 = vst.msk [vmem:[%s5467_s21 + $0xa8] sm:$0xff] %vm6134_vm4, %v2387_v4  ;;  %v2389_v60 = vpop.f32.mrb[43].mxu1 }
 0x3a6   : > { %v1719_v15 = vpop.permute.xlu1 %1718 }
 0x3a7   : > { %2651 = vst.msk [vmem:[%s4869_s18 + $0x188] sm:$0xff] %vm2601_vm1, %v1719_v15  ;;  %v2392_v30 = vpop.f32.mrb[44].mxu1  ;;  %vm1931_vm10 = vcmp.eq.s32.totalorder %v4464_v7, %v1719_v15  ;;  %vm1930_vm6 = vcmp.eq.s32.totalorder %v4446_v39, %v1719_v15 }
 0x3a8   : > { %2688 = vst.msk [vmem:[%s5467_s21 + $0xb0] sm:$0xff] %vm6135_vm13, %v2392_v30  ;;  %v2394_v12 = vpop.f32.mrb[45].mxu1  ;;  %3153 = vmatprep.mubr.msk.f32.mxu1 %vm1931_vm10, %v6074_v13  ;;  %vm1941_vm13 = vcmp.eq.s32.totalorder %v4464_v7, %v5614_v48 }
 0x3a9   : > { %3154 = vmatmul.mubr.msk.f32.gmra.mrb[98].mxu1 %vm1930_vm6, %v6074_v13 }
 0x3ab   : > { %v2397_v55 = vpop.f32.mrb[46].mxu1 }
 0x3ac   : > { %2689 = vst.msk [vmem:[%s5467_s21 + $0xb8] sm:$0xff] %vm6136_vm7, %v2397_v55  ;;  %v2399_v26 = vpop.f32.mrb[47].mxu1  ;;  %vm1940_vm7 = vcmp.eq.s32.totalorder %v4446_v39, %v5614_v48 }
 0x3ae   : > { %v1727_v53 = vpop.permute.xlu1 %1726 }
 0x3af   : > { %2652 = vst.msk [vmem:[%s4869_s18 + $0x190] sm:$0xff] %vm2601_vm1, %v1727_v53  ;;  %v2402_v49 = vpop.f32.mrb[48].mxu1  ;;  %vm1933_vm15 = vcmp.eq.s32.totalorder %v4464_v7, %v1727_v53  ;;  %vm1932_vm0 = vcmp.eq.s32.totalorder %v4446_v39, %v1727_v53  ;;  %v5659_v43 = vpop.permute.xlu0 %1830 }
 0x3b0   : > { %2690 = vst.msk [vmem:[%s5467_s21 + $0xc0] sm:$0xff] %vm6137_vm12, %v2402_v49  ;;  %v2404_v2 = vpop.f32.mrb[49].mxu1  ;;  %3155 = vmatprep.mubr.msk.f32.mxu1 %vm1933_vm15, %v6074_v13  ;;  %vm6140_vm15 = vmmov %vm6134_vm4 }
 0x3b1   : > { %2665 = vst.msk [vmem:[%s4869_s18 + $0x1f8] sm:$0xff] %vm2601_vm1, %v5659_v43  ;;  %3156 = vmatmul.mubr.msk.f32.gmra.mrb[100].mxu1 %vm1932_vm0, %v6074_v13  ;;  %vm6141_vm0 = vmmov %vm6134_vm4 }
 0x3b2   : > { %vm6142_vm12 = vmmov %vm6141_vm0 }
 0x3b6   : > { %v2407_v61 = vpop.f32.mrb[50].mxu1  ;;  %v1735_v28 = vpop.permute.xlu1 %1734 }
 0x3b7   : > { %2691 = vst.msk [vmem:[%s5467_s21 + $0xc8] sm:$0xff] %vm6138_vm8, %v2407_v61  ;;  %v2409_v22 = vpop.f32.mrb[51].mxu1  ;;  %vm1935_vm9 = vcmp.eq.s32.totalorder %v4464_v7, %v1735_v28  ;;  %vm1934_vm5 = vcmp.eq.s32.totalorder %v4446_v39, %v1735_v28  ;;  %vm6143_vm8 = vmmov %vm6141_vm0 }
 0x3b8   : > { %2653 = vst.msk [vmem:[%s4869_s18 + $0x198] sm:$0xff] %vm2601_vm1, %v1735_v28  ;;  %3157 = vmatprep.mubr.msk.f32.mxu1 %vm1935_vm9, %v6074_v13  ;;  %vm6144_vm9 = vmmov %vm6141_vm0 }
 0x3b9   : > { %3158 = vmatmul.mubr.msk.f32.gmra.mrb[102].mxu1 %vm1934_vm5, %v6074_v13  ;;  %vm6145_vm5 = vmmov %vm6141_vm0 }
 0x3be   : > { %v2412_v17 = vpop.f32.mrb[52].mxu1  ;;  %v1743_v16 = vpop.permute.xlu1 %1742 }
 0x3bf   : > { %2692 = vst.msk [vmem:[%s5467_s21 + $0xd0] sm:$0xff] %vm6139_vm14, %v2412_v17  ;;  %v2414_v45 = vpop.f32.mrb[53].mxu1  ;;  %vm1937_vm2 = vcmp.eq.s32.totalorder %v4464_v7, %v1743_v16  ;;  %vm1936_vm11 = vcmp.eq.s32.totalorder %v4446_v39, %v1743_v16  ;;  %vm6146_vm14 = vmmov %vm6141_vm0 }
 0x3c0   : > { %2654 = vst.msk [vmem:[%s4869_s18 + $0x1a0] sm:$0xff] %vm2601_vm1, %v1743_v16  ;;  %3159 = vmatprep.mubr.msk.f32.mxu1 %vm1937_vm2, %v6074_v13  ;;  %vm6147_vm2 = vcmp.le.f32.partialorder %v5008_v32, %v5012_v19 }
 0x3c1   : > { %3160 = vmatmul.mubr.msk.f32.gmra.mrb[104].mxu1 %vm1936_vm11, %v6074_v13  ;;  %v1770_v54 = vsel %vm6147_vm2, %v4446_v39, %v4464_v7  ;;  %vm6148_vm11 = vmmov %vm6141_vm0 }
 0x3c6   : > { %v2417_v0 = vpop.f32.mrb[54].mxu1  ;;  %v1751_v35 = vpop.permute.xlu1 %1750 }
 0x3c7   : > { %2693 = vst.msk [vmem:[%s5467_s21 + $0xd8] sm:$0xff] %vm6134_vm4, %v2417_v0  ;;  %v2419_v38 = vpop.f32.mrb[55].mxu1  ;;  %vm1939_vm10 = vcmp.eq.s32.totalorder %v4464_v7, %v1751_v35  ;;  %vm1938_vm6 = vcmp.eq.s32.totalorder %v4446_v39, %v1751_v35  ;;  %vm6150_vm4 = vmmov %vm6141_vm0 }
 0x3c8   : > { %2655 = vst.msk [vmem:[%s4869_s18 + $0x1a8] sm:$0xff] %vm2601_vm1, %v1751_v35  ;;  %3161 = vmatprep.mubr.msk.f32.mxu1 %vm1939_vm10, %v6074_v13  ;;  %vm6151_vm10 = vcmp.le.f32.partialorder %v5042_v21, %v5051_v59  ;;  %vm6162_vm2 = vmmov %vm6150_vm4 }
 0x3c9   : > { %3162 = vmatmul.mubr.msk.f32.gmra.mrb[106].mxu1 %vm1938_vm6, %v6074_v13  ;;  %v1786_v19 = vsel %vm6151_vm10, %v4446_v39, %v4464_v7  ;;  %vm6152_vm6 = vmmov %vm6141_vm0 }
 0x3ca   : > { %3163 = vmatprep.mubr.msk.f32.mxu1 %vm1941_vm13, %v6074_v13  ;;  %vm6153_vm13 = vcmp.le.f32.partialorder %v5055_v63, %v5058_v52  ;;  %vm6164_vm3 = vmmov %vm6162_vm2 }
 0x3cb   : > { %v1794_v29 = vsel %vm6153_vm13, %v4446_v39, %v4464_v7  ;;  %vm6166_vm10 = vmmov %vm6162_vm2 }
 0x3cc   : > { %vm6168_vm13 = vmmov %vm6162_vm2 }
 0x3cd   : > { %3164 = vmatmul.mubr.msk.f32.gmra.mrb[108].mxu1 %vm1940_vm7, %v6074_v13  ;;  %vm6154_vm7 = vcmp.le.f32.partialorder %v5080_v57, %v5089_v34 }
 0x3ce   : > { %v2422_v24 = vpop.f32.mrb[56].mxu1  ;;  %v1802_v59 = vsel %vm6154_vm7, %v4446_v39, %v4464_v7 }
 0x3cf   : > { %2694 = vst.msk [vmem:[%s5467_s21 + $0xe0] sm:$0xff] %vm6140_vm15, %v2422_v24  ;;  %v2424_v20 = vpop.f32.mrb[57].mxu1  ;;  %vm6155_vm15 = vmmov %vm6141_vm0 }
 0x3d6   : > { %v2427_v56 = vpop.f32.mrb[58].mxu1 }
 0x3d7   : > { %2695 = vst.msk [vmem:[%s5467_s21 + $0xe8] sm:$0xff] %vm6141_vm0, %v2427_v56  ;;  %v2429_v58 = vpop.f32.mrb[59].mxu1  ;;  %vm6156_vm0 = vcmp.le.f32.partialorder %v5092_v8, %v5095_v41 }
 0x3d8   : > { %v1810_v52 = vsel %vm6156_vm0, %v4446_v39, %v4464_v7  ;;  %vm6169_vm0 = vmmov %vm6162_vm2 }
 0x3de   : > { %v2432_v9 = vpop.f32.mrb[60].mxu1 }
 0x3df   : > { %2696 = vst.msk [vmem:[%s5467_s21 + $0xf0] sm:$0xff] %vm6142_vm12, %v2432_v9  ;;  %v2434_v51 = vpop.f32.mrb[61].mxu1  ;;  %vm6157_vm12 = vmmov %vm6150_vm4 }
 0x3e6   : > { %v2437_v47 = vpop.f32.mrb[62].mxu1 }
 0x3e7   : > { %2697 = vst.msk [vmem:[%s5467_s21 + $0xf8] sm:$0xff] %vm6143_vm8, %v2437_v47  ;;  %v2439_v48 = vpop.f32.mrb[63].mxu1  ;;  %vm6158_vm8 = vcmp.le.f32.partialorder %v5117_v14, %v5126_v6 }
 0x3ee   : > { %v2442_v31 = vpop.f32.mrb[64].mxu1 }
 0x3ef   : > { %2698 = vst.msk [vmem:[%s5467_s21 + $0x100] sm:$0xff] %vm6144_vm9, %v2442_v31  ;;  %v2444_v42 = vpop.f32.mrb[65].mxu1  ;;  %vm6159_vm9 = vmmov %vm6150_vm4 }
 0x3f6   : > { %v2447_v36 = vpop.f32.mrb[66].mxu1 }
 0x3f7   : > { %2699 = vst.msk [vmem:[%s5467_s21 + $0x108] sm:$0xff] %vm6145_vm5, %v2447_v36  ;;  %v2449_v40 = vpop.f32.mrb[67].mxu1  ;;  %vm6160_vm5 = vmmov %vm6150_vm4 }
 0x3f8   : > { %v1764_v18 = vpop.xlane.xlu1 %1763 }
 0x3f9   : > { %3506 = vset.pattern.permute.xlu1 %v1764_v18 }
 0x3fd   : > { %1766 = vperm.xlu1 %3506, %v1762_v44  }
 0x3fe   : > { %v2452_v23 = vpop.f32.mrb[68].mxu1 }
 0x3ff   : > { %2700 = vst.msk [vmem:[%s5467_s21 + $0x110] sm:$0xff] %vm6146_vm14, %v2452_v23  ;;  %v2454_v10 = vpop.f32.mrb[69].mxu1  ;;  %vm6161_vm14 = vmmov %vm6150_vm4 }
 0x401   : > { %3507 = vset.pattern.permute.xlu1 %v5422_v1 }
 0x405   : > { %1774 = vperm.xlu1 %3507, %v1770_v54  }
 0x406   : > { %v2457_v5 = vpop.f32.mrb[70].mxu1 }
 0x407   : > { %2701 = vst.msk [vmem:[%s5467_s21 + $0x118] sm:$0xff] %vm6148_vm11, %v2457_v5  ;;  %v2459_v33 = vpop.f32.mrb[71].mxu1  ;;  %vm6163_vm11 = vmmov %vm6162_vm2 }
 0x409   : > { %3508 = vset.pattern.permute.xlu1 %v5430_v11 }
 0x40d   : > { %1782 = vperm.xlu1 %3508, %v1778_v3  }
 0x40e   : > { %v2462_v1 = vpop.f32.mrb[72].mxu1 }
 0x40f   : > { %2702 = vst.msk [vmem:[%s5467_s21 + $0x120] sm:$0xff] %vm6150_vm4, %v2462_v1  ;;  %v2464_v32 = vpop.f32.mrb[73].mxu1  ;;  %vm6165_vm4 = vmmov %vm6162_vm2 }
 0x411   : > { %3509 = vset.pattern.permute.xlu1 %v5437_v25 }
 0x415   : > { %1790 = vperm.xlu1 %3509, %v1786_v19  }
 0x416   : > { %v2467_v11 = vpop.f32.mrb[74].mxu1 }
 0x417   : > { %2703 = vst.msk [vmem:[%s5467_s21 + $0x128] sm:$0xff] %vm6152_vm6, %v2467_v11  ;;  %v2469_v37 = vpop.f32.mrb[75].mxu1  ;;  %vm6167_vm6 = vmmov %vm6162_vm2 }
 0x419   : > { %3510 = vset.pattern.permute.xlu1 %v5445_v50  ;;  %v1818_v50 = vsel %vm6158_vm8, %v4446_v39, %v4464_v7 }
 0x41d   : > { %1798 = vperm.xlu1 %3510, %v1794_v29  }
 0x421   : > { %3511 = vset.pattern.permute.xlu1 %v5452_v46 }
 0x424   : > { %v2472_v21 = vpop.f32.mrb[76].mxu1 }
 0x425   : > { %2704 = vst.msk [vmem:[%s5467_s21 + $0x130] sm:$0xff] %vm6155_vm15, %v2472_v21  ;;  %v2474_v25 = vpop.f32.mrb[77].mxu1  ;;  %1806 = vperm.xlu1 %3511, %v1802_v59  }
 0x429   : > { %3512 = vset.pattern.permute.xlu1 %v5461_v27 }
 0x42c   : > { %v2477_v63 = vpop.f32.mrb[78].mxu1 }
 0x42d   : > { %2705 = vst.msk [vmem:[%s5467_s21 + $0x138] sm:$0xff] %vm6157_vm12, %v2477_v63  ;;  %v2479_v57 = vpop.f32.mrb[79].mxu1  ;;  %1814 = vperm.xlu1 %3512, %v1810_v52  }
 0x431   : > { %3513 = vset.pattern.permute.xlu1 %v5476_v62 }
 0x434   : > { %v2482_v34 = vpop.f32.mrb[80].mxu1 }
 0x435   : > { %2706 = vst.msk [vmem:[%s5467_s21 + $0x140] sm:$0xff] %vm6159_vm9, %v2482_v34  ;;  %v2484_v8 = vpop.f32.mrb[81].mxu1  ;;  %1822 = vperm.xlu1 %3513, %v1818_v50   ;;  %vm6170_vm9 = vmmov %vm6169_vm0 }
 0x43c   : > { %v2487_v41 = vpop.f32.mrb[82].mxu1 }
 0x43d   : > { %2707 = vst.msk [vmem:[%s5467_s21 + $0x148] sm:$0xff] %vm6160_vm5, %v2487_v41  ;;  %v2489_v46 = vpop.f32.mrb[83].mxu1 }
 0x444   : > { %v2492_v27 = vpop.f32.mrb[84].mxu1 }
 0x445   : > { %2708 = vst.msk [vmem:[%s5467_s21 + $0x150] sm:$0xff] %vm6161_vm14, %v2492_v27  ;;  %v2494_v62 = vpop.f32.mrb[85].mxu1 }
 0x44c   : > { %v2497_v4 = vpop.f32.mrb[86].mxu1 }
 0x44d   : > { %2709 = vst.msk [vmem:[%s5467_s21 + $0x158] sm:$0xff] %vm6162_vm2, %v2497_v4  ;;  %v2499_v14 = vpop.f32.mrb[87].mxu1  ;;  %vm6171_vm2 = vmmov %vm6169_vm0 }
 0x454   : > { %v2502_v6 = vpop.f32.mrb[88].mxu1 }
 0x455   : > { %2710 = vst.msk [vmem:[%s5467_s21 + $0x160] sm:$0xff] %vm6163_vm11, %v2502_v6  ;;  %v2504_v60 = vpop.f32.mrb[89].mxu1 }
 0x45c   : > { %v2507_v15 = vpop.f32.mrb[90].mxu1 }
 0x45d   : > { %2711 = vst.msk [vmem:[%s5467_s21 + $0x168] sm:$0xff] %vm6164_vm3, %v2507_v15  ;;  %v2509_v30 = vpop.f32.mrb[91].mxu1 }
 0x464   : > { %v2512_v12 = vpop.f32.mrb[92].mxu1 }
 0x465   : > { %2712 = vst.msk [vmem:[%s5467_s21 + $0x170] sm:$0xff] %vm6165_vm4, %v2512_v12  ;;  %v2514_v55 = vpop.f32.mrb[93].mxu1  ;;  %vm6172_vm4 = vmmov %vm6169_vm0 }
 0x46c   : > { %v2517_v26 = vpop.f32.mrb[94].mxu1 }
 0x46d   : > { %2713 = vst.msk [vmem:[%s5467_s21 + $0x178] sm:$0xff] %vm6166_vm10, %v2517_v26  ;;  %v2519_v53 = vpop.f32.mrb[95].mxu1 }
 0x474   : > { %v2522_v49 = vpop.f32.mrb[96].mxu1 }
 0x475   : > { %2714 = vst.msk [vmem:[%s5467_s21 + $0x180] sm:$0xff] %vm6167_vm6, %v2522_v49  ;;  %v2524_v2 = vpop.f32.mrb[97].mxu1 }
 0x47c   : > { %v2527_v61 = vpop.f32.mrb[98].mxu1  ;;  %v1767_v28 = vpop.permute.xlu1 %1766 }
 0x47d   : > { %2715 = vst.msk [vmem:[%s5467_s21 + $0x188] sm:$0xff] %vm6168_vm13, %v2527_v61  ;;  %v2529_v22 = vpop.f32.mrb[99].mxu1  ;;  %vm1943_vm7 = vcmp.eq.s32.totalorder %v4464_v7, %v1767_v28  ;;  %vm1942_vm15 = vcmp.eq.s32.totalorder %v4446_v39, %v1767_v28  ;;  %vm6173_vm13 = vmmov %vm6169_vm0 }
 0x47e   : > { %2657 = vst.msk [vmem:[%s4869_s18 + $0x1b8] sm:$0xff] %vm2601_vm1, %v1767_v28  ;;  %3165 = vmatprep.mubr.msk.f32.mxu1 %vm1943_vm7, %v6074_v13 }
 0x47f   : > { %3166 = vmatmul.mubr.msk.f32.gmra.mrb[110].mxu1 %vm1942_vm15, %v6074_v13 }
 0x484   : > { %v2532_v17 = vpop.f32.mrb[100].mxu1  ;;  %v1775_v16 = vpop.permute.xlu1 %1774 }
 0x485   : > { %2716 = vst.msk [vmem:[%s5467_s21 + $0x190] sm:$0xff] %vm6169_vm0, %v2532_v17  ;;  %v2534_v45 = vpop.f32.mrb[101].mxu1  ;;  %vm1945_vm12 = vcmp.eq.s32.totalorder %v4464_v7, %v1775_v16  ;;  %vm1944_vm8 = vcmp.eq.s32.totalorder %v4446_v39, %v1775_v16 }
 0x486   : > { %2658 = vst.msk [vmem:[%s4869_s18 + $0x1c0] sm:$0xff] %vm2601_vm1, %v1775_v16  ;;  %3167 = vmatprep.mubr.msk.f32.mxu1 %vm1945_vm12, %v6074_v13 }
 0x487   : > { %3168 = vmatmul.mubr.msk.f32.gmra.mrb[112].mxu1 %vm1944_vm8, %v6074_v13 }
 0x48c   : > { %v2537_v0 = vpop.f32.mrb[102].mxu1  ;;  %v1783_v35 = vpop.permute.xlu1 %1782 }
 0x48d   : > { %2717 = vst.msk [vmem:[%s5467_s21 + $0x198] sm:$0xff] %vm6170_vm9, %v2537_v0  ;;  %v2539_v38 = vpop.f32.mrb[103].mxu1  ;;  %vm1947_vm5 = vcmp.eq.s32.totalorder %v4464_v7, %v1783_v35  ;;  %vm1946_vm14 = vcmp.eq.s32.totalorder %v4446_v39, %v1783_v35 }
 0x48e   : > { %2659 = vst.msk [vmem:[%s4869_s18 + $0x1c8] sm:$0xff] %vm2601_vm1, %v1783_v35  ;;  %3169 = vmatprep.mubr.msk.f32.mxu1 %vm1947_vm5, %v6074_v13  ;;  %vm1959_vm5 = vcmp.eq.s32.totalorder %v4464_v7, %v5659_v43 }
 0x48f   : > { %3170 = vmatmul.mubr.msk.f32.gmra.mrb[114].mxu1 %vm1946_vm14, %v6074_v13  ;;  %vm1958_vm14 = vcmp.eq.s32.totalorder %v4446_v39, %v5659_v43 }
 0x494   : > { %v2542_v24 = vpop.f32.mrb[104].mxu1  ;;  %v1791_v20 = vpop.permute.xlu1 %1790 }
 0x495   : > { %2718 = vst.msk [vmem:[%s5467_s21 + $0x1a0] sm:$0xff] %vm6171_vm2, %v2542_v24  ;;  %v2544_v56 = vpop.f32.mrb[105].mxu1  ;;  %vm1949_vm11 = vcmp.eq.s32.totalorder %v4464_v7, %v1791_v20  ;;  %vm1948_vm3 = vcmp.eq.s32.totalorder %v4446_v39, %v1791_v20 }
 0x496   : > { %2660 = vst.msk [vmem:[%s4869_s18 + $0x1d0] sm:$0xff] %vm2601_vm1, %v1791_v20  ;;  %3171 = vmatprep.mubr.msk.f32.mxu1 %vm1949_vm11, %v6074_v13 }
 0x497   : > { %3172 = vmatmul.mubr.msk.f32.gmra.mrb[116].mxu1 %vm1948_vm3, %v6074_v13 }
 0x49c   : > { %v2547_v58 = vpop.f32.mrb[106].mxu1  ;;  %v1799_v9 = vpop.permute.xlu1 %1798 }
 0x49d   : > { %2719 = vst.msk [vmem:[%s5467_s21 + $0x1a8] sm:$0xff] %vm6172_vm4, %v2547_v58  ;;  %v2549_v51 = vpop.f32.mrb[107].mxu1  ;;  %vm1951_vm10 = vcmp.eq.s32.totalorder %v4464_v7, %v1799_v9  ;;  %vm1950_vm6 = vcmp.eq.s32.totalorder %v4446_v39, %v1799_v9 }
 0x49e   : > { %2661 = vst.msk [vmem:[%s4869_s18 + $0x1d8] sm:$0xff] %vm2601_vm1, %v1799_v9  ;;  %3173 = vmatprep.mubr.msk.f32.mxu1 %vm1951_vm10, %v6074_v13 }
 0x49f   : > { %3174 = vmatmul.mubr.msk.f32.gmra.mrb[118].mxu1 %vm1950_vm6, %v6074_v13 }
 0x4a0   : > { %v2552_v47 = vpop.f32.mrb[108].mxu1 }
 0x4a1   : > { %2720 = vst.msk [vmem:[%s5467_s21 + $0x1b0] sm:$0xff] %vm6173_vm13, %v2552_v47  ;;  %v2554_v48 = vpop.f32.mrb[109].mxu1 }
 0x4a4   : > { %v1807_v31 = vpop.permute.xlu1 %1806 }
 0x4a5   : > { %2662 = vst.msk [vmem:[%s4869_s18 + $0x1e0] sm:$0xff] %vm2601_vm1, %v1807_v31  ;;  %vm1953_vm7 = vcmp.eq.s32.totalorder %v4464_v7, %v1807_v31  ;;  %vm1952_vm15 = vcmp.eq.s32.totalorder %v4446_v39, %v1807_v31 }
 0x4a6   : > { %3175 = vmatprep.mubr.msk.f32.mxu1 %vm1953_vm7, %v6074_v13 }
 0x4a7   : > { %3176 = vmatmul.mubr.msk.f32.gmra.mrb[120].mxu1 %vm1952_vm15, %v6074_v13 }
 0x4ac   : > { %v1815_v42 = vpop.permute.xlu1 %1814 }
 0x4ad   : > { %2663 = vst.msk [vmem:[%s4869_s18 + $0x1e8] sm:$0xff] %vm2601_vm1, %v1815_v42  ;;  %vm1955_vm0 = vcmp.eq.s32.totalorder %v4464_v7, %v1815_v42  ;;  %vm1954_vm12 = vcmp.eq.s32.totalorder %v4446_v39, %v1815_v42 }
 0x4ae   : > { %3177 = vmatprep.mubr.msk.f32.mxu1 %vm1955_vm0, %v6074_v13 }
 0x4af   : > { %3178 = vmatmul.mubr.msk.f32.gmra.mrb[122].mxu1 %vm1954_vm12, %v6074_v13 }
 0x4b4   : > { %v1823_v36 = vpop.permute.xlu1 %1822 }
 0x4b5   : > { %vm1956_vm8 = vcmp.eq.s32.totalorder %v4446_v39, %v1823_v36  ;;  %vm1957_vm9 = vcmp.eq.s32.totalorder %v4464_v7, %v1823_v36  ;;  %2664 = vst.msk [vmem:[%s4869_s18 + $0x1f0] sm:$0xff] %vm2601_vm1, %v1823_v36  ;;  %vm6174_vm1 = vmmov %vm6171_vm2 }
 0x4b6   : > { %3179 = vmatprep.mubr.msk.f32.mxu1 %vm1957_vm9, %v6074_v13  ;;  %vm6175_vm11 = vmmov %vm6174_vm1 }
 0x4b7   : > { %3180 = vmatmul.mubr.msk.f32.gmra.mrb[124].mxu1 %vm1956_vm8, %v6074_v13  ;;  %vm6176_vm3 = vmmov %vm6174_vm1 }
 0x4b8   : > { %3181 = vmatprep.mubr.msk.f32.mxu1 %vm1959_vm5, %v6074_v13  ;;  %vm6177_vm4 = vmmov %vm6174_vm1 }
 0x4b9   : > { %vm6178_vm10 = vmmov %vm6174_vm1 }
 0x4ba   : > { %vm6179_vm6 = vmmov %vm6174_vm1 }
 0x4bb   : > { %3182 = vmatmul.mubr.msk.f32.gmra.mrb[126].mxu1 %vm1958_vm14, %v6074_v13  ;;  %vm6180_vm13 = vmmov %vm6174_vm1 }
 0x4bc   : > { %vm6181_vm7 = vmmov %vm6174_vm1 }
 0x552   : > { %v2557_v40 = vpop.f32.mrb[110].mxu1 }
 0x553   : > { %2721 = vst.msk [vmem:[%s5467_s21 + $0x1b8] sm:$0xff] %vm6171_vm2, %v2557_v40  ;;  %v2559_v18 = vpop.f32.mrb[111].mxu1 }
 0x55a   : > { %v2562_v44 = vpop.f32.mrb[112].mxu1 }
 0x55b   : > { %2722 = vst.msk [vmem:[%s5467_s21 + $0x1c0] sm:$0xff] %vm6174_vm1, %v2562_v44  ;;  %v2564_v7 = vpop.f32.mrb[113].mxu1 }
 0x562   : > { %v2567_v23 = vpop.f32.mrb[114].mxu1 }
 0x563   : > { %2723 = vst.msk [vmem:[%s5467_s21 + $0x1c8] sm:$0xff] %vm6175_vm11, %v2567_v23  ;;  %v2569_v10 = vpop.f32.mrb[115].mxu1 }
 0x56a   : > { %v2572_v54 = vpop.f32.mrb[116].mxu1 }
 0x56b   : > { %2724 = vst.msk [vmem:[%s5467_s21 + $0x1d0] sm:$0xff] %vm6176_vm3, %v2572_v54  ;;  %v2574_v39 = vpop.f32.mrb[117].mxu1 }
 0x572   : > { %v2577_v13 = vpop.f32.mrb[118].mxu1 }
 0x573   : > { %2725 = vst.msk [vmem:[%s5467_s21 + $0x1d8] sm:$0xff] %vm6177_vm4, %v2577_v13  ;;  %v2579_v43 = vpop.f32.mrb[119].mxu1 }
 0x57a   : > { %v2582_v5 = vpop.f32.mrb[120].mxu1 }
 0x57b   : > { %2726 = vst.msk [vmem:[%s5467_s21 + $0x1e0] sm:$0xff] %vm6178_vm10, %v2582_v5  ;;  %v2584_v33 = vpop.f32.mrb[121].mxu1 }
 0x582   : > { %v2587_v3 = vpop.f32.mrb[122].mxu1 }
 0x583   : > { %2727 = vst.msk [vmem:[%s5467_s21 + $0x1e8] sm:$0xff] %vm6179_vm6, %v2587_v3  ;;  %v2589_v1 = vpop.f32.mrb[123].mxu1 }
 0x58a   : > { %v2592_v32 = vpop.f32.mrb[124].mxu1 }
 0x58b   : > { %2728 = vst.msk [vmem:[%s5467_s21 + $0x1f0] sm:$0xff] %vm6180_vm13, %v2592_v32  ;;  %v2594_v19 = vpop.f32.mrb[125].mxu1 }
 0x58e   : > { %v2597_v11 = vpop.f32.mrb[126].mxu1 }
 0x58f   : > { %2729 = vst.msk [vmem:[%s5467_s21 + $0x1f8] sm:$0xff] %vm6181_vm7, %v2597_v11  ;;  %v2599_v37 = vpop.f32.mrb[127].mxu1 }
 0x590 PF: > { %s15_s15 = sadd.s32 1, %s3521_s15  }
 0x591   : > { %p12_p4 = scmp.ge.s32.totalorder %s15_s15, 4  }
 0x593   :  { %14 = sbr.rel (!%p12_p4) target bundleno = 1 (0x1), region = 74 }

</bundles_post_ra>
